<compile_context>
chip_gen: v6e
topology: v6e:2x2x1
jax: 0.10.0
libtpu: 0.0.40
codegen_flags: <defaults>
</compile_context>

<pallas_src>
import functools

import jax
import jax.numpy as jnp
from jax.experimental import pallas as pl
from jax.experimental.pallas import tpu as pltpu

KSIZE = 4
STRIDE = 2
PAD = 1
EPS = 1e-5  # nn.InstanceNorm2d default


def _vmem_limit_bytes():
    """~3/4 of physical VMEM (headroom for compiler scratch / semaphores)."""
    try:
        cap = pltpu.get_tpu_info().vmem_capacity_bytes
        if cap:
            return int(cap) * 3 // 4
    except Exception:
        pass
    return 48 * 1024 * 1024


def _fused_convtranspose_in_relu_kernel(xw_ref, w_ref, o_ref, *, h, w):
    """One batch item, fully in VMEM.

    xw_ref: (2*(H+2)*W, 2*Cin) bf16  column-phase-gathered padded input,
            flattened as (px, padded_row, out_col) -> rows, (dc, ci) -> cols.
    w_ref:  (8, 2*Cin, Cout)   bf16  per-(py,px,dr) weight matrices.
    o_ref:  (4*H*W, Cout)            phase-major conv output, normalized in place.
    """
    hw = h * w
    inv_count = 1.0 / float(4 * hw)           # 4*H*W == OH*OW
    c_out = o_ref.shape[-1]

    # --- zero-free 4-phase ConvTranspose2d: 2 matmuls (row taps) per phase ----
    ssum = jnp.zeros((1, c_out), jnp.float32)
    for py in (0, 1):
        for px in (0, 1):
            acc = jnp.zeros((hw, c_out), jnp.float32)
            for dr in (0, 1):
                start = (px * (h + 2) + py + dr) * w          # static offset
                lhs = xw_ref[pl.ds(start, hw), :]             # (H*W, 2*Cin) bf16
                acc = acc + jnp.dot(lhs, w_ref[(py * 2 + px) * 2 + dr],
                                    preferred_element_type=jnp.float32)
            p = py * 2 + px
            o_ref[pl.ds(p * hw, hw), :] = acc.astype(o_ref.dtype)
            ssum = ssum + jnp.sum(acc, axis=0, keepdims=True)

    # --- InstanceNorm statistics (two-pass variance, f32) ---------------------
    mean = ssum * inv_count
    sq = jnp.zeros((1, c_out), jnp.float32)
    for p in range(4):
        d = o_ref[pl.ds(p * hw, hw), :].astype(jnp.float32) - mean
        sq = sq + jnp.sum(d * d, axis=0, keepdims=True)
    inv_std = jax.lax.rsqrt(sq * inv_count + EPS)

    # --- normalize + ReLU in place on the VMEM-resident output block ---------
    for p in range(4):
        blk = o_ref[pl.ds(p * hw, hw), :].astype(jnp.float32)
        o_ref[pl.ds(p * hw, hw), :] = jnp.maximum(
            (blk - mean) * inv_std, 0.0).astype(o_ref.dtype)


def unet_up_forward(x, skip, w_ct):
    """x: (N, Cin, H, W), skip: (N, Cskip, SH, SW), w_ct: (Cin, Cout, 4, 4).
    Returns (N, Cout + Cskip, 2H, 2W) NCHW, matching the PyTorch module (dropout=0)."""
    n, c_in, h, w_sp = x.shape
    c_in_w, c_out, kh, kw = w_ct.shape
    assert c_in == c_in_w and kh == KSIZE and kw == KSIZE
    oh = (h - 1) * STRIDE - 2 * PAD + KSIZE                   # == 2H
    ow = (w_sp - 1) * STRIDE - 2 * PAD + KSIZE                # == 2W
    hw = h * w_sp
    k2 = 2 * c_in

    # ---- XLA prep (cheap): 1-pad NHWC, pre-gather the two column taps --------
    # xw[n, px, r, q, dc*Cin+ci] = x_pad_nhwc[n, r, q+px+dc, ci]
    x_nhwc = jnp.transpose(x, (0, 2, 3, 1))
    x_pad = jnp.pad(x_nhwc, ((0, 0), (1, 1), (1, 1), (0, 0))).astype(jnp.bfloat16)
    cols = [x_pad[:, :, s:s + w_sp, :] for s in range(3)]     # shifts 0,1,2
    xw = jnp.stack(
        [jnp.concatenate([cols[px], cols[px + 1]], axis=-1) for px in (0, 1)],
        axis=1)                                               # (N, 2, H+2, W, 2Cin)
    xw = xw.reshape(n, 2 * (h + 2) * w_sp, k2)

    # Weight taps: Wt[py,px,dr][dc*Cin+ci, co] = W[ci, co, 3-py-2dr, 3-px-2dc]
    wt = jnp.stack([jnp.stack([jnp.stack([
            jnp.concatenate([w_ct[:, :, 3 - py - 2 * dr, 3 - px - 2 * dc]
                             for dc in (0, 1)], axis=0)
         for dr in (0, 1)], axis=0) for px in (0, 1)], axis=0) for py in (0, 1)],
        axis=0)
    wt = wt.reshape(8, k2, c_out).astype(jnp.bfloat16)

    kernel = functools.partial(_fused_convtranspose_in_relu_kernel, h=h, w=w_sp)

    y_planar = pl.pallas_call(
        kernel,
        out_shape=jax.ShapeDtypeStruct((n, 4 * hw, c_out), x.dtype),
        grid=(n,),
        in_specs=[
            pl.BlockSpec((None, 2 * (h + 2) * w_sp, k2), lambda b: (b, 0, 0)),
            pl.BlockSpec((8, k2, c_out), lambda b: (0, 0, 0)),   # VMEM-resident
        ],
        out_specs=pl.BlockSpec((None, 4 * hw, c_out), lambda b: (b, 0, 0)),
        compiler_params=pltpu.CompilerParams(
            dimension_semantics=("parallel",),
            vmem_limit_bytes=_vmem_limit_bytes()),
    )(xw, wt)

    # ---- XLA epilogue: phase interleave to NCHW, optional pad, skip concat ---
    y = y_planar.reshape(n, 2, 2, h, w_sp, c_out)             # (N, py, px, m, q, C)
    y = jnp.transpose(y, (0, 5, 3, 1, 4, 2)).reshape(n, c_out, oh, ow)

    _, c_skip, sh, sw = skip.shape
    if (sh, sw) != (oh, ow):
        dy, dx = sh - oh, sw - ow
        y = jnp.pad(y, ((0, 0), (0, 0),
                        (dy // 2, dy - dy // 2), (dx // 2, dx - dx // 2)))
    return jnp.concatenate([y, skip], axis=1)


def _reference_forward(x, skip, w_ct):
    """Pure-JAX reference matching the PyTorch module semantics."""
    rhs = jnp.transpose(w_ct[:, :, ::-1, ::-1], (1, 0, 2, 3))   # (Cout, Cin, 4, 4)
    y = jax.lax.conv_general_dilated(
        x, rhs, window_strides=(1, 1), padding=((2, 2), (2, 2)),
        lhs_dilation=(2, 2), dimension_numbers=("NCHW", "OIHW", "NCHW"),
        precision=jax.lax.Precision.HIGHEST)
    mean = y.mean(axis=(2, 3), keepdims=True)
    var = ((y - mean) ** 2).mean(axis=(2, 3), keepdims=True)
    y = jnp.maximum((y - mean) / jnp.sqrt(var + EPS), 0.0)
    return jnp.concatenate([y, skip], axis=1)


if __name__ == "__main__":
    key = jax.random.PRNGKey(0)
    kx, ks, kw = jax.random.split(key, 3)

    N, C_IN, C_OUT, C_SKIP, H, W = 2, 8, 8, 8, 16, 16
    x = jax.random.normal(kx, (N, C_IN, H, W), dtype=jnp.float32)
    skip = jax.random.normal(ks, (N, C_SKIP, 2 * H, 2 * W), dtype=jnp.float32)
    # ConvTranspose2d weight shape: (in_channels, out_channels, 4, 4).
    w_ct = 0.1 * jax.random.normal(kw, (C_IN, C_OUT, KSIZE, KSIZE), dtype=jnp.float32)

    fwd = jax.jit(unet_up_forward)
    out = jax.block_until_ready(fwd(x, skip, w_ct))

    ref = _reference_forward(x, skip, w_ct)
    assert out.shape == (N, C_OUT + C_SKIP, 2 * H, 2 * W), out.shape
    max_err = float(jnp.max(jnp.abs(out - ref)))
    # tolerance accounts for the bf16 MXU inputs (f32 accumulation + f32 stats)
    assert max_err < 3e-2, f"max_err={max_err}"

    print("KERNEL_OK")
</pallas_src>

<mosaic_0001>
module attributes {stable_mosaic.version = 11 : i64} {
  func.func @_fused_convtranspose_in_relu_kernel(%arg0: i32, %arg1: memref<1x576x16xbf16, #tpu.memory_space<vmem>>, %arg2: memref<8x16x8xbf16, #tpu.memory_space<vmem>>, %arg3: memref<1x1024x8xf32, #tpu.memory_space<vmem>>) attributes {dimension_semantics = [#tpu.dimension_semantics<parallel>], iteration_bounds = array<i64: 2>, scalar_prefetch = 0 : i64, scratch_operands = 0 : i64, tpu.core_type = #tpu.core_type<tc>, window_params = [{transform_indices = @transform_0, window_bounds = array<i64: 1, 576, 16>}, {pipeline_mode = #tpu.pipeline_mode<synchronous>, transform_indices = @transform_1, window_bounds = array<i64: 8, 16, 8>}, {transform_indices = @transform_2, window_bounds = array<i64: 1, 1024, 8>}]} {
    %cst = arith.constant 0.000000e+00 : f32
    %0 = vector.broadcast %cst : f32 to vector<1x8xf32>
    %cst_0 = arith.constant 0.000000e+00 : f32
    %1 = vector.broadcast %cst_0 : f32 to vector<256x8xf32>
    %c0 = arith.constant 0 : index
    %c0_1 = arith.constant 0 : index
    %c0_2 = arith.constant 0 : index
    %2 = vector.load %arg1[%c0, %c0_1, %c0_2] : memref<1x576x16xbf16, #tpu.memory_space<vmem>>, vector<1x256x16xbf16>
    %3 = vector.shape_cast %2 : vector<1x256x16xbf16> to vector<256x16xbf16>
    %c0_3 = arith.constant 0 : index
    %c0_4 = arith.constant 0 : index
    %c0_5 = arith.constant 0 : index
    %4 = vector.load %arg2[%c0_3, %c0_4, %c0_5] : memref<8x16x8xbf16, #tpu.memory_space<vmem>>, vector<1x16x8xbf16>
    %5 = vector.shape_cast %4 : vector<1x16x8xbf16> to vector<16x8xbf16>
    %cst_6 = arith.constant dense<0.000000e+00> : vector<256x8xf32>
    %6 = tpu.matmul %3, %5, %cst_6 {dimension_numbers = #tpu.dot_dimension_numbers<[1], [0], [0], [1], [0, 0, 1, 1], [], []>} : vector<256x16xbf16>, vector<16x8xbf16>, vector<256x8xf32> -> vector<256x8xf32>
    %7 = arith.addf %1, %6 : vector<256x8xf32>
    %c0_7 = arith.constant 0 : index
    %c16 = arith.constant 16 : index
    %c0_8 = arith.constant 0 : index
    %8 = vector.load %arg1[%c0_7, %c16, %c0_8] : memref<1x576x16xbf16, #tpu.memory_space<vmem>>, vector<1x256x16xbf16>
    %9 = vector.shape_cast %8 : vector<1x256x16xbf16> to vector<256x16xbf16>
    %c1 = arith.constant 1 : index
    %c0_9 = arith.constant 0 : index
    %c0_10 = arith.constant 0 : index
    %10 = vector.load %arg2[%c1, %c0_9, %c0_10] : memref<8x16x8xbf16, #tpu.memory_space<vmem>>, vector<1x16x8xbf16>
    %11 = vector.shape_cast %10 : vector<1x16x8xbf16> to vector<16x8xbf16>
    %cst_11 = arith.constant dense<0.000000e+00> : vector<256x8xf32>
    %12 = tpu.matmul %9, %11, %cst_11 {dimension_numbers = #tpu.dot_dimension_numbers<[1], [0], [0], [1], [0, 0, 1, 1], [], []>} : vector<256x16xbf16>, vector<16x8xbf16>, vector<256x8xf32> -> vector<256x8xf32>
    %13 = arith.addf %7, %12 : vector<256x8xf32>
    %c0_12 = arith.constant 0 : index
    %c0_13 = arith.constant 0 : index
    %c0_14 = arith.constant 0 : index
    %14 = vector.load %arg3[%c0_12, %c0_13, %c0_14] : memref<1x1024x8xf32, #tpu.memory_space<vmem>>, vector<1x256x8xf32>
    %15 = vector.shape_cast %14 : vector<1x256x8xf32> to vector<256x8xf32>
    %16 = vector.shape_cast %13 : vector<256x8xf32> to vector<1x256x8xf32>
    tpu.vector_store %arg3[%c0_12, %c0_13, %c0_14], %16 {strides = array<i32>} : memref<1x1024x8xf32, #tpu.memory_space<vmem>>, vector<1x256x8xf32>,
    %cst_15 = arith.constant dense<0.000000e+00> : vector<8xf32>
    %17 = vector.multi_reduction <add>, %13, %cst_15 [0] : vector<256x8xf32> to vector<8xf32>
    %18 = vector.shape_cast %17 : vector<8xf32> to vector<1x8xf32>
    %19 = arith.addf %0, %18 : vector<1x8xf32>
    %cst_16 = arith.constant 0.000000e+00 : f32
    %20 = vector.broadcast %cst_16 : f32 to vector<256x8xf32>
    %c0_17 = arith.constant 0 : index
    %c288 = arith.constant 288 : index
    %c0_18 = arith.constant 0 : index
    %21 = vector.load %arg1[%c0_17, %c288, %c0_18] : memref<1x576x16xbf16, #tpu.memory_space<vmem>>, vector<1x256x16xbf16>
    %22 = vector.shape_cast %21 : vector<1x256x16xbf16> to vector<256x16xbf16>
    %c2 = arith.constant 2 : index
    %c0_19 = arith.constant 0 : index
    %c0_20 = arith.constant 0 : index
    %23 = vector.load %arg2[%c2, %c0_19, %c0_20] : memref<8x16x8xbf16, #tpu.memory_space<vmem>>, vector<1x16x8xbf16>
    %24 = vector.shape_cast %23 : vector<1x16x8xbf16> to vector<16x8xbf16>
    %cst_21 = arith.constant dense<0.000000e+00> : vector<256x8xf32>
    %25 = tpu.matmul %22, %24, %cst_21 {dimension_numbers = #tpu.dot_dimension_numbers<[1], [0], [0], [1], [0, 0, 1, 1], [], []>} : vector<256x16xbf16>, vector<16x8xbf16>, vector<256x8xf32> -> vector<256x8xf32>
    %26 = arith.addf %20, %25 : vector<256x8xf32>
    %c0_22 = arith.constant 0 : index
    %c304 = arith.constant 304 : index
    %c0_23 = arith.constant 0 : index
    %27 = vector.load %arg1[%c0_22, %c304, %c0_23] : memref<1x576x16xbf16, #tpu.memory_space<vmem>>, vector<1x256x16xbf16>
    %28 = vector.shape_cast %27 : vector<1x256x16xbf16> to vector<256x16xbf16>
    %c3 = arith.constant 3 : index
    %c0_24 = arith.constant 0 : index
    %c0_25 = arith.constant 0 : index
    %29 = vector.load %arg2[%c3, %c0_24, %c0_25] : memref<8x16x8xbf16, #tpu.memory_space<vmem>>, vector<1x16x8xbf16>
    %30 = vector.shape_cast %29 : vector<1x16x8xbf16> to vector<16x8xbf16>
    %cst_26 = arith.constant dense<0.000000e+00> : vector<256x8xf32>
    %31 = tpu.matmul %28, %30, %cst_26 {dimension_numbers = #tpu.dot_dimension_numbers<[1], [0], [0], [1], [0, 0, 1, 1], [], []>} : vector<256x16xbf16>, vector<16x8xbf16>, vector<256x8xf32> -> vector<256x8xf32>
    %32 = arith.addf %26, %31 : vector<256x8xf32>
    %c0_27 = arith.constant 0 : index
    %c256 = arith.constant 256 : index
    %c0_28 = arith.constant 0 : index
    %33 = vector.load %arg3[%c0_27, %c256, %c0_28] : memref<1x1024x8xf32, #tpu.memory_space<vmem>>, vector<1x256x8xf32>
    %34 = vector.shape_cast %33 : vector<1x256x8xf32> to vector<256x8xf32>
    %35 = vector.shape_cast %32 : vector<256x8xf32> to vector<1x256x8xf32>
    tpu.vector_store %arg3[%c0_27, %c256, %c0_28], %35 {strides = array<i32>} : memref<1x1024x8xf32, #tpu.memory_space<vmem>>, vector<1x256x8xf32>,
    %cst_29 = arith.constant dense<0.000000e+00> : vector<8xf32>
    %36 = vector.multi_reduction <add>, %32, %cst_29 [0] : vector<256x8xf32> to vector<8xf32>
    %37 = vector.shape_cast %36 : vector<8xf32> to vector<1x8xf32>
    %38 = arith.addf %19, %37 : vector<1x8xf32>
    %cst_30 = arith.constant 0.000000e+00 : f32
    %39 = vector.broadcast %cst_30 : f32 to vector<256x8xf32>
    %c0_31 = arith.constant 0 : index
    %c16_32 = arith.constant 16 : index
    %c0_33 = arith.constant 0 : index
    %40 = vector.load %arg1[%c0_31, %c16_32, %c0_33] : memref<1x576x16xbf16, #tpu.memory_space<vmem>>, vector<1x256x16xbf16>
    %41 = vector.shape_cast %40 : vector<1x256x16xbf16> to vector<256x16xbf16>
    %c4 = arith.constant 4 : index
    %c0_34 = arith.constant 0 : index
    %c0_35 = arith.constant 0 : index
    %42 = vector.load %arg2[%c4, %c0_34, %c0_35] : memref<8x16x8xbf16, #tpu.memory_space<vmem>>, vector<1x16x8xbf16>
    %43 = vector.shape_cast %42 : vector<1x16x8xbf16> to vector<16x8xbf16>
    %cst_36 = arith.constant dense<0.000000e+00> : vector<256x8xf32>
    %44 = tpu.matmul %41, %43, %cst_36 {dimension_numbers = #tpu.dot_dimension_numbers<[1], [0], [0], [1], [0, 0, 1, 1], [], []>} : vector<256x16xbf16>, vector<16x8xbf16>, vector<256x8xf32> -> vector<256x8xf32>
    %45 = arith.addf %39, %44 : vector<256x8xf32>
    %c0_37 = arith.constant 0 : index
    %c32 = arith.constant 32 : index
    %c0_38 = arith.constant 0 : index
    %46 = vector.load %arg1[%c0_37, %c32, %c0_38] : memref<1x576x16xbf16, #tpu.memory_space<vmem>>, vector<1x256x16xbf16>
    %47 = vector.shape_cast %46 : vector<1x256x16xbf16> to vector<256x16xbf16>
    %c5 = arith.constant 5 : index
    %c0_39 = arith.constant 0 : index
    %c0_40 = arith.constant 0 : index
    %48 = vector.load %arg2[%c5, %c0_39, %c0_40] : memref<8x16x8xbf16, #tpu.memory_space<vmem>>, vector<1x16x8xbf16>
    %49 = vector.shape_cast %48 : vector<1x16x8xbf16> to vector<16x8xbf16>
    %cst_41 = arith.constant dense<0.000000e+00> : vector<256x8xf32>
    %50 = tpu.matmul %47, %49, %cst_41 {dimension_numbers = #tpu.dot_dimension_numbers<[1], [0], [0], [1], [0, 0, 1, 1], [], []>} : vector<256x16xbf16>, vector<16x8xbf16>, vector<256x8xf32> -> vector<256x8xf32>
    %51 = arith.addf %45, %50 : vector<256x8xf32>
    %c0_42 = arith.constant 0 : index
    %c512 = arith.constant 512 : index
    %c0_43 = arith.constant 0 : index
    %52 = vector.load %arg3[%c0_42, %c512, %c0_43] : memref<1x1024x8xf32, #tpu.memory_space<vmem>>, vector<1x256x8xf32>
    %53 = vector.shape_cast %52 : vector<1x256x8xf32> to vector<256x8xf32>
    %54 = vector.shape_cast %51 : vector<256x8xf32> to vector<1x256x8xf32>
    tpu.vector_store %arg3[%c0_42, %c512, %c0_43], %54 {strides = array<i32>} : memref<1x1024x8xf32, #tpu.memory_space<vmem>>, vector<1x256x8xf32>,
    %cst_44 = arith.constant dense<0.000000e+00> : vector<8xf32>
    %55 = vector.multi_reduction <add>, %51, %cst_44 [0] : vector<256x8xf32> to vector<8xf32>
    %56 = vector.shape_cast %55 : vector<8xf32> to vector<1x8xf32>
    %57 = arith.addf %38, %56 : vector<1x8xf32>
    %cst_45 = arith.constant 0.000000e+00 : f32
    %58 = vector.broadcast %cst_45 : f32 to vector<256x8xf32>
    %c0_46 = arith.constant 0 : index
    %c304_47 = arith.constant 304 : index
    %c0_48 = arith.constant 0 : index
    %59 = vector.load %arg1[%c0_46, %c304_47, %c0_48] : memref<1x576x16xbf16, #tpu.memory_space<vmem>>, vector<1x256x16xbf16>
    %60 = vector.shape_cast %59 : vector<1x256x16xbf16> to vector<256x16xbf16>
    %c6 = arith.constant 6 : index
    %c0_49 = arith.constant 0 : index
    %c0_50 = arith.constant 0 : index
    %61 = vector.load %arg2[%c6, %c0_49, %c0_50] : memref<8x16x8xbf16, #tpu.memory_space<vmem>>, vector<1x16x8xbf16>
    %62 = vector.shape_cast %61 : vector<1x16x8xbf16> to vector<16x8xbf16>
    %cst_51 = arith.constant dense<0.000000e+00> : vector<256x8xf32>
    %63 = tpu.matmul %60, %62, %cst_51 {dimension_numbers = #tpu.dot_dimension_numbers<[1], [0], [0], [1], [0, 0, 1, 1], [], []>} : vector<256x16xbf16>, vector<16x8xbf16>, vector<256x8xf32> -> vector<256x8xf32>
    %64 = arith.addf %58, %63 : vector<256x8xf32>
    %c0_52 = arith.constant 0 : index
    %c320 = arith.constant 320 : index
    %c0_53 = arith.constant 0 : index
    %65 = vector.load %arg1[%c0_52, %c320, %c0_53] : memref<1x576x16xbf16, #tpu.memory_space<vmem>>, vector<1x256x16xbf16>
    %66 = vector.shape_cast %65 : vector<1x256x16xbf16> to vector<256x16xbf16>
    %c7 = arith.constant 7 : index
    %c0_54 = arith.constant 0 : index
    %c0_55 = arith.constant 0 : index
    %67 = vector.load %arg2[%c7, %c0_54, %c0_55] : memref<8x16x8xbf16, #tpu.memory_space<vmem>>, vector<1x16x8xbf16>
    %68 = vector.shape_cast %67 : vector<1x16x8xbf16> to vector<16x8xbf16>
    %cst_56 = arith.constant dense<0.000000e+00> : vector<256x8xf32>
    %69 = tpu.matmul %66, %68, %cst_56 {dimension_numbers = #tpu.dot_dimension_numbers<[1], [0], [0], [1], [0, 0, 1, 1], [], []>} : vector<256x16xbf16>, vector<16x8xbf16>, vector<256x8xf32> -> vector<256x8xf32>
    %70 = arith.addf %64, %69 : vector<256x8xf32>
    %c0_57 = arith.constant 0 : index
    %c768 = arith.constant 768 : index
    %c0_58 = arith.constant 0 : index
    %71 = vector.load %arg3[%c0_57, %c768, %c0_58] : memref<1x1024x8xf32, #tpu.memory_space<vmem>>, vector<1x256x8xf32>
    %72 = vector.shape_cast %71 : vector<1x256x8xf32> to vector<256x8xf32>
    %73 = vector.shape_cast %70 : vector<256x8xf32> to vector<1x256x8xf32>
    tpu.vector_store %arg3[%c0_57, %c768, %c0_58], %73 {strides = array<i32>} : memref<1x1024x8xf32, #tpu.memory_space<vmem>>, vector<1x256x8xf32>,
    %cst_59 = arith.constant dense<0.000000e+00> : vector<8xf32>
    %74 = vector.multi_reduction <add>, %70, %cst_59 [0] : vector<256x8xf32> to vector<8xf32>
    %75 = vector.shape_cast %74 : vector<8xf32> to vector<1x8xf32>
    %76 = arith.addf %57, %75 : vector<1x8xf32>
    %cst_60 = arith.constant 9.765625E-4 : f32
    %77 = vector.broadcast %cst_60 : f32 to vector<1x8xf32>
    %78 = arith.mulf %76, %77 : vector<1x8xf32>
    %cst_61 = arith.constant 0.000000e+00 : f32
    %79 = vector.broadcast %cst_61 : f32 to vector<1x8xf32>
    %c0_62 = arith.constant 0 : index
    %c0_63 = arith.constant 0 : index
    %c0_64 = arith.constant 0 : index
    %80 = vector.load %arg3[%c0_62, %c0_63, %c0_64] : memref<1x1024x8xf32, #tpu.memory_space<vmem>>, vector<1x256x8xf32>
    %81 = vector.shape_cast %80 : vector<1x256x8xf32> to vector<256x8xf32>
    %82 = vector.broadcast %78 : vector<1x8xf32> to vector<256x8xf32>
    %83 = arith.subf %81, %82 : vector<256x8xf32>
    %84 = arith.mulf %83, %83 : vector<256x8xf32>
    %cst_65 = arith.constant dense<0.000000e+00> : vector<8xf32>
    %85 = vector.multi_reduction <add>, %84, %cst_65 [0] : vector<256x8xf32> to vector<8xf32>
    %86 = vector.shape_cast %85 : vector<8xf32> to vector<1x8xf32>
    %87 = arith.addf %79, %86 : vector<1x8xf32>
    %c0_66 = arith.constant 0 : index
    %c256_67 = arith.constant 256 : index
    %c0_68 = arith.constant 0 : index
    %88 = vector.load %arg3[%c0_66, %c256_67, %c0_68] : memref<1x1024x8xf32, #tpu.memory_space<vmem>>, vector<1x256x8xf32>
    %89 = vector.shape_cast %88 : vector<1x256x8xf32> to vector<256x8xf32>
    %90 = vector.broadcast %78 : vector<1x8xf32> to vector<256x8xf32>
    %91 = arith.subf %89, %90 : vector<256x8xf32>
    %92 = arith.mulf %91, %91 : vector<256x8xf32>
    %cst_69 = arith.constant dense<0.000000e+00> : vector<8xf32>
    %93 = vector.multi_reduction <add>, %92, %cst_69 [0] : vector<256x8xf32> to vector<8xf32>
    %94 = vector.shape_cast %93 : vector<8xf32> to vector<1x8xf32>
    %95 = arith.addf %87, %94 : vector<1x8xf32>
    %c0_70 = arith.constant 0 : index
    %c512_71 = arith.constant 512 : index
    %c0_72 = arith.constant 0 : index
    %96 = vector.load %arg3[%c0_70, %c512_71, %c0_72] : memref<1x1024x8xf32, #tpu.memory_space<vmem>>, vector<1x256x8xf32>
    %97 = vector.shape_cast %96 : vector<1x256x8xf32> to vector<256x8xf32>
    %98 = vector.broadcast %78 : vector<1x8xf32> to vector<256x8xf32>
    %99 = arith.subf %97, %98 : vector<256x8xf32>
    %100 = arith.mulf %99, %99 : vector<256x8xf32>
    %cst_73 = arith.constant dense<0.000000e+00> : vector<8xf32>
    %101 = vector.multi_reduction <add>, %100, %cst_73 [0] : vector<256x8xf32> to vector<8xf32>
    %102 = vector.shape_cast %101 : vector<8xf32> to vector<1x8xf32>
    %103 = arith.addf %95, %102 : vector<1x8xf32>
    %c0_74 = arith.constant 0 : index
    %c768_75 = arith.constant 768 : index
    %c0_76 = arith.constant 0 : index
    %104 = vector.load %arg3[%c0_74, %c768_75, %c0_76] : memref<1x1024x8xf32, #tpu.memory_space<vmem>>, vector<1x256x8xf32>
    %105 = vector.shape_cast %104 : vector<1x256x8xf32> to vector<256x8xf32>
    %106 = vector.broadcast %78 : vector<1x8xf32> to vector<256x8xf32>
    %107 = arith.subf %105, %106 : vector<256x8xf32>
    %108 = arith.mulf %107, %107 : vector<256x8xf32>
    %cst_77 = arith.constant dense<0.000000e+00> : vector<8xf32>
    %109 = vector.multi_reduction <add>, %108, %cst_77 [0] : vector<256x8xf32> to vector<8xf32>
    %110 = vector.shape_cast %109 : vector<8xf32> to vector<1x8xf32>
    %111 = arith.addf %103, %110 : vector<1x8xf32>
    %cst_78 = arith.constant 9.765625E-4 : f32
    %112 = vector.broadcast %cst_78 : f32 to vector<1x8xf32>
    %113 = arith.mulf %111, %112 : vector<1x8xf32>
    %cst_79 = arith.constant 9.99999974E-6 : f32
    %114 = vector.broadcast %cst_79 : f32 to vector<1x8xf32>
    %115 = arith.addf %113, %114 : vector<1x8xf32>
    %116 = math.rsqrt %115 : vector<1x8xf32>
    %c0_80 = arith.constant 0 : index
    %c0_81 = arith.constant 0 : index
    %c0_82 = arith.constant 0 : index
    %117 = vector.load %arg3[%c0_80, %c0_81, %c0_82] : memref<1x1024x8xf32, #tpu.memory_space<vmem>>, vector<1x256x8xf32>
    %118 = vector.shape_cast %117 : vector<1x256x8xf32> to vector<256x8xf32>
    %119 = vector.broadcast %78 : vector<1x8xf32> to vector<256x8xf32>
    %120 = arith.subf %118, %119 : vector<256x8xf32>
    %121 = vector.broadcast %116 : vector<1x8xf32> to vector<256x8xf32>
    %122 = arith.mulf %120, %121 : vector<256x8xf32>
    %cst_83 = arith.constant 0.000000e+00 : f32
    %123 = vector.broadcast %cst_83 : f32 to vector<256x8xf32>
    %124 = arith.maximumf %122, %123 : vector<256x8xf32>
    %c0_84 = arith.constant 0 : index
    %c0_85 = arith.constant 0 : index
    %c0_86 = arith.constant 0 : index
    %125 = vector.load %arg3[%c0_84, %c0_85, %c0_86] : memref<1x1024x8xf32, #tpu.memory_space<vmem>>, vector<1x256x8xf32>
    %126 = vector.shape_cast %125 : vector<1x256x8xf32> to vector<256x8xf32>
    %127 = vector.shape_cast %124 : vector<256x8xf32> to vector<1x256x8xf32>
    tpu.vector_store %arg3[%c0_84, %c0_85, %c0_86], %127 {strides = array<i32>} : memref<1x1024x8xf32, #tpu.memory_space<vmem>>, vector<1x256x8xf32>,
    %c0_87 = arith.constant 0 : index
    %c256_88 = arith.constant 256 : index
    %c0_89 = arith.constant 0 : index
    %128 = vector.load %arg3[%c0_87, %c256_88, %c0_89] : memref<1x1024x8xf32, #tpu.memory_space<vmem>>, vector<1x256x8xf32>
    %129 = vector.shape_cast %128 : vector<1x256x8xf32> to vector<256x8xf32>
    %130 = vector.broadcast %78 : vector<1x8xf32> to vector<256x8xf32>
    %131 = arith.subf %129, %130 : vector<256x8xf32>
    %132 = vector.broadcast %116 : vector<1x8xf32> to vector<256x8xf32>
    %133 = arith.mulf %131, %132 : vector<256x8xf32>
    %cst_90 = arith.constant 0.000000e+00 : f32
    %134 = vector.broadcast %cst_90 : f32 to vector<256x8xf32>
    %135 = arith.maximumf %133, %134 : vector<256x8xf32>
    %c0_91 = arith.constant 0 : index
    %c256_92 = arith.constant 256 : index
    %c0_93 = arith.constant 0 : index
    %136 = vector.load %arg3[%c0_91, %c256_92, %c0_93] : memref<1x1024x8xf32, #tpu.memory_space<vmem>>, vector<1x256x8xf32>
    %137 = vector.shape_cast %136 : vector<1x256x8xf32> to vector<256x8xf32>
    %138 = vector.shape_cast %135 : vector<256x8xf32> to vector<1x256x8xf32>
    tpu.vector_store %arg3[%c0_91, %c256_92, %c0_93], %138 {strides = array<i32>} : memref<1x1024x8xf32, #tpu.memory_space<vmem>>, vector<1x256x8xf32>,
    %c0_94 = arith.constant 0 : index
    %c512_95 = arith.constant 512 : index
    %c0_96 = arith.constant 0 : index
    %139 = vector.load %arg3[%c0_94, %c512_95, %c0_96] : memref<1x1024x8xf32, #tpu.memory_space<vmem>>, vector<1x256x8xf32>
    %140 = vector.shape_cast %139 : vector<1x256x8xf32> to vector<256x8xf32>
    %141 = vector.broadcast %78 : vector<1x8xf32> to vector<256x8xf32>
    %142 = arith.subf %140, %141 : vector<256x8xf32>
    %143 = vector.broadcast %116 : vector<1x8xf32> to vector<256x8xf32>
    %144 = arith.mulf %142, %143 : vector<256x8xf32>
    %cst_97 = arith.constant 0.000000e+00 : f32
    %145 = vector.broadcast %cst_97 : f32 to vector<256x8xf32>
    %146 = arith.maximumf %144, %145 : vector<256x8xf32>
    %c0_98 = arith.constant 0 : index
    %c512_99 = arith.constant 512 : index
    %c0_100 = arith.constant 0 : index
    %147 = vector.load %arg3[%c0_98, %c512_99, %c0_100] : memref<1x1024x8xf32, #tpu.memory_space<vmem>>, vector<1x256x8xf32>
    %148 = vector.shape_cast %147 : vector<1x256x8xf32> to vector<256x8xf32>
    %149 = vector.shape_cast %146 : vector<256x8xf32> to vector<1x256x8xf32>
    tpu.vector_store %arg3[%c0_98, %c512_99, %c0_100], %149 {strides = array<i32>} : memref<1x1024x8xf32, #tpu.memory_space<vmem>>, vector<1x256x8xf32>,
    %c0_101 = arith.constant 0 : index
    %c768_102 = arith.constant 768 : index
    %c0_103 = arith.constant 0 : index
    %150 = vector.load %arg3[%c0_101, %c768_102, %c0_103] : memref<1x1024x8xf32, #tpu.memory_space<vmem>>, vector<1x256x8xf32>
    %151 = vector.shape_cast %150 : vector<1x256x8xf32> to vector<256x8xf32>
    %152 = vector.broadcast %78 : vector<1x8xf32> to vector<256x8xf32>
    %153 = arith.subf %151, %152 : vector<256x8xf32>
    %154 = vector.broadcast %116 : vector<1x8xf32> to vector<256x8xf32>
    %155 = arith.mulf %153, %154 : vector<256x8xf32>
    %cst_104 = arith.constant 0.000000e+00 : f32
    %156 = vector.broadcast %cst_104 : f32 to vector<256x8xf32>
    %157 = arith.maximumf %155, %156 : vector<256x8xf32>
    %c0_105 = arith.constant 0 : index
    %c768_106 = arith.constant 768 : index
    %c0_107 = arith.constant 0 : index
    %158 = vector.load %arg3[%c0_105, %c768_106, %c0_107] : memref<1x1024x8xf32, #tpu.memory_space<vmem>>, vector<1x256x8xf32>
    %159 = vector.shape_cast %158 : vector<1x256x8xf32> to vector<256x8xf32>
    %160 = vector.shape_cast %157 : vector<256x8xf32> to vector<1x256x8xf32>
    tpu.vector_store %arg3[%c0_105, %c768_106, %c0_107], %160 {strides = array<i32>} : memref<1x1024x8xf32, #tpu.memory_space<vmem>>, vector<1x256x8xf32>,
    return
  }
  func.func @transform_0(%arg0: i32) -> (i32, i32, i32) {
    %c0_i32 = arith.constant 0 : i32
    %c0_i32_0 = arith.constant 0 : i32
    %c0_i32_1 = arith.constant 0 : i32
    return %arg0, %c0_i32, %c0_i32_0 : i32, i32, i32
  }
  func.func @transform_1(%arg0: i32) -> (i32, i32, i32) {
    %c0_i32 = arith.constant 0 : i32
    %c0_i32_0 = arith.constant 0 : i32
    %c0_i32_1 = arith.constant 0 : i32
    %c0_i32_2 = arith.constant 0 : i32
    return %c0_i32, %c0_i32_0, %c0_i32_1 : i32, i32, i32
  }
  func.func @transform_2(%arg0: i32) -> (i32, i32, i32) {
    %c0_i32 = arith.constant 0 : i32
    %c0_i32_0 = arith.constant 0 : i32
    %c0_i32_1 = arith.constant 0 : i32
    return %arg0, %c0_i32, %c0_i32_0 : i32, i32, i32
  }
}

</mosaic_0001>

<bundles_post_ra>
// kernel: unet_up_forward.1
= control target key start
LH: loop header
LB: loop body
LE: loop exit
PB: predicated region body
PF: predicated region fallthrough
CT: control target
= control target key end

     0   :  { %s4640_s9 = smov 0   ;;  %s6902_s0 = inlined_call_operand.vmem [shape: bf16[2,576,16], index: 0, kind: input, shape index: {}]   ;;  %s6903_s1 = inlined_call_operand.vmem [shape: bf16[8,16,8], index: 1, kind: input, shape index: {}]   ;;  %s6904_s2 = inlined_call_operand.vmem [shape: f32[2,1024,8], index: 2, kind: output, shape index: {}]  }
   0x1 LB: > { %s3893_s10 = sadd.s32 4294967295, %s4623_s9   ;;  %p3897_p0 = scmp.ge.s32.totalorder %s4623_s9, 1  ;;  %s4623_s9 = sphi %s4640_s9, %s12_s9  }
   0x2   : > { %p112_p1 = scmp.lt.s32.totalorder %s4623_s9, 3 }
   0x4   : > { %p113_p2 = pnand %p3897_p0, %p112_p1 }
   0x6   : > { %116 = sbr.rel (%p113_p2) target bundleno = 742 (0x2e6), region = 28 }
   0xb   : > { %v4539_v0 = vld [vmem:[%s6903_s1 + $0x8] sm:$0xff]   ;;  %p134_p3 = scmp.lt.s32.totalorder %s3893_s10, 1  ;;  %v4540_v1 = vld [vmem:[%s6903_s1] sm:$0xff]   ;;  %v4543_v2 = vld [vmem:[%s6903_s1 + $0x18] sm:$0xff]   ;;  %vm270_vm0 = vcmask 130048   ;;  %vm655_vm1 = vcmask 64512  }
   0xc   : > { %4258 = vmatprep.subr.bf16.mxu0 %v4539_v0  ;;  %4292 = vmatprep.subr.bf16.mxu1 %v4540_v1  ;;  %v4544_v3 = vld [vmem:[%s6903_s1 + $0x10] sm:$0xff]   ;;  %v4673_v6 = vld [vmem:[%s6903_s1 + $0x28] sm:$0xff]   ;;  %v4563_v7 = vld [vmem:[%s6903_s1 + $0x20] sm:$0xff]  }
   0xd   : > { %s7182_s10 = smov (!%p134_p3, %s3893_s10), 1  ;;  %4259 = vmatpush3.bf16.msra.mxu0 %v4539_v0  ;;  %4293 = vmatpush3.bf16.msra.mxu1 %v4540_v1  ;;  %v4581_v27 = vld [vmem:[%s6903_s1 + $0x38] sm:$0xff]   ;;  %v4582_v28 = vld [vmem:[%s6903_s1 + $0x30] sm:$0xff]  }
   0xe   : > { %s4530_s19 = smul.u32 288, %s7182_s10  ;;  %4326 = vmatprep.subr.bf16.mxu0 %v4543_v2  ;;  %4360 = vmatprep.subr.bf16.mxu1 %v4544_v3  ;;  %s4121_s3 = sshll.u32 %s7182_s10, 10 }
   0xf   : > { %s4841_s6 = scalar_lea.vmem %s6904_s2, %s4121_s3 }
  0x10   : > { %s4666_s22 = scalar_lea.vmem %s6902_s0, %s4530_s19 }
  0x11   : > { %v4541_v4 = vld [vmem:[%s4666_s22 + $0x8] sm:$0xff]   ;;  %v4542_v5 = vld [vmem:[%s4666_s22] sm:$0xff]   ;;  %v4545_v8 = vld [vmem:[%s4666_s22 + $0x10] sm:$0xff]  }
  0x12   : > { %4260 = vmatprep.mubr.msk.bf16.mxu0 %vm270_vm0, %v4541_v4  ;;  %4294 = vmatprep.mubr.msk.bf16.mxu1 %vm270_vm0, %v4542_v5  ;;  %v4546_v9 = vld [vmem:[%s4666_s22 + $0x18] sm:$0xff]   ;;  %v4547_v10 = vld [vmem:[%s4666_s22 + $0x20] sm:$0xff]   ;;  %v4548_v11 = vld [vmem:[%s4666_s22 + $0x28] sm:$0xff]  }
  0x13   : > { %4261 = vmatmul.mubr.msk.bf16.vlgmr.msra.gmra.mxu0 %vm270_vm0, %v4545_v8  ;;  %4295 = vmatmul.mubr.msk.bf16.vlgmr.msra.gmra.mxu1 %vm270_vm0, %v4541_v4  ;;  %v4549_v12 = vld [vmem:[%s4666_s22 + $0x30] sm:$0xff]   ;;  %v4550_v13 = vld [vmem:[%s4666_s22 + $0x38] sm:$0xff]   ;;  %v4551_v14 = vld [vmem:[%s4666_s22 + $0x40] sm:$0xff]  }
  0x14   : > { %4327 = vmatpush3.bf16.msra.mxu0 %v4543_v2  ;;  %4361 = vmatpush3.bf16.msra.mxu1 %v4544_v3  ;;  %v4552_v15 = vld [vmem:[%s4666_s22 + $0x48] sm:$0xff]   ;;  %v4553_v16 = vld [vmem:[%s4666_s22 + $0x50] sm:$0xff]   ;;  %v4554_v17 = vld [vmem:[%s4666_s22 + $0x58] sm:$0xff]  }
  0x15   : > { %4264 = vmatprep.mubr.msk.bf16.mxu0 %vm270_vm0, %v4546_v9  ;;  %4298 = vmatprep.mubr.msk.bf16.mxu1 %vm270_vm0, %v4545_v8  ;;  %v4555_v18 = vld [vmem:[%s4666_s22 + $0x60] sm:$0xff]   ;;  %v4556_v19 = vld [vmem:[%s4666_s22 + $0x68] sm:$0xff]   ;;  %v4557_v20 = vld [vmem:[%s4666_s22 + $0x70] sm:$0xff]  }
  0x16   : > { %4394 = vmatprep.subr.bf16.mxu0 %v4673_v6  ;;  %4428 = vmatprep.subr.bf16.mxu1 %v4563_v7  ;;  %v4558_v21 = vld [vmem:[%s4666_s22 + $0x78] sm:$0xff]   ;;  %v4559_v22 = vld [vmem:[%s4666_s22 + $0x80] sm:$0xff]   ;;  %v4561_v24 = vld [vmem:[%s4666_s22 + $0x90] sm:$0xff]  }
  0x17   : > { %v4560_v23 = vld [vmem:[%s4666_s22 + $0x98] sm:$0xff]   ;;  %v4564_v25 = vld [vmem:[%s4666_s22 + $0xa0] sm:$0xff]   ;;  %v4565_v26 = vld [vmem:[%s4666_s22 + $0xa8] sm:$0xff]  }
  0x18   : > { %v4566_v29 = vld [vmem:[%s4666_s22 + $0xb0] sm:$0xff]   ;;  %v4567_v30 = vld [vmem:[%s4666_s22 + $0xb8] sm:$0xff]   ;;  %v4568_v31 = vld [vmem:[%s4666_s22 + $0xc0] sm:$0xff]  }
  0x19   : > { %v4569_v32 = vld [vmem:[%s4666_s22 + $0xc8] sm:$0xff]   ;;  %v4570_v33 = vld [vmem:[%s4666_s22 + $0xd0] sm:$0xff]   ;;  %v4571_v34 = vld [vmem:[%s4666_s22 + $0xd8] sm:$0xff]  }
  0x1a   : > { %v4572_v35 = vld [vmem:[%s4666_s22 + $0xe0] sm:$0xff]   ;;  %v4573_v36 = vld [vmem:[%s4666_s22 + $0xe8] sm:$0xff]   ;;  %v4574_v37 = vld [vmem:[%s4666_s22 + $0xf0] sm:$0xff]  }
  0x1b   : > { %4265 = vmatmul.mubr.msk.bf16.gmra.mxu0 %vm270_vm0, %v4547_v10  ;;  %4299 = vmatmul.mubr.msk.bf16.gmra.mxu1 %vm270_vm0, %v4546_v9  ;;  %v4575_v38 = vld [vmem:[%s4666_s22 + $0xf8] sm:$0xff]   ;;  %v4576_v39 = vld [vmem:[%s4666_s22 + $0x100] sm:$0xff]   ;;  %v4577_v40 = vld [vmem:[%s4666_s22 + $0x108] sm:$0xff]  }
  0x1c   : > { %4268 = vmatprep.mubr.msk.bf16.mxu0 %vm270_vm0, %v4548_v11  ;;  %4302 = vmatprep.mubr.msk.bf16.mxu1 %vm270_vm0, %v4547_v10  ;;  %v4578_v41 = vld [vmem:[%s4666_s22 + $0x110] sm:$0xff]   ;;  %v4580_v43 = vld [vmem:[%s4666_s22 + $0x8] sm:$0xff]   ;;  %v4583_v44 = vld [vmem:[%s4666_s22 + $0x18] sm:$0xff]  }
  0x1d   : > { %v4579_v42 = vld [vmem:[%s4666_s22 + $0x10] sm:$0xff]   ;;  %v4584_v45 = vld [vmem:[%s4666_s22 + $0x20] sm:$0xff]   ;;  %v4585_v46 = vld [vmem:[%s4666_s22 + $0x28] sm:$0xff]  }
  0x1e   : > { %v4586_v47 = vld [vmem:[%s4666_s22 + $0x30] sm:$0xff]   ;;  %v4587_v48 = vld [vmem:[%s4666_s22 + $0x38] sm:$0xff]   ;;  %v4588_v49 = vld [vmem:[%s4666_s22 + $0x40] sm:$0xff]  }
  0x1f   : > { %v4589_v50 = vld [vmem:[%s4666_s22 + $0x48] sm:$0xff]   ;;  %v4590_v51 = vld [vmem:[%s4666_s22 + $0x50] sm:$0xff]   ;;  %v4591_v52 = vld [vmem:[%s4666_s22 + $0x58] sm:$0xff]  }
  0x20   : > { %v4592_v53 = vld [vmem:[%s4666_s22 + $0x60] sm:$0xff]   ;;  %v4593_v54 = vld [vmem:[%s4666_s22 + $0x68] sm:$0xff]   ;;  %v4594_v55 = vld [vmem:[%s4666_s22 + $0x70] sm:$0xff]  }
  0x21   : > { %v4595_v56 = vld [vmem:[%s4666_s22 + $0x78] sm:$0xff]   ;;  %v4596_v57 = vld [vmem:[%s4666_s22 + $0x80] sm:$0xff]   ;;  %v4597_v58 = vld [vmem:[%s4666_s22 + $0x88] sm:$0xff]  }
  0x22   : > { %v4598_v59 = vld [vmem:[%s4666_s22 + $0xa0] sm:$0xff]   ;;  %v4599_v60 = vld [vmem:[%s4666_s22 + $0x98] sm:$0xff]   ;;  %v4600_v61 = vld [vmem:[%s4666_s22 + $0xa8] sm:$0xff]  }
  0x23   : > { %4269 = vmatmul.mubr.msk.bf16.gmra.mxu0 %vm270_vm0, %v4549_v12  ;;  %4303 = vmatmul.mubr.msk.bf16.gmra.mxu1 %vm270_vm0, %v4548_v11  ;;  %v4601_v62 = vld [vmem:[%s4666_s22 + $0xb0] sm:$0xff]   ;;  %v4603_v9 = vld [vmem:[%s4666_s22 + $0xc0] sm:$0xff]  }
  0x24   : > { %4272 = vmatprep.mubr.msk.bf16.mxu0 %vm270_vm0, %v4550_v13  ;;  %4306 = vmatprep.mubr.msk.bf16.mxu1 %vm270_vm0, %v4549_v12 }
  0x2b   : > { %4273 = vmatmul.mubr.msk.bf16.gmra.mxu0 %vm270_vm0, %v4551_v14  ;;  %4307 = vmatmul.mubr.msk.bf16.gmra.mxu1 %vm270_vm0, %v4550_v13 }
  0x2c   : > { %4276 = vmatprep.mubr.msk.bf16.mxu0 %vm270_vm0, %v4552_v15  ;;  %4310 = vmatprep.mubr.msk.bf16.mxu1 %vm270_vm0, %v4551_v14 }
  0x33   : > { %4277 = vmatmul.mubr.msk.bf16.gmra.mxu0 %vm270_vm0, %v4553_v16  ;;  %4311 = vmatmul.mubr.msk.bf16.gmra.mxu1 %vm270_vm0, %v4552_v15 }
  0x34   : > { %4280 = vmatprep.mubr.msk.bf16.mxu0 %vm270_vm0, %v4554_v17  ;;  %4314 = vmatprep.mubr.msk.bf16.mxu1 %vm270_vm0, %v4553_v16 }
  0x3b   : > { %4281 = vmatmul.mubr.msk.bf16.gmra.mxu0 %vm270_vm0, %v4555_v18  ;;  %4315 = vmatmul.mubr.msk.bf16.gmra.mxu1 %vm270_vm0, %v4554_v17 }
  0x3c   : > { %4284 = vmatprep.mubr.msk.bf16.mxu0 %vm270_vm0, %v4556_v19  ;;  %4318 = vmatprep.mubr.msk.bf16.mxu1 %vm270_vm0, %v4555_v18 }
  0x43   : > { %4285 = vmatmul.mubr.msk.bf16.gmra.mxu0 %vm270_vm0, %v4557_v20  ;;  %4319 = vmatmul.mubr.msk.bf16.gmra.mxu1 %vm270_vm0, %v4556_v19 }
  0x44   : > { %4288 = vmatprep.mubr.msk.bf16.mxu0 %vm270_vm0, %v4558_v21  ;;  %4322 = vmatprep.mubr.msk.bf16.mxu1 %vm270_vm0, %v4557_v20 }
  0x4b   : > { %4289 = vmatmul.mubr.msk.bf16.gmra.mxu0 %vm270_vm0, %v4559_v22  ;;  %4323 = vmatmul.mubr.msk.bf16.gmra.mxu1 %vm270_vm0, %v4558_v21 }
  0x4c   : > { %4328 = vmatprep.mubr.msk.bf16.mxu0 %vm270_vm0, %v4560_v23  ;;  %4362 = vmatprep.mubr.msk.bf16.mxu1 %vm270_vm0, %v4561_v24 }
  0x53   : > { %4329 = vmatmul.mubr.msk.bf16.vlgmr.msra.gmra.mxu0 %vm270_vm0, %v4564_v25  ;;  %4363 = vmatmul.mubr.msk.bf16.vlgmr.msra.gmra.mxu1 %vm270_vm0, %v4560_v23 }
  0x54   : > { %4395 = vmatpush3.bf16.msra.mxu0 %v4673_v6  ;;  %4429 = vmatpush3.bf16.msra.mxu1 %v4563_v7  ;;  %v4602_v7 = vld [vmem:[%s4666_s22 + $0xb8] sm:$0xff]  }
  0x55   : > { %4332 = vmatprep.mubr.msk.bf16.mxu0 %vm270_vm0, %v4565_v26  ;;  %4366 = vmatprep.mubr.msk.bf16.mxu1 %vm270_vm0, %v4564_v25 }
  0x56   : > { %4462 = vmatprep.subr.bf16.mxu0 %v4581_v27  ;;  %4496 = vmatprep.subr.bf16.mxu1 %v4582_v28 }
  0x5b   : > { %4333 = vmatmul.mubr.msk.bf16.gmra.mxu0 %vm270_vm0, %v4566_v29  ;;  %4367 = vmatmul.mubr.msk.bf16.gmra.mxu1 %vm270_vm0, %v4565_v26  ;;  %v4604_v26 = vld [vmem:[%s4666_s22 + $0xc8] sm:$0xff]  }
  0x5c   : > { %4336 = vmatprep.mubr.msk.bf16.mxu0 %vm270_vm0, %v4567_v30  ;;  %4370 = vmatprep.mubr.msk.bf16.mxu1 %vm270_vm0, %v4566_v29  ;;  %v4605_v29 = vld [vmem:[%s4666_s22 + $0xd0] sm:$0xff]  }
  0x63   : > { %4337 = vmatmul.mubr.msk.bf16.gmra.mxu0 %vm270_vm0, %v4568_v31  ;;  %4371 = vmatmul.mubr.msk.bf16.gmra.mxu1 %vm270_vm0, %v4567_v30 }
  0x64   : > { %4340 = vmatprep.mubr.msk.bf16.mxu0 %vm270_vm0, %v4569_v32  ;;  %4374 = vmatprep.mubr.msk.bf16.mxu1 %vm270_vm0, %v4568_v31 }
  0x6b   : > { %4341 = vmatmul.mubr.msk.bf16.gmra.mxu0 %vm270_vm0, %v4570_v33  ;;  %4375 = vmatmul.mubr.msk.bf16.gmra.mxu1 %vm270_vm0, %v4569_v32 }
  0x6c   : > { %4344 = vmatprep.mubr.msk.bf16.mxu0 %vm270_vm0, %v4571_v34  ;;  %4378 = vmatprep.mubr.msk.bf16.mxu1 %vm270_vm0, %v4570_v33 }
  0x73   : > { %4345 = vmatmul.mubr.msk.bf16.gmra.mxu0 %vm270_vm0, %v4572_v35  ;;  %4379 = vmatmul.mubr.msk.bf16.gmra.mxu1 %vm270_vm0, %v4571_v34 }
  0x74   : > { %4348 = vmatprep.mubr.msk.bf16.mxu0 %vm270_vm0, %v4573_v36  ;;  %4382 = vmatprep.mubr.msk.bf16.mxu1 %vm270_vm0, %v4572_v35 }
  0x7b   : > { %4349 = vmatmul.mubr.msk.bf16.gmra.mxu0 %vm270_vm0, %v4574_v37  ;;  %4383 = vmatmul.mubr.msk.bf16.gmra.mxu1 %vm270_vm0, %v4573_v36 }
  0x7c   : > { %4352 = vmatprep.mubr.msk.bf16.mxu0 %vm270_vm0, %v4575_v38  ;;  %4386 = vmatprep.mubr.msk.bf16.mxu1 %vm270_vm0, %v4574_v37 }
  0x83   : > { %4353 = vmatmul.mubr.msk.bf16.gmra.mxu0 %vm270_vm0, %v4576_v39  ;;  %4387 = vmatmul.mubr.msk.bf16.gmra.mxu1 %vm270_vm0, %v4575_v38 }
  0x84   : > { %4356 = vmatprep.mubr.msk.bf16.mxu0 %vm270_vm0, %v4577_v40  ;;  %4390 = vmatprep.mubr.msk.bf16.mxu1 %vm270_vm0, %v4576_v39 }
  0x8b   : > { %4357 = vmatmul.mubr.msk.bf16.gmra.mxu0 %vm270_vm0, %v4578_v41  ;;  %4391 = vmatmul.mubr.msk.bf16.gmra.mxu1 %vm270_vm0, %v4577_v40 }
  0x8c   : > { %4396 = vmatprep.mubr.msk.bf16.mxu0 %vm270_vm0, %v4579_v42  ;;  %4430 = vmatprep.mubr.msk.bf16.mxu1 %vm270_vm0, %v4580_v43 }
  0x93   : > { %4397 = vmatmul.mubr.msk.bf16.vlgmr.msra.gmra.mxu0 %vm270_vm0, %v4583_v44  ;;  %4431 = vmatmul.mubr.msk.bf16.vlgmr.msra.gmra.mxu1 %vm270_vm0, %v4579_v42 }
  0x94   : > { %4463 = vmatpush3.bf16.msra.mxu0 %v4581_v27  ;;  %4497 = vmatpush3.bf16.msra.mxu1 %v4582_v28 }
  0x95   : > { %4400 = vmatprep.mubr.msk.bf16.mxu0 %vm270_vm0, %v4584_v45  ;;  %4434 = vmatprep.mubr.msk.bf16.mxu1 %vm270_vm0, %v4583_v44 }
  0x9b   : > { %4401 = vmatmul.mubr.msk.bf16.gmra.mxu0 %vm270_vm0, %v4585_v46  ;;  %4435 = vmatmul.mubr.msk.bf16.gmra.mxu1 %vm270_vm0, %v4584_v45 }
  0x9c   : > { %4404 = vmatprep.mubr.msk.bf16.mxu0 %vm270_vm0, %v4586_v47  ;;  %4438 = vmatprep.mubr.msk.bf16.mxu1 %vm270_vm0, %v4585_v46 }
  0xa3   : > { %4405 = vmatmul.mubr.msk.bf16.gmra.mxu0 %vm270_vm0, %v4587_v48  ;;  %4439 = vmatmul.mubr.msk.bf16.gmra.mxu1 %vm270_vm0, %v4586_v47 }
  0xa4   : > { %4408 = vmatprep.mubr.msk.bf16.mxu0 %vm270_vm0, %v4588_v49  ;;  %4442 = vmatprep.mubr.msk.bf16.mxu1 %vm270_vm0, %v4587_v48  ;;  %v4606_v48 = vld [vmem:[%s4666_s22 + $0xd8] sm:$0xff]  }
  0xab   : > { %4409 = vmatmul.mubr.msk.bf16.gmra.mxu0 %vm270_vm0, %v4589_v50  ;;  %4443 = vmatmul.mubr.msk.bf16.gmra.mxu1 %vm270_vm0, %v4588_v49 }
  0xac   : > { %4412 = vmatprep.mubr.msk.bf16.mxu0 %vm270_vm0, %v4590_v51  ;;  %4446 = vmatprep.mubr.msk.bf16.mxu1 %vm270_vm0, %v4589_v50 }
  0xb3   : > { %4413 = vmatmul.mubr.msk.bf16.gmra.mxu0 %vm270_vm0, %v4591_v52  ;;  %4447 = vmatmul.mubr.msk.bf16.gmra.mxu1 %vm270_vm0, %v4590_v51  ;;  %v4607_v51 = vld [vmem:[%s4666_s22 + $0xe0] sm:$0xff]  }
  0xb4   : > { %4416 = vmatprep.mubr.msk.bf16.mxu0 %vm270_vm0, %v4592_v53  ;;  %4450 = vmatprep.mubr.msk.bf16.mxu1 %vm270_vm0, %v4591_v52 }
  0xbb   : > { %4417 = vmatmul.mubr.msk.bf16.gmra.mxu0 %vm270_vm0, %v4593_v54  ;;  %4451 = vmatmul.mubr.msk.bf16.gmra.mxu1 %vm270_vm0, %v4592_v53 }
  0xbc   : > { %4420 = vmatprep.mubr.msk.bf16.mxu0 %vm270_vm0, %v4594_v55  ;;  %4454 = vmatprep.mubr.msk.bf16.mxu1 %vm270_vm0, %v4593_v54 }
  0xc3   : > { %4421 = vmatmul.mubr.msk.bf16.gmra.mxu0 %vm270_vm0, %v4595_v56  ;;  %4455 = vmatmul.mubr.msk.bf16.gmra.mxu1 %vm270_vm0, %v4594_v55 }
  0xc4   : > { %4424 = vmatprep.mubr.msk.bf16.mxu0 %vm270_vm0, %v4596_v57  ;;  %4458 = vmatprep.mubr.msk.bf16.mxu1 %vm270_vm0, %v4595_v56 }
  0xcb   : > { %4425 = vmatmul.mubr.msk.bf16.gmra.mxu0 %vm270_vm0, %v4597_v58  ;;  %4459 = vmatmul.mubr.msk.bf16.gmra.mxu1 %vm270_vm0, %v4596_v57 }
  0xcc   : > { %4464 = vmatprep.mubr.msk.bf16.mxu0 %vm270_vm0, %v4598_v59  ;;  %4498 = vmatprep.mubr.msk.bf16.mxu1 %vm270_vm0, %v4599_v60 }
  0xd3   : > { %v4262_v63 = vpop.f32.mrf.mxu0  ;;  %v4296_v0 = vpop.f32.mrf.mxu1  ;;  %4465 = vmatmul.mubr.msk.bf16.vlgmr.msra.gmra.mxu0 %vm270_vm0, %v4600_v61  ;;  %4499 = vmatmul.mubr.msk.bf16.vlgmr.msra.gmra.mxu1 %vm270_vm0, %v4598_v59 }
  0xd4   : > { %v537_v1 = vadd.f32 %v4296_v0, %v4262_v63  ;;  %4468 = vmatprep.mubr.msk.bf16.mxu0 %vm270_vm0, %v4601_v62  ;;  %4502 = vmatprep.mubr.msk.bf16.mxu1 %vm270_vm0, %v4600_v61 }
  0xd5   : > { %v353_v2 = vpop.f32.mrf.mxu0  ;;  %v528_v3 = vpop.f32.mrf.mxu1 }
  0xd6   : > { %658 = vst.msk [vmem:[%s4841_s6 + $0x10] sm:$0xff] %vm655_vm1, %v537_v1  ;;  %v529_v4 = vadd.f32 %v528_v3, %v353_v2  ;;  %v691_v21 = vsel %vm655_vm1, %v537_v1, 0.0 }
  0xd7   : > { %v4263_v5 = vpop.f32.mrf.mxu0  ;;  %v4297_v6 = vpop.f32.mrf.mxu1 }
  0xd8   : > { %656 = vst.msk [vmem:[%s4841_s6] sm:$0xff] %vm655_vm1, %v529_v4  ;;  %v540_v8 = vadd.f32 %v4297_v6, %v4263_v5  ;;  %v688_v15 = vsel %vm655_vm1, %v529_v4, 0.0  ;;  %v4608_v6 = vld [vmem:[%s4666_s22 + $0xe8] sm:$0xff]  }
  0xd9   : > { %v356_v10 = vpop.f32.mrf.mxu0  ;;  %v531_v11 = vpop.f32.mrf.mxu1 }
  0xda   : > { %659 = vst.msk [vmem:[%s4841_s6 + $0x18] sm:$0xff] %vm655_vm1, %v540_v8  ;;  %v532_v12 = vadd.f32 %v531_v11, %v356_v10  ;;  %v693_v27 = vsel %vm655_vm1, %v540_v8, 0.0 }
  0xdb   : > { %v4266_v13 = vpop.f32.mrf.mxu0  ;;  %v4300_v14 = vpop.f32.mrf.mxu1  ;;  %4469 = vmatmul.mubr.msk.bf16.gmra.mxu0 %vm270_vm0, %v4602_v7  ;;  %4503 = vmatmul.mubr.msk.bf16.gmra.mxu1 %vm270_vm0, %v4601_v62 }
  0xdc   : > { %657 = vst.msk [vmem:[%s4841_s6 + $0x8] sm:$0xff] %vm655_vm1, %v532_v12  ;;  %v689_v16 = vsel %vm655_vm1, %v532_v12, 0.0  ;;  %v553_v17 = vadd.f32 %v4300_v14, %v4266_v13  ;;  %4472 = vmatprep.mubr.msk.bf16.mxu0 %vm270_vm0, %v4603_v9  ;;  %4506 = vmatprep.mubr.msk.bf16.mxu1 %vm270_vm0, %v4602_v7 }
  0xdd   : > { %v690_v18 = vadd.f32 %v689_v16, %v688_v15  ;;  %v369_v19 = vpop.f32.mrf.mxu0  ;;  %v544_v20 = vpop.f32.mrf.mxu1 }
  0xde   : > { %662 = vst.msk [vmem:[%s4841_s6 + $0x30] sm:$0xff] %vm655_vm1, %v553_v17  ;;  %v545_v22 = vadd.f32 %v544_v20, %v369_v19  ;;  %v699_v43 = vsel %vm655_vm1, %v553_v17, 0.0 }
  0xdf   : > { %v692_v23 = vadd.f32 %v691_v21, %v690_v18  ;;  %v4267_v24 = vpop.f32.mrf.mxu0  ;;  %v4301_v25 = vpop.f32.mrf.mxu1 }
  0xe0   : > { %660 = vst.msk [vmem:[%s4841_s6 + $0x20] sm:$0xff] %vm655_vm1, %v545_v22  ;;  %v556_v28 = vadd.f32 %v4301_v25, %v4267_v24  ;;  %v695_v33 = vsel %vm655_vm1, %v545_v22, 0.0 }
  0xe1   : > { %v694_v30 = vadd.f32 %v693_v27, %v692_v23  ;;  %v372_v31 = vpop.f32.mrf.mxu0  ;;  %v547_v32 = vpop.f32.mrf.mxu1 }
  0xe2   : > { %663 = vst.msk [vmem:[%s4841_s6 + $0x38] sm:$0xff] %vm655_vm1, %v556_v28  ;;  %v548_v34 = vadd.f32 %v547_v32, %v372_v31  ;;  %v701_v49 = vsel %vm655_vm1, %v556_v28, 0.0  ;;  %v4610_v28 = vld [vmem:[%s4666_s22 + $0xf8] sm:$0xff]   ;;  %v4611_v31 = vld [vmem:[%s4666_s22 + $0x100] sm:$0xff]  }
  0xe3   : > { %v696_v35 = vadd.f32 %v695_v33, %v694_v30  ;;  %v4270_v36 = vpop.f32.mrf.mxu0  ;;  %v4304_v37 = vpop.f32.mrf.mxu1  ;;  %4473 = vmatmul.mubr.msk.bf16.gmra.mxu0 %vm270_vm0, %v4604_v26  ;;  %4507 = vmatmul.mubr.msk.bf16.gmra.mxu1 %vm270_vm0, %v4603_v9  ;;  %v4609_v9 = vld [vmem:[%s4666_s22 + $0xf0] sm:$0xff]  }
  0xe4   : > { %661 = vst.msk [vmem:[%s4841_s6 + $0x28] sm:$0xff] %vm655_vm1, %v548_v34  ;;  %v697_v38 = vsel %vm655_vm1, %v548_v34, 0.0  ;;  %v569_v39 = vadd.f32 %v4304_v37, %v4270_v36  ;;  %4476 = vmatprep.mubr.msk.bf16.mxu0 %vm270_vm0, %v4605_v29  ;;  %4510 = vmatprep.mubr.msk.bf16.mxu1 %vm270_vm0, %v4604_v26 }
  0xe5   : > { %v698_v40 = vadd.f32 %v697_v38, %v696_v35  ;;  %v385_v41 = vpop.f32.mrf.mxu0  ;;  %v560_v42 = vpop.f32.mrf.mxu1 }
  0xe6   : > { %666 = vst.msk [vmem:[%s4841_s6 + $0x50] sm:$0xff] %vm655_vm1, %v569_v39  ;;  %v561_v44 = vadd.f32 %v560_v42, %v385_v41  ;;  %v707_v1 = vsel %vm655_vm1, %v569_v39, 0.0 }
  0xe7   : > { %v700_v45 = vadd.f32 %v699_v43, %v698_v40  ;;  %v4271_v46 = vpop.f32.mrf.mxu0  ;;  %v4305_v47 = vpop.f32.mrf.mxu1 }
  0xe8   : > { %664 = vst.msk [vmem:[%s4841_s6 + $0x40] sm:$0xff] %vm655_vm1, %v561_v44  ;;  %v572_v50 = vadd.f32 %v4305_v47, %v4271_v46  ;;  %v703_v55 = vsel %vm655_vm1, %v561_v44, 0.0 }
  0xe9   : > { %v702_v52 = vadd.f32 %v701_v49, %v700_v45  ;;  %v388_v53 = vpop.f32.mrf.mxu0  ;;  %v563_v54 = vpop.f32.mrf.mxu1 }
  0xea   : > { %667 = vst.msk [vmem:[%s4841_s6 + $0x58] sm:$0xff] %vm655_vm1, %v572_v50  ;;  %v564_v56 = vadd.f32 %v563_v54, %v388_v53  ;;  %v709_v7 = vsel %vm655_vm1, %v572_v50, 0.0  ;;  %v4612_v50 = vld [vmem:[%s4666_s22 + $0x108] sm:$0xff]   ;;  %v4613_v53 = vld [vmem:[%s4666_s22 + $0x110] sm:$0xff]  }
  0xeb   : > { %v704_v57 = vadd.f32 %v703_v55, %v702_v52  ;;  %v4274_v58 = vpop.f32.mrf.mxu0  ;;  %v4308_v59 = vpop.f32.mrf.mxu1  ;;  %4477 = vmatmul.mubr.msk.bf16.gmra.mxu0 %vm270_vm0, %v4606_v48  ;;  %4511 = vmatmul.mubr.msk.bf16.gmra.mxu1 %vm270_vm0, %v4605_v29 }
  0xec   : > { %665 = vst.msk [vmem:[%s4841_s6 + $0x48] sm:$0xff] %vm655_vm1, %v564_v56  ;;  %v705_v60 = vsel %vm655_vm1, %v564_v56, 0.0  ;;  %v585_v61 = vadd.f32 %v4308_v59, %v4274_v58  ;;  %4480 = vmatprep.mubr.msk.bf16.mxu0 %vm270_vm0, %v4607_v51  ;;  %4514 = vmatprep.mubr.msk.bf16.mxu1 %vm270_vm0, %v4606_v48 }
  0xed   : > { %v706_v62 = vadd.f32 %v705_v60, %v704_v57  ;;  %v401_v63 = vpop.f32.mrf.mxu0  ;;  %v576_v0 = vpop.f32.mrf.mxu1 }
  0xee   : > { %670 = vst.msk [vmem:[%s4841_s6 + $0x70] sm:$0xff] %vm655_vm1, %v585_v61  ;;  %v577_v2 = vadd.f32 %v576_v0, %v401_v63  ;;  %v715_v23 = vsel %vm655_vm1, %v585_v61, 0.0 }
  0xef   : > { %v708_v3 = vadd.f32 %v707_v1, %v706_v62  ;;  %v4275_v4 = vpop.f32.mrf.mxu0  ;;  %v4309_v5 = vpop.f32.mrf.mxu1 }
  0xf0   : > { %668 = vst.msk [vmem:[%s4841_s6 + $0x60] sm:$0xff] %vm655_vm1, %v577_v2  ;;  %v588_v8 = vadd.f32 %v4309_v5, %v4275_v4  ;;  %v711_v13 = vsel %vm655_vm1, %v577_v2, 0.0 }
  0xf1   : > { %v710_v10 = vadd.f32 %v709_v7, %v708_v3  ;;  %v404_v11 = vpop.f32.mrf.mxu0  ;;  %v579_v12 = vpop.f32.mrf.mxu1 }
  0xf2   : > { %671 = vst.msk [vmem:[%s4841_s6 + $0x78] sm:$0xff] %vm655_vm1, %v588_v8  ;;  %v580_v14 = vadd.f32 %v579_v12, %v404_v11  ;;  %v717_v29 = vsel %vm655_vm1, %v588_v8, 0.0  ;;  %v4614_v8 = vld [vmem:[%s4666_s22 + $0x118] sm:$0xff]  }
  0xf3   : > { %v712_v15 = vadd.f32 %v711_v13, %v710_v10  ;;  %v4278_v16 = vpop.f32.mrf.mxu0  ;;  %v4312_v17 = vpop.f32.mrf.mxu1  ;;  %4481 = vmatmul.mubr.msk.bf16.gmra.mxu0 %vm270_vm0, %v4608_v6  ;;  %4515 = vmatmul.mubr.msk.bf16.gmra.mxu1 %vm270_vm0, %v4607_v51 }
  0xf4   : > { %669 = vst.msk [vmem:[%s4841_s6 + $0x68] sm:$0xff] %vm655_vm1, %v580_v14  ;;  %v713_v18 = vsel %vm655_vm1, %v580_v14, 0.0  ;;  %v601_v19 = vadd.f32 %v4312_v17, %v4278_v16  ;;  %4484 = vmatprep.mubr.msk.bf16.mxu0 %vm270_vm0, %v4609_v9  ;;  %4518 = vmatprep.mubr.msk.bf16.mxu1 %vm270_vm0, %v4608_v6 }
  0xf5   : > { %v714_v20 = vadd.f32 %v713_v18, %v712_v15  ;;  %v417_v21 = vpop.f32.mrf.mxu0  ;;  %v592_v22 = vpop.f32.mrf.mxu1 }
  0xf6   : > { %674 = vst.msk [vmem:[%s4841_s6 + $0x90] sm:$0xff] %vm655_vm1, %v601_v19  ;;  %v593_v24 = vadd.f32 %v592_v22, %v417_v21  ;;  %v723_v45 = vsel %vm655_vm1, %v601_v19, 0.0 }
  0xf7   : > { %v716_v25 = vadd.f32 %v715_v23, %v714_v20  ;;  %v4279_v26 = vpop.f32.mrf.mxu0  ;;  %v4313_v27 = vpop.f32.mrf.mxu1 }
  0xf8   : > { %672 = vst.msk [vmem:[%s4841_s6 + $0x80] sm:$0xff] %vm655_vm1, %v593_v24  ;;  %v604_v30 = vadd.f32 %v4313_v27, %v4279_v26  ;;  %v719_v35 = vsel %vm655_vm1, %v593_v24, 0.0 }
  0xf9   : > { %v718_v32 = vadd.f32 %v717_v29, %v716_v25  ;;  %v420_v33 = vpop.f32.mrf.mxu0  ;;  %v595_v34 = vpop.f32.mrf.mxu1 }
  0xfa   : > { %675 = vst.msk [vmem:[%s4841_s6 + $0x98] sm:$0xff] %vm655_vm1, %v604_v30  ;;  %v596_v36 = vadd.f32 %v595_v34, %v420_v33  ;;  %v725_v51 = vsel %vm655_vm1, %v604_v30, 0.0 }
  0xfb   : > { %v720_v37 = vadd.f32 %v719_v35, %v718_v32  ;;  %v4282_v38 = vpop.f32.mrf.mxu0  ;;  %v4316_v39 = vpop.f32.mrf.mxu1  ;;  %4485 = vmatmul.mubr.msk.bf16.gmra.mxu0 %vm270_vm0, %v4610_v28  ;;  %4519 = vmatmul.mubr.msk.bf16.gmra.mxu1 %vm270_vm0, %v4609_v9 }
  0xfc   : > { %673 = vst.msk [vmem:[%s4841_s6 + $0x88] sm:$0xff] %vm655_vm1, %v596_v36  ;;  %v721_v40 = vsel %vm655_vm1, %v596_v36, 0.0  ;;  %v617_v41 = vadd.f32 %v4316_v39, %v4282_v38  ;;  %4488 = vmatprep.mubr.msk.bf16.mxu0 %vm270_vm0, %v4611_v31  ;;  %4522 = vmatprep.mubr.msk.bf16.mxu1 %vm270_vm0, %v4610_v28 }
  0xfd   : > { %v722_v42 = vadd.f32 %v721_v40, %v720_v37  ;;  %v433_v43 = vpop.f32.mrf.mxu0  ;;  %v608_v44 = vpop.f32.mrf.mxu1 }
  0xfe   : > { %678 = vst.msk [vmem:[%s4841_s6 + $0xb0] sm:$0xff] %vm655_vm1, %v617_v41  ;;  %v609_v46 = vadd.f32 %v608_v44, %v433_v43  ;;  %v731_v3 = vsel %vm655_vm1, %v617_v41, 0.0 }
  0xff   : > { %v724_v47 = vadd.f32 %v723_v45, %v722_v42  ;;  %v4283_v48 = vpop.f32.mrf.mxu0  ;;  %v4317_v49 = vpop.f32.mrf.mxu1 }
 0x100   : > { %676 = vst.msk [vmem:[%s4841_s6 + $0xa0] sm:$0xff] %vm655_vm1, %v609_v46  ;;  %v620_v52 = vadd.f32 %v4317_v49, %v4283_v48  ;;  %v727_v57 = vsel %vm655_vm1, %v609_v46, 0.0 }
 0x101   : > { %v726_v54 = vadd.f32 %v725_v51, %v724_v47  ;;  %v436_v55 = vpop.f32.mrf.mxu0  ;;  %v611_v56 = vpop.f32.mrf.mxu1 }
 0x102   : > { %679 = vst.msk [vmem:[%s4841_s6 + $0xb8] sm:$0xff] %vm655_vm1, %v620_v52  ;;  %v612_v58 = vadd.f32 %v611_v56, %v436_v55  ;;  %v733_v9 = vsel %vm655_vm1, %v620_v52, 0.0 }
 0x103   : > { %v728_v59 = vadd.f32 %v727_v57, %v726_v54  ;;  %v4286_v60 = vpop.f32.mrf.mxu0  ;;  %v4320_v61 = vpop.f32.mrf.mxu1  ;;  %4489 = vmatmul.mubr.msk.bf16.gmra.mxu0 %vm270_vm0, %v4612_v50  ;;  %4523 = vmatmul.mubr.msk.bf16.gmra.mxu1 %vm270_vm0, %v4611_v31 }
 0x104   : > { %677 = vst.msk [vmem:[%s4841_s6 + $0xa8] sm:$0xff] %vm655_vm1, %v612_v58  ;;  %v729_v62 = vsel %vm655_vm1, %v612_v58, 0.0  ;;  %v633_v63 = vadd.f32 %v4320_v61, %v4286_v60  ;;  %4492 = vmatprep.mubr.msk.bf16.mxu0 %vm270_vm0, %v4613_v53  ;;  %4526 = vmatprep.mubr.msk.bf16.mxu1 %vm270_vm0, %v4612_v50 }
 0x105   : > { %v730_v0 = vadd.f32 %v729_v62, %v728_v59  ;;  %v449_v1 = vpop.f32.mrf.mxu0  ;;  %v624_v2 = vpop.f32.mrf.mxu1 }
 0x106   : > { %682 = vst.msk [vmem:[%s4841_s6 + $0xd0] sm:$0xff] %vm655_vm1, %v633_v63  ;;  %v625_v4 = vadd.f32 %v624_v2, %v449_v1  ;;  %v739_v24 = vsel %vm655_vm1, %v633_v63, 0.0 }
 0x107   : > { %v732_v5 = vadd.f32 %v731_v3, %v730_v0  ;;  %v4287_v6 = vpop.f32.mrf.mxu0  ;;  %v4321_v7 = vpop.f32.mrf.mxu1 }
 0x108   : > { %680 = vst.msk [vmem:[%s4841_s6 + $0xc0] sm:$0xff] %vm655_vm1, %v625_v4  ;;  %v636_v10 = vadd.f32 %v4321_v7, %v4287_v6  ;;  %v735_v14 = vsel %vm655_vm1, %v625_v4, 0.0 }
 0x109   : > { %v734_v11 = vadd.f32 %v733_v9, %v732_v5  ;;  %v452_v12 = vpop.f32.mrf.mxu0  ;;  %v627_v13 = vpop.f32.mrf.mxu1 }
 0x10a   : > { %683 = vst.msk [vmem:[%s4841_s6 + $0xd8] sm:$0xff] %vm655_vm1, %v636_v10  ;;  %v628_v15 = vadd.f32 %v627_v13, %v452_v12  ;;  %v741_v29 = vsel %vm655_vm1, %v636_v10, 0.0 }
 0x10b   : > { %v736_v16 = vadd.f32 %v735_v14, %v734_v11  ;;  %v4290_v17 = vpop.f32.mrf.mxu0  ;;  %v4324_v18 = vpop.f32.mrf.mxu1  ;;  %4493 = vmatmul.mubr.msk.bf16.gmra.mxu0 %vm270_vm0, %v4614_v8  ;;  %4527 = vmatmul.mubr.msk.bf16.gmra.mxu1 %vm270_vm0, %v4613_v53 }
 0x10c   : > { %681 = vst.msk [vmem:[%s4841_s6 + $0xc8] sm:$0xff] %vm655_vm1, %v628_v15  ;;  %v737_v19 = vsel %vm655_vm1, %v628_v15, 0.0  ;;  %v649_v20 = vadd.f32 %v4324_v18, %v4290_v17 }
 0x10d   : > { %v738_v21 = vadd.f32 %v737_v19, %v736_v16  ;;  %v465_v22 = vpop.f32.mrf.mxu0  ;;  %v640_v23 = vpop.f32.mrf.mxu1 }
 0x10e   : > { %686 = vst.msk [vmem:[%s4841_s6 + $0xf0] sm:$0xff] %vm655_vm1, %v649_v20  ;;  %v641_v25 = vadd.f32 %v640_v23, %v465_v22  ;;  %v747_v44 = vsel %vm655_vm1, %v649_v20, 0.0 }
 0x10f   : > { %v740_v26 = vadd.f32 %v739_v24, %v738_v21  ;;  %v4291_v27 = vpop.f32.mrf.mxu0  ;;  %v4325_v28 = vpop.f32.mrf.mxu1 }
 0x110   : > { %684 = vst.msk [vmem:[%s4841_s6 + $0xe0] sm:$0xff] %vm655_vm1, %v641_v25  ;;  %v652_v30 = vadd.f32 %v4325_v28, %v4291_v27  ;;  %v743_v34 = vsel %vm655_vm1, %v641_v25, 0.0 }
 0x111   : > { %v742_v31 = vadd.f32 %v741_v29, %v740_v26  ;;  %v468_v32 = vpop.f32.mrf.mxu0  ;;  %v643_v33 = vpop.f32.mrf.mxu1 }
 0x112   : > { %687 = vst.msk [vmem:[%s4841_s6 + $0xf8] sm:$0xff] %vm655_vm1, %v652_v30  ;;  %v644_v35 = vadd.f32 %v643_v33, %v468_v32  ;;  %v749_v49 = vsel %vm655_vm1, %v652_v30, 0.0 }
 0x113   : > { %v744_v36 = vadd.f32 %v743_v34, %v742_v31  ;;  %v4330_v37 = vpop.f32.mrf.mxu0  ;;  %v4364_v38 = vpop.f32.mrf.mxu1 }
 0x114   : > { %685 = vst.msk [vmem:[%s4841_s6 + $0xe8] sm:$0xff] %vm655_vm1, %v644_v35  ;;  %v745_v39 = vsel %vm655_vm1, %v644_v35, 0.0  ;;  %v1150_v40 = vadd.f32 %v4364_v38, %v4330_v37 }
 0x115   : > { %v746_v41 = vadd.f32 %v745_v39, %v744_v36  ;;  %v966_v42 = vpop.f32.mrf.mxu0  ;;  %v1141_v43 = vpop.f32.mrf.mxu1 }
 0x116   : > { %1270 = vst.msk [vmem:[%s4841_s6 + $0x110] sm:$0xff] %vm655_vm1, %v1150_v40  ;;  %v1142_v45 = vadd.f32 %v1141_v43, %v966_v42  ;;  %v1303_v63 = vsel %vm655_vm1, %v1150_v40, 0.0 }
 0x117   : > { %v748_v46 = vadd.f32 %v747_v44, %v746_v41  ;;  %v4331_v47 = vpop.f32.mrf.mxu0  ;;  %v4365_v48 = vpop.f32.mrf.mxu1 }
 0x118   : > { %1268 = vst.msk [vmem:[%s4841_s6 + $0x100] sm:$0xff] %vm655_vm1, %v1142_v45  ;;  %v1153_v50 = vadd.f32 %v4365_v48, %v4331_v47  ;;  %v1300_v57 = vsel %vm655_vm1, %v1142_v45, 0.0 }
 0x119   : > { %v4986_v51 = vadd.f32 %v749_v49, %v748_v46  ;;  %v969_v52 = vpop.f32.mrf.mxu0  ;;  %v1144_v53 = vpop.f32.mrf.mxu1 }
 0x11a   : > { %1271 = vst.msk [vmem:[%s4841_s6 + $0x118] sm:$0xff] %vm655_vm1, %v1153_v50  ;;  %v1145_v54 = vadd.f32 %v1144_v53, %v969_v52  ;;  %v1305_v4 = vsel %vm655_vm1, %v1153_v50, 0.0 }
 0x11b   : > { %v4334_v55 = vpop.f32.mrf.mxu0  ;;  %v4368_v56 = vpop.f32.mrf.mxu1 }
 0x11c   : > { %1269 = vst.msk [vmem:[%s4841_s6 + $0x108] sm:$0xff] %vm655_vm1, %v1145_v54  ;;  %v1301_v58 = vsel %vm655_vm1, %v1145_v54, 0.0  ;;  %v1166_v59 = vadd.f32 %v4368_v56, %v4334_v55 }
 0x11d   : > { %v1302_v60 = vadd.f32 %v1301_v58, %v1300_v57  ;;  %v982_v61 = vpop.f32.mrf.mxu0  ;;  %v1157_v62 = vpop.f32.mrf.mxu1 }
 0x11e   : > { %1274 = vst.msk [vmem:[%s4841_s6 + $0x130] sm:$0xff] %vm655_vm1, %v1166_v59  ;;  %v1158_v0 = vadd.f32 %v1157_v62, %v982_v61  ;;  %v1311_v19 = vsel %vm655_vm1, %v1166_v59, 0.0 }
 0x11f   : > { %v1304_v1 = vadd.f32 %v1303_v63, %v1302_v60  ;;  %v4335_v2 = vpop.f32.mrf.mxu0  ;;  %v4369_v3 = vpop.f32.mrf.mxu1 }
 0x120   : > { %1272 = vst.msk [vmem:[%s4841_s6 + $0x120] sm:$0xff] %vm655_vm1, %v1158_v0  ;;  %v1169_v5 = vadd.f32 %v4369_v3, %v4335_v2  ;;  %v1307_v9 = vsel %vm655_vm1, %v1158_v0, 0.0 }
 0x121   : > { %v1306_v6 = vadd.f32 %v1305_v4, %v1304_v1  ;;  %v985_v7 = vpop.f32.mrf.mxu0  ;;  %v1160_v8 = vpop.f32.mrf.mxu1 }
 0x122   : > { %1275 = vst.msk [vmem:[%s4841_s6 + $0x138] sm:$0xff] %vm655_vm1, %v1169_v5  ;;  %v1161_v10 = vadd.f32 %v1160_v8, %v985_v7  ;;  %v1313_v24 = vsel %vm655_vm1, %v1169_v5, 0.0 }
 0x123   : > { %v1308_v11 = vadd.f32 %v1307_v9, %v1306_v6  ;;  %v4338_v12 = vpop.f32.mrf.mxu0  ;;  %v4372_v13 = vpop.f32.mrf.mxu1 }
 0x124   : > { %1273 = vst.msk [vmem:[%s4841_s6 + $0x128] sm:$0xff] %vm655_vm1, %v1161_v10  ;;  %v1309_v14 = vsel %vm655_vm1, %v1161_v10, 0.0  ;;  %v1182_v15 = vadd.f32 %v4372_v13, %v4338_v12 }
 0x125   : > { %v1310_v16 = vadd.f32 %v1309_v14, %v1308_v11  ;;  %v998_v17 = vpop.f32.mrf.mxu0  ;;  %v1173_v18 = vpop.f32.mrf.mxu1 }
 0x126   : > { %1278 = vst.msk [vmem:[%s4841_s6 + $0x150] sm:$0xff] %vm655_vm1, %v1182_v15  ;;  %v1174_v20 = vadd.f32 %v1173_v18, %v998_v17  ;;  %v1319_v39 = vsel %vm655_vm1, %v1182_v15, 0.0 }
 0x127   : > { %v1312_v21 = vadd.f32 %v1311_v19, %v1310_v16  ;;  %v4339_v22 = vpop.f32.mrf.mxu0  ;;  %v4373_v23 = vpop.f32.mrf.mxu1 }
 0x128   : > { %1276 = vst.msk [vmem:[%s4841_s6 + $0x140] sm:$0xff] %vm655_vm1, %v1174_v20  ;;  %v1185_v25 = vadd.f32 %v4373_v23, %v4339_v22  ;;  %v1315_v29 = vsel %vm655_vm1, %v1174_v20, 0.0 }
 0x129   : > { %v1314_v26 = vadd.f32 %v1313_v24, %v1312_v21  ;;  %v1001_v27 = vpop.f32.mrf.mxu0  ;;  %v1176_v28 = vpop.f32.mrf.mxu1 }
 0x12a   : > { %1279 = vst.msk [vmem:[%s4841_s6 + $0x158] sm:$0xff] %vm655_vm1, %v1185_v25  ;;  %v1177_v30 = vadd.f32 %v1176_v28, %v1001_v27  ;;  %v1321_v44 = vsel %vm655_vm1, %v1185_v25, 0.0 }
 0x12b   : > { %v1316_v31 = vadd.f32 %v1315_v29, %v1314_v26  ;;  %v4342_v32 = vpop.f32.mrf.mxu0  ;;  %v4376_v33 = vpop.f32.mrf.mxu1 }
 0x12c   : > { %1277 = vst.msk [vmem:[%s4841_s6 + $0x148] sm:$0xff] %vm655_vm1, %v1177_v30  ;;  %v1317_v34 = vsel %vm655_vm1, %v1177_v30, 0.0  ;;  %v1198_v35 = vadd.f32 %v4376_v33, %v4342_v32 }
 0x12d   : > { %v1318_v36 = vadd.f32 %v1317_v34, %v1316_v31  ;;  %v1014_v37 = vpop.f32.mrf.mxu0  ;;  %v1189_v38 = vpop.f32.mrf.mxu1 }
 0x12e   : > { %1282 = vst.msk [vmem:[%s4841_s6 + $0x170] sm:$0xff] %vm655_vm1, %v1198_v35  ;;  %v1190_v40 = vadd.f32 %v1189_v38, %v1014_v37  ;;  %v1327_v60 = vsel %vm655_vm1, %v1198_v35, 0.0 }
 0x12f   : > { %v1320_v41 = vadd.f32 %v1319_v39, %v1318_v36  ;;  %v4343_v42 = vpop.f32.mrf.mxu0  ;;  %v4377_v43 = vpop.f32.mrf.mxu1 }
 0x130   : > { %1280 = vst.msk [vmem:[%s4841_s6 + $0x160] sm:$0xff] %vm655_vm1, %v1190_v40  ;;  %v1201_v45 = vadd.f32 %v4377_v43, %v4343_v42  ;;  %v1323_v49 = vsel %vm655_vm1, %v1190_v40, 0.0 }
 0x131   : > { %v1322_v46 = vadd.f32 %v1321_v44, %v1320_v41  ;;  %v1017_v47 = vpop.f32.mrf.mxu0  ;;  %v1192_v48 = vpop.f32.mrf.mxu1 }
 0x132   : > { %1283 = vst.msk [vmem:[%s4841_s6 + $0x178] sm:$0xff] %vm655_vm1, %v1201_v45  ;;  %v1193_v50 = vadd.f32 %v1192_v48, %v1017_v47  ;;  %v1329_v1 = vsel %vm655_vm1, %v1201_v45, 0.0 }
 0x133   : > { %v1324_v52 = vadd.f32 %v1323_v49, %v1322_v46  ;;  %v4346_v53 = vpop.f32.mrf.mxu0  ;;  %v4380_v54 = vpop.f32.mrf.mxu1 }
 0x134   : > { %1281 = vst.msk [vmem:[%s4841_s6 + $0x168] sm:$0xff] %vm655_vm1, %v1193_v50  ;;  %v1325_v55 = vsel %vm655_vm1, %v1193_v50, 0.0  ;;  %v1214_v56 = vadd.f32 %v4380_v54, %v4346_v53 }
 0x135   : > { %v1326_v57 = vadd.f32 %v1325_v55, %v1324_v52  ;;  %v1030_v58 = vpop.f32.mrf.mxu0  ;;  %v1205_v59 = vpop.f32.mrf.mxu1 }
 0x136   : > { %1286 = vst.msk [vmem:[%s4841_s6 + $0x190] sm:$0xff] %vm655_vm1, %v1214_v56  ;;  %v1206_v61 = vadd.f32 %v1205_v59, %v1030_v58  ;;  %v1335_v16 = vsel %vm655_vm1, %v1214_v56, 0.0 }
 0x137   : > { %v1328_v62 = vadd.f32 %v1327_v60, %v1326_v57  ;;  %v4347_v63 = vpop.f32.mrf.mxu0  ;;  %v4381_v0 = vpop.f32.mrf.mxu1 }
 0x138   : > { %1284 = vst.msk [vmem:[%s4841_s6 + $0x180] sm:$0xff] %vm655_vm1, %v1206_v61  ;;  %v1217_v2 = vadd.f32 %v4381_v0, %v4347_v63  ;;  %v1331_v6 = vsel %vm655_vm1, %v1206_v61, 0.0  ;;  %v751_v0 = vrot.slane %v4986_v51, 4 }
 0x139   : > { %v1330_v3 = vadd.f32 %v1329_v1, %v1328_v62  ;;  %v1033_v4 = vpop.f32.mrf.mxu0  ;;  %v1208_v5 = vpop.f32.mrf.mxu1 }
 0x13a   : > { %1287 = vst.msk [vmem:[%s4841_s6 + $0x198] sm:$0xff] %vm655_vm1, %v1217_v2  ;;  %v1209_v7 = vadd.f32 %v1208_v5, %v1033_v4  ;;  %v1337_v21 = vsel %vm655_vm1, %v1217_v2, 0.0 }
 0x13b   : > { %v1332_v8 = vadd.f32 %v1331_v6, %v1330_v3  ;;  %v4350_v9 = vpop.f32.mrf.mxu0  ;;  %v4384_v10 = vpop.f32.mrf.mxu1 }
 0x13c   : > { %1285 = vst.msk [vmem:[%s4841_s6 + $0x188] sm:$0xff] %vm655_vm1, %v1209_v7  ;;  %v1333_v11 = vsel %vm655_vm1, %v1209_v7, 0.0  ;;  %v1230_v12 = vadd.f32 %v4384_v10, %v4350_v9 }
 0x13d   : > { %v1334_v13 = vadd.f32 %v1333_v11, %v1332_v8  ;;  %v1046_v14 = vpop.f32.mrf.mxu0  ;;  %v1221_v15 = vpop.f32.mrf.mxu1  ;;  %v752_v11 = vadd.f32 %v751_v0, %v4986_v51 }
 0x13e   : > { %1290 = vst.msk [vmem:[%s4841_s6 + $0x1b0] sm:$0xff] %vm655_vm1, %v1230_v12  ;;  %v1222_v17 = vadd.f32 %v1221_v15, %v1046_v14  ;;  %v1343_v36 = vsel %vm655_vm1, %v1230_v12, 0.0 }
 0x13f   : > { %v1336_v18 = vadd.f32 %v1335_v16, %v1334_v13  ;;  %v4351_v19 = vpop.f32.mrf.mxu0  ;;  %v4385_v20 = vpop.f32.mrf.mxu1 }
 0x140   : > { %1288 = vst.msk [vmem:[%s4841_s6 + $0x1a0] sm:$0xff] %vm655_vm1, %v1222_v17  ;;  %v1233_v22 = vadd.f32 %v4385_v20, %v4351_v19  ;;  %v1339_v26 = vsel %vm655_vm1, %v1222_v17, 0.0 }
 0x141   : > { %v1338_v23 = vadd.f32 %v1337_v21, %v1336_v18  ;;  %v1049_v24 = vpop.f32.mrf.mxu0  ;;  %v1224_v25 = vpop.f32.mrf.mxu1 }
 0x142   : > { %1291 = vst.msk [vmem:[%s4841_s6 + $0x1b8] sm:$0xff] %vm655_vm1, %v1233_v22  ;;  %v1225_v27 = vadd.f32 %v1224_v25, %v1049_v24  ;;  %v1345_v41 = vsel %vm655_vm1, %v1233_v22, 0.0  ;;  %v753_v22 = vrot.slane %v752_v11, 2 }
 0x143   : > { %v1340_v28 = vadd.f32 %v1339_v26, %v1338_v23  ;;  %v4354_v29 = vpop.f32.mrf.mxu0  ;;  %v4388_v30 = vpop.f32.mrf.mxu1 }
 0x144   : > { %1289 = vst.msk [vmem:[%s4841_s6 + $0x1a8] sm:$0xff] %vm655_vm1, %v1225_v27  ;;  %v1341_v31 = vsel %vm655_vm1, %v1225_v27, 0.0  ;;  %v1246_v32 = vadd.f32 %v4388_v30, %v4354_v29 }
 0x145   : > { %v1342_v33 = vadd.f32 %v1341_v31, %v1340_v28  ;;  %v1062_v34 = vpop.f32.mrf.mxu0  ;;  %v1237_v35 = vpop.f32.mrf.mxu1 }
 0x146   : > { %1294 = vst.msk [vmem:[%s4841_s6 + $0x1d0] sm:$0xff] %vm655_vm1, %v1246_v32  ;;  %v1238_v37 = vadd.f32 %v1237_v35, %v1062_v34  ;;  %v1351_v57 = vsel %vm655_vm1, %v1246_v32, 0.0  ;;  %v754_v32 = vadd.f32 %v753_v22, %v752_v11 }
 0x147   : > { %v1344_v38 = vadd.f32 %v1343_v36, %v1342_v33  ;;  %v4355_v39 = vpop.f32.mrf.mxu0  ;;  %v4389_v40 = vpop.f32.mrf.mxu1 }
 0x148   : > { %1292 = vst.msk [vmem:[%s4841_s6 + $0x1c0] sm:$0xff] %vm655_vm1, %v1238_v37  ;;  %v1249_v42 = vadd.f32 %v4389_v40, %v4355_v39  ;;  %v1347_v46 = vsel %vm655_vm1, %v1238_v37, 0.0 }
 0x149   : > { %v1346_v43 = vadd.f32 %v1345_v41, %v1344_v38  ;;  %v1065_v44 = vpop.f32.mrf.mxu0  ;;  %v1240_v45 = vpop.f32.mrf.mxu1 }
 0x14a   : > { %1295 = vst.msk [vmem:[%s4841_s6 + $0x1d8] sm:$0xff] %vm655_vm1, %v1249_v42  ;;  %v1241_v47 = vadd.f32 %v1240_v45, %v1065_v44  ;;  %v1353_v62 = vsel %vm655_vm1, %v1249_v42, 0.0  ;;  %v755_v45 = vrot.slane %v754_v32, 1 }
 0x14b   : > { %v1348_v48 = vadd.f32 %v1347_v46, %v1346_v43  ;;  %v4358_v49 = vpop.f32.mrf.mxu0  ;;  %v4392_v50 = vpop.f32.mrf.mxu1 }
 0x14c   : > { %1293 = vst.msk [vmem:[%s4841_s6 + $0x1c8] sm:$0xff] %vm655_vm1, %v1241_v47  ;;  %v1349_v52 = vsel %vm655_vm1, %v1241_v47, 0.0  ;;  %v1262_v53 = vadd.f32 %v4392_v50, %v4358_v49 }
 0x14d   : > { %v1350_v54 = vadd.f32 %v1349_v52, %v1348_v48  ;;  %v1078_v55 = vpop.f32.mrf.mxu0  ;;  %v1253_v56 = vpop.f32.mrf.mxu1 }
 0x14e   : > { %1298 = vst.msk [vmem:[%s4841_s6 + $0x1f0] sm:$0xff] %vm655_vm1, %v1262_v53  ;;  %v1254_v58 = vadd.f32 %v1253_v56, %v1078_v55  ;;  %v1359_v15 = vsel %vm655_vm1, %v1262_v53, 0.0 }
 0x14f   : > { %v1352_v59 = vadd.f32 %v1351_v57, %v1350_v54  ;;  %v4359_v60 = vpop.f32.mrf.mxu0  ;;  %v4393_v61 = vpop.f32.mrf.mxu1 }
 0x150   : > { %1296 = vst.msk [vmem:[%s4841_s6 + $0x1e0] sm:$0xff] %vm655_vm1, %v1254_v58  ;;  %v1265_v63 = vadd.f32 %v4393_v61, %v4359_v60  ;;  %v1355_v4 = vsel %vm655_vm1, %v1254_v58, 0.0 }
 0x151   : > { %v1354_v1 = vadd.f32 %v1353_v62, %v1352_v59  ;;  %v1081_v2 = vpop.f32.mrf.mxu0  ;;  %v1256_v3 = vpop.f32.mrf.mxu1  ;;  %v756_v59 = vadd.f32 %v755_v45, %v754_v32 }
 0x152   : > { %1299 = vst.msk [vmem:[%s4841_s6 + $0x1f8] sm:$0xff] %vm655_vm1, %v1265_v63  ;;  %v1257_v5 = vadd.f32 %v1256_v3, %v1081_v2  ;;  %v1361_v20 = vsel %vm655_vm1, %v1265_v63, 0.0 }
 0x153   : > { %v1356_v6 = vadd.f32 %v1355_v4, %v1354_v1  ;;  %v4398_v7 = vpop.f32.mrf.mxu0  ;;  %v4432_v8 = vpop.f32.mrf.mxu1 }
 0x154   : > { %1297 = vst.msk [vmem:[%s4841_s6 + $0x1e8] sm:$0xff] %vm655_vm1, %v1257_v5  ;;  %v1357_v9 = vsel %vm655_vm1, %v1257_v5, 0.0  ;;  %v1762_v10 = vadd.f32 %v4432_v8, %v4398_v7 }
 0x155   : > { %v1358_v12 = vadd.f32 %v1357_v9, %v1356_v6  ;;  %v1578_v13 = vpop.f32.mrf.mxu0  ;;  %v1753_v14 = vpop.f32.mrf.mxu1 }
 0x156   : > { %1882 = vst.msk [vmem:[%s4841_s6 + $0x210] sm:$0xff] %vm655_vm1, %v1762_v10  ;;  %v1754_v16 = vadd.f32 %v1753_v14, %v1578_v13  ;;  %v1915_v37 = vsel %vm655_vm1, %v1762_v10, 0.0 }
 0x157   : > { %v1360_v17 = vadd.f32 %v1359_v15, %v1358_v12  ;;  %v4399_v18 = vpop.f32.mrf.mxu0  ;;  %v4433_v19 = vpop.f32.mrf.mxu1 }
 0x158   : > { %1880 = vst.msk [vmem:[%s4841_s6 + $0x200] sm:$0xff] %vm655_vm1, %v1754_v16  ;;  %v1765_v21 = vadd.f32 %v4433_v19, %v4399_v18  ;;  %v1912_v29 = vsel %vm655_vm1, %v1754_v16, 0.0 }
 0x159   : > { %v1362_v51 = vadd.f32 %v1361_v20, %v1360_v17  ;;  %v1581_v23 = vpop.f32.mrf.mxu0  ;;  %v1756_v24 = vpop.f32.mrf.mxu1 }
 0x15a   : > { %1883 = vst.msk [vmem:[%s4841_s6 + $0x218] sm:$0xff] %vm655_vm1, %v1765_v21  ;;  %v1757_v25 = vadd.f32 %v1756_v24, %v1581_v23  ;;  %v1917_v43 = vsel %vm655_vm1, %v1765_v21, 0.0 }
 0x15b   : > { %v1363_v26 = vrot.slane %v1362_v51, 4  ;;  %v4402_v27 = vpop.f32.mrf.mxu0  ;;  %v4436_v28 = vpop.f32.mrf.mxu1 }
 0x15c   : > { %1881 = vst.msk [vmem:[%s4841_s6 + $0x208] sm:$0xff] %vm655_vm1, %v1757_v25  ;;  %v1913_v30 = vsel %vm655_vm1, %v1757_v25, 0.0  ;;  %v1778_v31 = vadd.f32 %v4436_v28, %v4402_v27 }
 0x15d   : > { %v1364_v33 = vadd.f32 %v1363_v26, %v1362_v51  ;;  %v1914_v34 = vadd.f32 %v1913_v30, %v1912_v29  ;;  %v1594_v35 = vpop.f32.mrf.mxu0  ;;  %v1769_v36 = vpop.f32.mrf.mxu1 }
 0x15e   : > { %1886 = vst.msk [vmem:[%s4841_s6 + $0x230] sm:$0xff] %vm655_vm1, %v1778_v31  ;;  %v1770_v38 = vadd.f32 %v1769_v36, %v1594_v35  ;;  %v1923_v0 = vsel %vm655_vm1, %v1778_v31, 0.0 }
 0x15f   : > { %v1365_v39 = vrot.slane %v1364_v33, 2  ;;  %v1916_v40 = vadd.f32 %v1915_v37, %v1914_v34  ;;  %v4403_v41 = vpop.f32.mrf.mxu0  ;;  %v4437_v42 = vpop.f32.mrf.mxu1 }
 0x160   : > { %1884 = vst.msk [vmem:[%s4841_s6 + $0x220] sm:$0xff] %vm655_vm1, %v1770_v38  ;;  %v1781_v44 = vadd.f32 %v4437_v42, %v4403_v41  ;;  %v1919_v50 = vsel %vm655_vm1, %v1770_v38, 0.0 }
 0x161   : > { %v1366_v46 = vadd.f32 %v1365_v39, %v1364_v33  ;;  %v1918_v47 = vadd.f32 %v1917_v43, %v1916_v40  ;;  %v1597_v48 = vpop.f32.mrf.mxu0  ;;  %v1772_v49 = vpop.f32.mrf.mxu1 }
 0x162   : > { %1887 = vst.msk [vmem:[%s4841_s6 + $0x238] sm:$0xff] %vm655_vm1, %v1781_v44  ;;  %v1773_v52 = vadd.f32 %v1772_v49, %v1597_v48  ;;  %v1925_v6 = vsel %vm655_vm1, %v1781_v44, 0.0 }
 0x163   : > { %v1367_v53 = vrot.slane %v1366_v46, 1  ;;  %v1920_v54 = vadd.f32 %v1919_v50, %v1918_v47  ;;  %v4406_v55 = vpop.f32.mrf.mxu0  ;;  %v4440_v56 = vpop.f32.mrf.mxu1 }
 0x164   : > { %1885 = vst.msk [vmem:[%s4841_s6 + $0x228] sm:$0xff] %vm655_vm1, %v1773_v52  ;;  %v1921_v57 = vsel %vm655_vm1, %v1773_v52, 0.0  ;;  %v1794_v58 = vadd.f32 %v4440_v56, %v4406_v55 }
 0x165   : > { %v1368_v60 = vadd.f32 %v1367_v53, %v1366_v46  ;;  %v1922_v61 = vadd.f32 %v1921_v57, %v1920_v54  ;;  %v1610_v62 = vpop.f32.mrf.mxu0  ;;  %v1785_v63 = vpop.f32.mrf.mxu1 }
 0x166   : > { %1890 = vst.msk [vmem:[%s4841_s6 + $0x250] sm:$0xff] %vm655_vm1, %v1794_v58  ;;  %v1786_v1 = vadd.f32 %v1785_v63, %v1610_v62  ;;  %v1931_v21 = vsel %vm655_vm1, %v1794_v58, 0.0 }
 0x167   : > { %v5107_v2 = vadd.f32 %v1368_v60, %v756_v59  ;;  %v1924_v3 = vadd.f32 %v1923_v0, %v1922_v61  ;;  %v4407_v4 = vpop.f32.mrf.mxu0  ;;  %v4441_v5 = vpop.f32.mrf.mxu1 }
 0x168   : > { %1888 = vst.msk [vmem:[%s4841_s6 + $0x240] sm:$0xff] %vm655_vm1, %v1786_v1  ;;  %v1797_v7 = vadd.f32 %v4441_v5, %v4407_v4  ;;  %v1927_v11 = vsel %vm655_vm1, %v1786_v1, 0.0 }
 0x169   : > { %v1926_v8 = vadd.f32 %v1925_v6, %v1924_v3  ;;  %v1613_v9 = vpop.f32.mrf.mxu0  ;;  %v1788_v10 = vpop.f32.mrf.mxu1 }
 0x16a   : > { %1891 = vst.msk [vmem:[%s4841_s6 + $0x258] sm:$0xff] %vm655_vm1, %v1797_v7  ;;  %v1789_v12 = vadd.f32 %v1788_v10, %v1613_v9  ;;  %v1933_v25 = vsel %vm655_vm1, %v1797_v7, 0.0 }
 0x16b   : > { %v1928_v13 = vadd.f32 %v1927_v11, %v1926_v8  ;;  %v4410_v14 = vpop.f32.mrf.mxu0  ;;  %v4444_v15 = vpop.f32.mrf.mxu1 }
 0x16c   : > { %1889 = vst.msk [vmem:[%s4841_s6 + $0x248] sm:$0xff] %vm655_vm1, %v1789_v12  ;;  %v1929_v16 = vsel %vm655_vm1, %v1789_v12, 0.0  ;;  %v1810_v17 = vadd.f32 %v4444_v15, %v4410_v14 }
 0x16d   : > { %v1930_v18 = vadd.f32 %v1929_v16, %v1928_v13  ;;  %v1626_v19 = vpop.f32.mrf.mxu0  ;;  %v1801_v20 = vpop.f32.mrf.mxu1 }
 0x16e   : > { %1894 = vst.msk [vmem:[%s4841_s6 + $0x270] sm:$0xff] %vm655_vm1, %v1810_v17  ;;  %v1802_v22 = vadd.f32 %v1801_v20, %v1626_v19  ;;  %v1939_v40 = vsel %vm655_vm1, %v1810_v17, 0.0 }
 0x16f   : > { %v1932_v51 = vadd.f32 %v1931_v21, %v1930_v18  ;;  %v4411_v23 = vpop.f32.mrf.mxu0  ;;  %v4445_v24 = vpop.f32.mrf.mxu1 }
 0x170   : > { %1892 = vst.msk [vmem:[%s4841_s6 + $0x260] sm:$0xff] %vm655_vm1, %v1802_v22  ;;  %v1813_v26 = vadd.f32 %v4445_v24, %v4411_v23  ;;  %v1935_v30 = vsel %vm655_vm1, %v1802_v22, 0.0 }
 0x171   : > { %v1934_v27 = vadd.f32 %v1933_v25, %v1932_v51  ;;  %v1629_v28 = vpop.f32.mrf.mxu0  ;;  %v1804_v29 = vpop.f32.mrf.mxu1 }
 0x172   : > { %1895 = vst.msk [vmem:[%s4841_s6 + $0x278] sm:$0xff] %vm655_vm1, %v1813_v26  ;;  %v1805_v31 = vadd.f32 %v1804_v29, %v1629_v28  ;;  %v1941_v45 = vsel %vm655_vm1, %v1813_v26, 0.0 }
 0x173   : > { %v1936_v32 = vadd.f32 %v1935_v30, %v1934_v27  ;;  %v4414_v33 = vpop.f32.mrf.mxu0  ;;  %v4448_v34 = vpop.f32.mrf.mxu1 }
 0x174   : > { %1893 = vst.msk [vmem:[%s4841_s6 + $0x268] sm:$0xff] %vm655_vm1, %v1805_v31  ;;  %v1937_v35 = vsel %vm655_vm1, %v1805_v31, 0.0  ;;  %v1826_v36 = vadd.f32 %v4448_v34, %v4414_v33 }
 0x175   : > { %v1938_v37 = vadd.f32 %v1937_v35, %v1936_v32  ;;  %v1642_v38 = vpop.f32.mrf.mxu0  ;;  %v1817_v39 = vpop.f32.mrf.mxu1 }
 0x176   : > { %1898 = vst.msk [vmem:[%s4841_s6 + $0x290] sm:$0xff] %vm655_vm1, %v1826_v36  ;;  %v1818_v41 = vadd.f32 %v1817_v39, %v1642_v38  ;;  %v1947_v61 = vsel %vm655_vm1, %v1826_v36, 0.0 }
 0x177   : > { %v1940_v42 = vadd.f32 %v1939_v40, %v1938_v37  ;;  %v4415_v43 = vpop.f32.mrf.mxu0  ;;  %v4449_v44 = vpop.f32.mrf.mxu1 }
 0x178   : > { %1896 = vst.msk [vmem:[%s4841_s6 + $0x280] sm:$0xff] %vm655_vm1, %v1818_v41  ;;  %v1829_v46 = vadd.f32 %v4449_v44, %v4415_v43  ;;  %v1943_v50 = vsel %vm655_vm1, %v1818_v41, 0.0 }
 0x179   : > { %v1942_v47 = vadd.f32 %v1941_v45, %v1940_v42  ;;  %v1645_v48 = vpop.f32.mrf.mxu0  ;;  %v1820_v49 = vpop.f32.mrf.mxu1 }
 0x17a   : > { %1899 = vst.msk [vmem:[%s4841_s6 + $0x298] sm:$0xff] %vm655_vm1, %v1829_v46  ;;  %v1821_v52 = vadd.f32 %v1820_v49, %v1645_v48  ;;  %v1949_v3 = vsel %vm655_vm1, %v1829_v46, 0.0 }
 0x17b   : > { %v1944_v53 = vadd.f32 %v1943_v50, %v1942_v47  ;;  %v4418_v54 = vpop.f32.mrf.mxu0  ;;  %v4452_v55 = vpop.f32.mrf.mxu1 }
 0x17c   : > { %1897 = vst.msk [vmem:[%s4841_s6 + $0x288] sm:$0xff] %vm655_vm1, %v1821_v52  ;;  %v1945_v56 = vsel %vm655_vm1, %v1821_v52, 0.0  ;;  %v1842_v57 = vadd.f32 %v4452_v55, %v4418_v54 }
 0x17d   : > { %v1946_v58 = vadd.f32 %v1945_v56, %v1944_v53  ;;  %v1658_v59 = vpop.f32.mrf.mxu0  ;;  %v1833_v60 = vpop.f32.mrf.mxu1 }
 0x17e   : > { %1902 = vst.msk [vmem:[%s4841_s6 + $0x2b0] sm:$0xff] %vm655_vm1, %v1842_v57  ;;  %v1834_v62 = vadd.f32 %v1833_v60, %v1658_v59  ;;  %v1955_v18 = vsel %vm655_vm1, %v1842_v57, 0.0 }
 0x17f   : > { %v1948_v63 = vadd.f32 %v1947_v61, %v1946_v58  ;;  %v4419_v0 = vpop.f32.mrf.mxu0  ;;  %v4453_v1 = vpop.f32.mrf.mxu1 }
 0x180   : > { %1900 = vst.msk [vmem:[%s4841_s6 + $0x2a0] sm:$0xff] %vm655_vm1, %v1834_v62  ;;  %v1845_v4 = vadd.f32 %v4453_v1, %v4419_v0  ;;  %v1951_v8 = vsel %vm655_vm1, %v1834_v62, 0.0 }
 0x181   : > { %v1950_v5 = vadd.f32 %v1949_v3, %v1948_v63  ;;  %v1661_v6 = vpop.f32.mrf.mxu0  ;;  %v1836_v7 = vpop.f32.mrf.mxu1 }
 0x182   : > { %1903 = vst.msk [vmem:[%s4841_s6 + $0x2b8] sm:$0xff] %vm655_vm1, %v1845_v4  ;;  %v1837_v9 = vadd.f32 %v1836_v7, %v1661_v6  ;;  %v1957_v51 = vsel %vm655_vm1, %v1845_v4, 0.0 }
 0x183   : > { %v1952_v10 = vadd.f32 %v1951_v8, %v1950_v5  ;;  %v4422_v11 = vpop.f32.mrf.mxu0  ;;  %v4456_v12 = vpop.f32.mrf.mxu1 }
 0x184   : > { %1901 = vst.msk [vmem:[%s4841_s6 + $0x2a8] sm:$0xff] %vm655_vm1, %v1837_v9  ;;  %v1953_v13 = vsel %vm655_vm1, %v1837_v9, 0.0  ;;  %v1858_v14 = vadd.f32 %v4456_v12, %v4422_v11 }
 0x185   : > { %v1954_v15 = vadd.f32 %v1953_v13, %v1952_v10  ;;  %v1674_v16 = vpop.f32.mrf.mxu0  ;;  %v1849_v17 = vpop.f32.mrf.mxu1 }
 0x186   : > { %1906 = vst.msk [vmem:[%s4841_s6 + $0x2d0] sm:$0xff] %vm655_vm1, %v1858_v14  ;;  %v1850_v19 = vadd.f32 %v1849_v17, %v1674_v16  ;;  %v1963_v37 = vsel %vm655_vm1, %v1858_v14, 0.0 }
 0x187   : > { %v1956_v20 = vadd.f32 %v1955_v18, %v1954_v15  ;;  %v4423_v21 = vpop.f32.mrf.mxu0  ;;  %v4457_v22 = vpop.f32.mrf.mxu1 }
 0x188   : > { %1904 = vst.msk [vmem:[%s4841_s6 + $0x2c0] sm:$0xff] %vm655_vm1, %v1850_v19  ;;  %v1861_v23 = vadd.f32 %v4457_v22, %v4423_v21  ;;  %v1959_v27 = vsel %vm655_vm1, %v1850_v19, 0.0 }
 0x189   : > { %v1958_v24 = vadd.f32 %v1957_v51, %v1956_v20  ;;  %v1677_v25 = vpop.f32.mrf.mxu0  ;;  %v1852_v26 = vpop.f32.mrf.mxu1 }
 0x18a   : > { %1907 = vst.msk [vmem:[%s4841_s6 + $0x2d8] sm:$0xff] %vm655_vm1, %v1861_v23  ;;  %v1853_v28 = vadd.f32 %v1852_v26, %v1677_v25  ;;  %v1965_v42 = vsel %vm655_vm1, %v1861_v23, 0.0 }
 0x18b   : > { %v1960_v29 = vadd.f32 %v1959_v27, %v1958_v24  ;;  %v4426_v30 = vpop.f32.mrf.mxu0  ;;  %v4460_v31 = vpop.f32.mrf.mxu1 }
 0x18c   : > { %1905 = vst.msk [vmem:[%s4841_s6 + $0x2c8] sm:$0xff] %vm655_vm1, %v1853_v28  ;;  %v1961_v32 = vsel %vm655_vm1, %v1853_v28, 0.0  ;;  %v1874_v33 = vadd.f32 %v4460_v31, %v4426_v30 }
 0x18d   : > { %v1962_v34 = vadd.f32 %v1961_v32, %v1960_v29  ;;  %v1690_v35 = vpop.f32.mrf.mxu0  ;;  %v1865_v36 = vpop.f32.mrf.mxu1 }
 0x18e   : > { %1910 = vst.msk [vmem:[%s4841_s6 + $0x2f0] sm:$0xff] %vm655_vm1, %v1874_v33  ;;  %v1866_v38 = vadd.f32 %v1865_v36, %v1690_v35  ;;  %v1971_v58 = vsel %vm655_vm1, %v1874_v33, 0.0 }
 0x18f   : > { %v1964_v39 = vadd.f32 %v1963_v37, %v1962_v34  ;;  %v4427_v40 = vpop.f32.mrf.mxu0  ;;  %v4461_v41 = vpop.f32.mrf.mxu1 }
 0x190   : > { %1908 = vst.msk [vmem:[%s4841_s6 + $0x2e0] sm:$0xff] %vm655_vm1, %v1866_v38  ;;  %v1877_v43 = vadd.f32 %v4461_v41, %v4427_v40  ;;  %v1967_v47 = vsel %vm655_vm1, %v1866_v38, 0.0 }
 0x191   : > { %v1966_v44 = vadd.f32 %v1965_v42, %v1964_v39  ;;  %v1693_v45 = vpop.f32.mrf.mxu0  ;;  %v1868_v46 = vpop.f32.mrf.mxu1 }
 0x192   : > { %1911 = vst.msk [vmem:[%s4841_s6 + $0x2f8] sm:$0xff] %vm655_vm1, %v1877_v43  ;;  %v1869_v48 = vadd.f32 %v1868_v46, %v1693_v45  ;;  %v1973_v63 = vsel %vm655_vm1, %v1877_v43, 0.0 }
 0x193   : > { %v1968_v49 = vadd.f32 %v1967_v47, %v1966_v44  ;;  %v4466_v50 = vpop.f32.mrf.mxu0  ;;  %v4500_v52 = vpop.f32.mrf.mxu1 }
 0x194   : > { %1909 = vst.msk [vmem:[%s4841_s6 + $0x2e8] sm:$0xff] %vm655_vm1, %v1869_v48  ;;  %v1969_v53 = vsel %vm655_vm1, %v1869_v48, 0.0  ;;  %v2374_v54 = vadd.f32 %v4500_v52, %v4466_v50 }
 0x195   : > { %v1970_v55 = vadd.f32 %v1969_v53, %v1968_v49  ;;  %v2190_v56 = vpop.f32.mrf.mxu0  ;;  %v2365_v57 = vpop.f32.mrf.mxu1 }
 0x196   : > { %2494 = vst.msk [vmem:[%s4841_s6 + $0x310] sm:$0xff] %vm655_vm1, %v2374_v54  ;;  %v2366_v59 = vadd.f32 %v2365_v57, %v2190_v56  ;;  %v2527_v16 = vsel %vm655_vm1, %v2374_v54, 0.0 }
 0x197   : > { %v1972_v60 = vadd.f32 %v1971_v58, %v1970_v55  ;;  %v4467_v61 = vpop.f32.mrf.mxu0  ;;  %v4501_v62 = vpop.f32.mrf.mxu1 }
 0x198   : > { %2492 = vst.msk [vmem:[%s4841_s6 + $0x300] sm:$0xff] %vm655_vm1, %v2366_v59  ;;  %v2377_v0 = vadd.f32 %v4501_v62, %v4467_v61  ;;  %v2524_v9 = vsel %vm655_vm1, %v2366_v59, 0.0 }
 0x199   : > { %v1974_v1 = vadd.f32 %v1973_v63, %v1972_v60  ;;  %v2193_v3 = vpop.f32.mrf.mxu0  ;;  %v2368_v4 = vpop.f32.mrf.mxu1 }
 0x19a   : > { %2495 = vst.msk [vmem:[%s4841_s6 + $0x318] sm:$0xff] %vm655_vm1, %v2377_v0  ;;  %v2369_v5 = vadd.f32 %v2368_v4, %v2193_v3  ;;  %v2529_v22 = vsel %vm655_vm1, %v2377_v0, 0.0 }
 0x19b   : > { %v1975_v6 = vrot.slane %v1974_v1, 4  ;;  %v4470_v7 = vpop.f32.mrf.mxu0  ;;  %v4504_v8 = vpop.f32.mrf.mxu1 }
 0x19c   : > { %2493 = vst.msk [vmem:[%s4841_s6 + $0x308] sm:$0xff] %vm655_vm1, %v2369_v5  ;;  %v2525_v10 = vsel %vm655_vm1, %v2369_v5, 0.0  ;;  %v2390_v11 = vadd.f32 %v4504_v8, %v4470_v7 }
 0x19d   : > { %v1976_v12 = vadd.f32 %v1975_v6, %v1974_v1  ;;  %v2526_v13 = vadd.f32 %v2525_v10, %v2524_v9  ;;  %v2206_v14 = vpop.f32.mrf.mxu0  ;;  %v2381_v15 = vpop.f32.mrf.mxu1 }
 0x19e   : > { %2498 = vst.msk [vmem:[%s4841_s6 + $0x330] sm:$0xff] %vm655_vm1, %v2390_v11  ;;  %v2382_v17 = vadd.f32 %v2381_v15, %v2206_v14  ;;  %v2535_v39 = vsel %vm655_vm1, %v2390_v11, 0.0 }
 0x19f   : > { %v1977_v18 = vrot.slane %v1976_v12, 2  ;;  %v2528_v19 = vadd.f32 %v2527_v16, %v2526_v13  ;;  %v4471_v20 = vpop.f32.mrf.mxu0  ;;  %v4505_v21 = vpop.f32.mrf.mxu1 }
 0x1a0   : > { %2496 = vst.msk [vmem:[%s4841_s6 + $0x320] sm:$0xff] %vm655_vm1, %v2382_v17  ;;  %v2393_v51 = vadd.f32 %v4505_v21, %v4471_v20  ;;  %v2531_v27 = vsel %vm655_vm1, %v2382_v17, 0.0 }
 0x1a1   : > { %v1978_v23 = vadd.f32 %v1977_v18, %v1976_v12  ;;  %v2530_v24 = vadd.f32 %v2529_v22, %v2528_v19  ;;  %v2209_v25 = vpop.f32.mrf.mxu0  ;;  %v2384_v26 = vpop.f32.mrf.mxu1 }
 0x1a2   : > { %2499 = vst.msk [vmem:[%s4841_s6 + $0x338] sm:$0xff] %vm655_vm1, %v2393_v51  ;;  %v2385_v28 = vadd.f32 %v2384_v26, %v2209_v25  ;;  %v2537_v45 = vsel %vm655_vm1, %v2393_v51, 0.0 }
 0x1a3   : > { %v1979_v29 = vrot.slane %v1978_v23, 1  ;;  %v2532_v30 = vadd.f32 %v2531_v27, %v2530_v24  ;;  %v4474_v31 = vpop.f32.mrf.mxu0  ;;  %v4508_v32 = vpop.f32.mrf.mxu1 }
 0x1a4   : > { %2497 = vst.msk [vmem:[%s4841_s6 + $0x328] sm:$0xff] %vm655_vm1, %v2385_v28  ;;  %v2533_v33 = vsel %vm655_vm1, %v2385_v28, 0.0  ;;  %v2406_v34 = vadd.f32 %v4508_v32, %v4474_v31 }
 0x1a5   : > { %v1980_v35 = vadd.f32 %v1979_v29, %v1978_v23  ;;  %v2534_v36 = vadd.f32 %v2533_v33, %v2532_v30  ;;  %v2222_v37 = vpop.f32.mrf.mxu0  ;;  %v2397_v38 = vpop.f32.mrf.mxu1 }
 0x1a6   : > { %2502 = vst.msk [vmem:[%s4841_s6 + $0x350] sm:$0xff] %vm655_vm1, %v2406_v34  ;;  %v2398_v40 = vadd.f32 %v2397_v38, %v2222_v37  ;;  %v2543_v60 = vsel %vm655_vm1, %v2406_v34, 0.0 }
 0x1a7   : > { %v5206_v41 = vadd.f32 %v1980_v35, %v5107_v2  ;;  %v2536_v42 = vadd.f32 %v2535_v39, %v2534_v36  ;;  %v4475_v43 = vpop.f32.mrf.mxu0  ;;  %v4509_v44 = vpop.f32.mrf.mxu1 }
 0x1a8   : > { %2500 = vst.msk [vmem:[%s4841_s6 + $0x340] sm:$0xff] %vm655_vm1, %v2398_v40  ;;  %v2409_v46 = vadd.f32 %v4509_v44, %v4475_v43  ;;  %v2539_v50 = vsel %vm655_vm1, %v2398_v40, 0.0 }
 0x1a9   : > { %v2538_v47 = vadd.f32 %v2537_v45, %v2536_v42  ;;  %v2225_v48 = vpop.f32.mrf.mxu0  ;;  %v2400_v49 = vpop.f32.mrf.mxu1 }
 0x1aa   : > { %2503 = vst.msk [vmem:[%s4841_s6 + $0x358] sm:$0xff] %vm655_vm1, %v2409_v46  ;;  %v2401_v52 = vadd.f32 %v2400_v49, %v2225_v48  ;;  %v2545_v1 = vsel %vm655_vm1, %v2409_v46, 0.0 }
 0x1ab   : > { %v2540_v2 = vadd.f32 %v2539_v50, %v2538_v47  ;;  %v4478_v53 = vpop.f32.mrf.mxu0  ;;  %v4512_v54 = vpop.f32.mrf.mxu1 }
 0x1ac   : > { %2501 = vst.msk [vmem:[%s4841_s6 + $0x348] sm:$0xff] %vm655_vm1, %v2401_v52  ;;  %v2541_v55 = vsel %vm655_vm1, %v2401_v52, 0.0  ;;  %v2422_v56 = vadd.f32 %v4512_v54, %v4478_v53 }
 0x1ad   : > { %v2542_v57 = vadd.f32 %v2541_v55, %v2540_v2  ;;  %v2238_v58 = vpop.f32.mrf.mxu0  ;;  %v2413_v59 = vpop.f32.mrf.mxu1 }
 0x1ae   : > { %2506 = vst.msk [vmem:[%s4841_s6 + $0x370] sm:$0xff] %vm655_vm1, %v2422_v56  ;;  %v2414_v61 = vadd.f32 %v2413_v59, %v2238_v58  ;;  %v2551_v17 = vsel %vm655_vm1, %v2422_v56, 0.0 }
 0x1af   : > { %v2544_v62 = vadd.f32 %v2543_v60, %v2542_v57  ;;  %v4479_v63 = vpop.f32.mrf.mxu0  ;;  %v4513_v0 = vpop.f32.mrf.mxu1 }
 0x1b0   : > { %2504 = vst.msk [vmem:[%s4841_s6 + $0x360] sm:$0xff] %vm655_vm1, %v2414_v61  ;;  %v2425_v3 = vadd.f32 %v4513_v0, %v4479_v63  ;;  %v2547_v7 = vsel %vm655_vm1, %v2414_v61, 0.0 }
 0x1b1   : > { %v2546_v4 = vadd.f32 %v2545_v1, %v2544_v62  ;;  %v2241_v5 = vpop.f32.mrf.mxu0  ;;  %v2416_v6 = vpop.f32.mrf.mxu1 }
 0x1b2   : > { %2507 = vst.msk [vmem:[%s4841_s6 + $0x378] sm:$0xff] %vm655_vm1, %v2425_v3  ;;  %v2417_v8 = vadd.f32 %v2416_v6, %v2241_v5  ;;  %v2553_v22 = vsel %vm655_vm1, %v2425_v3, 0.0 }
 0x1b3   : > { %v2548_v9 = vadd.f32 %v2547_v7, %v2546_v4  ;;  %v4482_v10 = vpop.f32.mrf.mxu0  ;;  %v4516_v11 = vpop.f32.mrf.mxu1 }
 0x1b4   : > { %2505 = vst.msk [vmem:[%s4841_s6 + $0x368] sm:$0xff] %vm655_vm1, %v2417_v8  ;;  %v2549_v12 = vsel %vm655_vm1, %v2417_v8, 0.0  ;;  %v2438_v13 = vadd.f32 %v4516_v11, %v4482_v10 }
 0x1b5   : > { %v2550_v14 = vadd.f32 %v2549_v12, %v2548_v9  ;;  %v2254_v15 = vpop.f32.mrf.mxu0  ;;  %v2429_v16 = vpop.f32.mrf.mxu1 }
 0x1b6   : > { %2510 = vst.msk [vmem:[%s4841_s6 + $0x390] sm:$0xff] %vm655_vm1, %v2438_v13  ;;  %v2430_v18 = vadd.f32 %v2429_v16, %v2254_v15  ;;  %v2559_v36 = vsel %vm655_vm1, %v2438_v13, 0.0 }
 0x1b7   : > { %v2552_v19 = vadd.f32 %v2551_v17, %v2550_v14  ;;  %v4483_v20 = vpop.f32.mrf.mxu0  ;;  %v4517_v21 = vpop.f32.mrf.mxu1 }
 0x1b8   : > { %2508 = vst.msk [vmem:[%s4841_s6 + $0x380] sm:$0xff] %vm655_vm1, %v2430_v18  ;;  %v2441_v51 = vadd.f32 %v4517_v21, %v4483_v20  ;;  %v2555_v26 = vsel %vm655_vm1, %v2430_v18, 0.0 }
 0x1b9   : > { %v2554_v23 = vadd.f32 %v2553_v22, %v2552_v19  ;;  %v2257_v24 = vpop.f32.mrf.mxu0  ;;  %v2432_v25 = vpop.f32.mrf.mxu1 }
 0x1ba   : > { %2511 = vst.msk [vmem:[%s4841_s6 + $0x398] sm:$0xff] %vm655_vm1, %v2441_v51  ;;  %v2433_v27 = vadd.f32 %v2432_v25, %v2257_v24  ;;  %v2561_v42 = vsel %vm655_vm1, %v2441_v51, 0.0 }
 0x1bb   : > { %v2556_v28 = vadd.f32 %v2555_v26, %v2554_v23  ;;  %v4486_v29 = vpop.f32.mrf.mxu0  ;;  %v4520_v30 = vpop.f32.mrf.mxu1 }
 0x1bc   : > { %2509 = vst.msk [vmem:[%s4841_s6 + $0x388] sm:$0xff] %vm655_vm1, %v2433_v27  ;;  %v2557_v31 = vsel %vm655_vm1, %v2433_v27, 0.0  ;;  %v2454_v32 = vadd.f32 %v4520_v30, %v4486_v29 }
 0x1bd   : > { %v2558_v33 = vadd.f32 %v2557_v31, %v2556_v28  ;;  %v2270_v34 = vpop.f32.mrf.mxu0  ;;  %v2445_v35 = vpop.f32.mrf.mxu1 }
 0x1be   : > { %2514 = vst.msk [vmem:[%s4841_s6 + $0x3b0] sm:$0xff] %vm655_vm1, %v2454_v32  ;;  %v2446_v37 = vadd.f32 %v2445_v35, %v2270_v34  ;;  %v2567_v57 = vsel %vm655_vm1, %v2454_v32, 0.0 }
 0x1bf   : > { %v2560_v38 = vadd.f32 %v2559_v36, %v2558_v33  ;;  %v4487_v39 = vpop.f32.mrf.mxu0  ;;  %v4521_v40 = vpop.f32.mrf.mxu1 }
 0x1c0   : > { %2512 = vst.msk [vmem:[%s4841_s6 + $0x3a0] sm:$0xff] %vm655_vm1, %v2446_v37  ;;  %v2457_v43 = vadd.f32 %v4521_v40, %v4487_v39  ;;  %v2563_v47 = vsel %vm655_vm1, %v2446_v37, 0.0  ;;  %v2595_v40 = vld [vmem:[%s4841_s6] sm:$0xff] }
 0x1c1   : > { %v2562_v44 = vadd.f32 %v2561_v42, %v2560_v38  ;;  %v2273_v45 = vpop.f32.mrf.mxu0  ;;  %v2448_v46 = vpop.f32.mrf.mxu1  ;;  %v2596_v42 = vld [vmem:[%s4841_s6 + $0x8] sm:$0xff] }
 0x1c2   : > { %2515 = vst.msk [vmem:[%s4841_s6 + $0x3b8] sm:$0xff] %vm655_vm1, %v2457_v43  ;;  %v2449_v48 = vadd.f32 %v2448_v46, %v2273_v45  ;;  %v2569_v62 = vsel %vm655_vm1, %v2457_v43, 0.0 }
 0x1c3   : > { %v2564_v49 = vadd.f32 %v2563_v47, %v2562_v44  ;;  %v4490_v50 = vpop.f32.mrf.mxu0  ;;  %v4524_v52 = vpop.f32.mrf.mxu1  ;;  %v2597_v47 = vld [vmem:[%s4841_s6 + $0x10] sm:$0xff] }
 0x1c4   : > { %2513 = vst.msk [vmem:[%s4841_s6 + $0x3a8] sm:$0xff] %vm655_vm1, %v2449_v48  ;;  %v2565_v2 = vsel %vm655_vm1, %v2449_v48, 0.0  ;;  %v2470_v53 = vadd.f32 %v4524_v52, %v4490_v50  ;;  %v2598_v50 = vld [vmem:[%s4841_s6 + $0x18] sm:$0xff] }
 0x1c5   : > { %v2566_v54 = vadd.f32 %v2565_v2, %v2564_v49  ;;  %v2286_v55 = vpop.f32.mrf.mxu0  ;;  %v2461_v56 = vpop.f32.mrf.mxu1 }
 0x1c6   : > { %2518 = vst.msk [vmem:[%s4841_s6 + $0x3d0] sm:$0xff] %vm655_vm1, %v2470_v53  ;;  %v2462_v58 = vadd.f32 %v2461_v56, %v2286_v55  ;;  %v2575_v14 = vsel %vm655_vm1, %v2470_v53, 0.0 }
 0x1c7   : > { %v2568_v59 = vadd.f32 %v2567_v57, %v2566_v54  ;;  %v4491_v60 = vpop.f32.mrf.mxu0  ;;  %v4525_v61 = vpop.f32.mrf.mxu1  ;;  %v2599_v54 = vld [vmem:[%s4841_s6 + $0x20] sm:$0xff] }
 0x1c8   : > { %2516 = vst.msk [vmem:[%s4841_s6 + $0x3c0] sm:$0xff] %vm655_vm1, %v2462_v58  ;;  %v2473_v63 = vadd.f32 %v4525_v61, %v4491_v60  ;;  %v2571_v4 = vsel %vm655_vm1, %v2462_v58, 0.0 }
 0x1c9   : > { %v2570_v0 = vadd.f32 %v2569_v62, %v2568_v59  ;;  %v2289_v1 = vpop.f32.mrf.mxu0  ;;  %v2464_v3 = vpop.f32.mrf.mxu1  ;;  %v2600_v59 = vld [vmem:[%s4841_s6 + $0x28] sm:$0xff] }
 0x1ca   : > { %2519 = vst.msk [vmem:[%s4841_s6 + $0x3d8] sm:$0xff] %vm655_vm1, %v2473_v63  ;;  %v2465_v5 = vadd.f32 %v2464_v3, %v2289_v1  ;;  %v2577_v19 = vsel %vm655_vm1, %v2473_v63, 0.0 }
 0x1cb   : > { %v2572_v6 = vadd.f32 %v2571_v4, %v2570_v0  ;;  %v4494_v7 = vpop.f32.mrf.mxu0  ;;  %v4528_v8 = vpop.f32.mrf.mxu1  ;;  %v2601_v0 = vld [vmem:[%s4841_s6 + $0x30] sm:$0xff] }
 0x1cc   : > { %2517 = vst.msk [vmem:[%s4841_s6 + $0x3c8] sm:$0xff] %vm655_vm1, %v2465_v5  ;;  %v2573_v9 = vsel %vm655_vm1, %v2465_v5, 0.0  ;;  %v2486_v10 = vadd.f32 %v4528_v8, %v4494_v7  ;;  %v2761_v5 = vld [vmem:[%s4841_s6 + $0x100] sm:$0xff] }
 0x1cd   : > { %v2574_v11 = vadd.f32 %v2573_v9, %v2572_v6  ;;  %v2302_v12 = vpop.f32.mrf.mxu0  ;;  %v2477_v13 = vpop.f32.mrf.mxu1  ;;  %v2762_v6 = vld [vmem:[%s4841_s6 + $0x108] sm:$0xff] }
 0x1ce   : > { %2522 = vst.msk [vmem:[%s4841_s6 + $0x3f0] sm:$0xff] %vm655_vm1, %v2486_v10  ;;  %v2478_v15 = vadd.f32 %v2477_v13, %v2302_v12  ;;  %v2583_v28 = vsel %vm655_vm1, %v2486_v10, 0.0  ;;  %v2602_v10 = vld [vmem:[%s4841_s6 + $0x38] sm:$0xff] }
 0x1cf   : > { %v2576_v16 = vadd.f32 %v2575_v14, %v2574_v11  ;;  %v4495_v17 = vpop.f32.mrf.mxu0  ;;  %v4529_v18 = vpop.f32.mrf.mxu1  ;;  %v2763_v11 = vld [vmem:[%s4841_s6 + $0x110] sm:$0xff] }
 0x1d0   : > { %2520 = vst.msk [vmem:[%s4841_s6 + $0x3e0] sm:$0xff] %vm655_vm1, %v2478_v15  ;;  %v2489_v20 = vadd.f32 %v4529_v18, %v4495_v17  ;;  %v2579_v23 = vsel %vm655_vm1, %v2478_v15, 0.0  ;;  %v2603_v18 = vld [vmem:[%s4841_s6 + $0x40] sm:$0xff] }
 0x1d1   : > { %v2578_v21 = vadd.f32 %v2577_v19, %v2576_v16  ;;  %v2305_v22 = vpop.f32.mrf.mxu0  ;;  %v2480_v51 = vpop.f32.mrf.mxu1  ;;  %v2764_v16 = vld [vmem:[%s4841_s6 + $0x118] sm:$0xff] }
 0x1d2   : > { %2523 = vst.msk [vmem:[%s4841_s6 + $0x3f8] sm:$0xff] %vm655_vm1, %v2489_v20  ;;  %v2481_v24 = vadd.f32 %v2480_v51, %v2305_v22  ;;  %v2585_v30 = vsel %vm655_vm1, %v2489_v20, 0.0  ;;  %v2765_v22 = vld [vmem:[%s4841_s6 + $0x120] sm:$0xff] }
 0x1d3   : > { %v2580_v25 = vadd.f32 %v2579_v23, %v2578_v21  ;;  %v2604_v23 = vld [vmem:[%s4841_s6 + $0x48] sm:$0xff] }
 0x1d4   : > { %2521 = vst.msk [vmem:[%s4841_s6 + $0x3e8] sm:$0xff] %vm655_vm1, %v2481_v24  ;;  %v2581_v26 = vsel %vm655_vm1, %v2481_v24, 0.0 }
 0x1d5   : > { %v2582_v27 = vadd.f32 %v2581_v26, %v2580_v25 }
 0x1d7   : > { %v2584_v29 = vadd.f32 %v2583_v28, %v2582_v27  ;;  %v2766_v28 = vld [vmem:[%s4841_s6 + $0x128] sm:$0xff] }
 0x1d9   : > { %v2586_v31 = vadd.f32 %v2585_v30, %v2584_v29 }
 0x1db   : > { %v2587_v32 = vrot.slane %v2586_v31, 4 }
 0x1dd   : > { %v2588_v33 = vadd.f32 %v2587_v32, %v2586_v31  ;;  %v2605_v31 = vld [vmem:[%s4841_s6 + $0x50] sm:$0xff]  ;;  %v2606_v32 = vld [vmem:[%s4841_s6 + $0x58] sm:$0xff] }
 0x1df   : > { %v2589_v34 = vrot.slane %v2588_v33, 2 }
 0x1e1   : > { %v2590_v35 = vadd.f32 %v2589_v34, %v2588_v33 }
 0x1e3   : > { %v2591_v36 = vrot.slane %v2590_v35, 1 }
 0x1e5   : > { %v2592_v37 = vadd.f32 %v2591_v36, %v2590_v35 }
 0x1e7   : > { %v2593_v38 = vadd.f32 %v2592_v37, %v5206_v41  ;;  %v2767_v37 = vld [vmem:[%s4841_s6 + $0x130] sm:$0xff] }
 0x1e9   : > { %v5280_v39 = vmul.f32 0.0009765625, %v2593_v38 }
 0x1eb   : > { %v5285_v43 = vsub.f32 %v2595_v40, %v5280_v39  ;;  %v5288_v44 = vsub.f32 %v2596_v42, %v5280_v39  ;;  %v5296_v41 = vsub.f32 %v2597_v47, %v5280_v39  ;;  %v5302_v52 = vsub.f32 %v2598_v50, %v5280_v39  ;;  %v2608_v47 = vld [vmem:[%s4841_s6 + $0x68] sm:$0xff] }
 0x1ec   : > { %v5308_v55 = vsub.f32 %v2599_v54, %v5280_v39  ;;  %v5315_v60 = vsub.f32 %v2600_v59, %v5280_v39  ;;  %v5322_v1 = vsub.f32 %v2601_v0, %v5280_v39  ;;  %v5330_v8 = vsub.f32 %v2761_v5, %v5280_v39  ;;  %v2768_v54 = vld [vmem:[%s4841_s6 + $0x138] sm:$0xff]  ;;  %v2769_v5 = vld [vmem:[%s4841_s6 + $0x140] sm:$0xff] }
 0x1ed   : > { %v2659_v45 = vmul.f32 %v5285_v43, %v5285_v43  ;;  %v2660_v46 = vmul.f32 %v5288_v44, %v5288_v44  ;;  %v2661_v2 = vmul.f32 %v5296_v41, %v5296_v41  ;;  %v2662_v56 = vmul.f32 %v5302_v52, %v5302_v52 }
 0x1ee   : > { %v2663_v61 = vmul.f32 %v5308_v55, %v5308_v55  ;;  %v2664_v3 = vmul.f32 %v5315_v60, %v5315_v60  ;;  %6997 = vst [vmem:[#allocation2_spill] sm:$0xff] %v5330_v8  ;;  %v5333_v9 = vsub.f32 %v2762_v6, %v5280_v39  ;;  %v5338_v12 = vsub.f32 %v2602_v10, %v5280_v39 }
 0x1ef   : > { %v2691_v48 = vsel %vm655_vm1, %v2659_v45, 0.0  ;;  %v2692_v49 = vsel %vm655_vm1, %v2660_v46, 0.0  ;;  %v2694_v57 = vsel %vm655_vm1, %v2661_v2, 0.0  ;;  %v2696_v62 = vsel %vm655_vm1, %v2662_v56, 0.0  ;;  %v2607_v46 = vld [vmem:[%s4841_s6 + $0x60] sm:$0xff] }
 0x1f0   : > { %v2693_v53 = vadd.f32 %v2692_v49, %v2691_v48  ;;  %v2698_v4 = vsel %vm655_vm1, %v2663_v61, 0.0  ;;  %6998 = vst [vmem:[#allocation3_spill] sm:$0xff] %v5333_v9  ;;  %v2665_v13 = vmul.f32 %v5322_v1, %v5322_v1  ;;  %v2700_v14 = vsel %vm655_vm1, %v2664_v3, 0.0  ;;  %v2610_v61 = vld [vmem:[%s4841_s6 + $0x78] sm:$0xff] }
 0x1f1   : > { %v5344_v15 = vsub.f32 %v2763_v11, %v5280_v39  ;;  %v5349_v19 = vsub.f32 %v2764_v16, %v5280_v39  ;;  %v2825_v20 = vmul.f32 %v5330_v8, %v5330_v8  ;;  %v2826_v21 = vmul.f32 %v5333_v9, %v5333_v9  ;;  %v2774_v8 = vld [vmem:[%s4841_s6 + $0x168] sm:$0xff] }
 0x1f2   : > { %v2695_v58 = vadd.f32 %v2694_v57, %v2693_v53  ;;  %v5357_v51 = vsub.f32 %v2603_v18, %v5280_v39  ;;  %v2666_v24 = vmul.f32 %v5338_v12, %v5338_v12  ;;  %v2702_v25 = vsel %vm655_vm1, %v2665_v13, 0.0  ;;  %v2609_v53 = vld [vmem:[%s4841_s6 + $0x70] sm:$0xff] }
 0x1f3   : > { %6999 = vst [vmem:[#allocation4_spill] sm:$0xff] %v5344_v15  ;;  %7000 = vst [vmem:[#allocation5_spill] sm:$0xff] %v5349_v19  ;;  %v5364_v26 = vsub.f32 %v2765_v22, %v5280_v39  ;;  %v2827_v27 = vmul.f32 %v5344_v15, %v5344_v15  ;;  %v5370_v29 = vsub.f32 %v2604_v23, %v5280_v39  ;;  %v2857_v35 = vsel %vm655_vm1, %v2825_v20, 0.0  ;;  %v2613_v13 = vld [vmem:[%s4841_s6 + $0x90] sm:$0xff]  ;;  %v2615_v22 = vld [vmem:[%s4841_s6 + $0xa0] sm:$0xff] }
 0x1f4   : > { %v2697_v63 = vadd.f32 %v2696_v62, %v2695_v58  ;;  %v5375_v33 = vsub.f32 %v2766_v28, %v5280_v39  ;;  %v2828_v34 = vmul.f32 %v5349_v19, %v5349_v19  ;;  %v2858_v36 = vsel %vm655_vm1, %v2826_v21, 0.0  ;;  %v2611_v62 = vld [vmem:[%s4841_s6 + $0x80] sm:$0xff]  ;;  %v2614_v21 = vld [vmem:[%s4841_s6 + $0x98] sm:$0xff]  ;;  %v2617_v28 = vld [vmem:[%s4841_s6 + $0xb0] sm:$0xff] }
 0x1f5   : > { %7001 = vst [vmem:[#allocation6_spill] sm:$0xff] %v5364_v26  ;;  %v5383_v38 = vsub.f32 %v2605_v31, %v5280_v39  ;;  %v5386_v40 = vsub.f32 %v2606_v32, %v5280_v39  ;;  %v2667_v42 = vmul.f32 %v5357_v51, %v5357_v51  ;;  %v2859_v45 = vadd.f32 %v2858_v36, %v2857_v35  ;;  %v2770_v31 = vld [vmem:[%s4841_s6 + $0x148] sm:$0xff]  ;;  %v2927_v19 = vld [vmem:[%s4841_s6 + $0x200] sm:$0xff] }
 0x1f6   : > { %v2699_v7 = vadd.f32 %v2698_v4, %v2697_v63  ;;  %7002 = vst [vmem:[#allocation7_spill] sm:$0xff] %v5375_v33  ;;  %v2704_v48 = vsel %vm655_vm1, %v2666_v24, 0.0  ;;  %v5394_v49 = vsub.f32 %v2767_v37, %v5280_v39  ;;  %v2829_v50 = vmul.f32 %v5364_v26, %v5364_v26 }
 0x1f7   : > { %v2860_v2 = vsel %vm655_vm1, %v2827_v27, 0.0  ;;  %v5402_v56 = vsub.f32 %v2607_v46, %v5280_v39  ;;  %v5405_v57 = vsub.f32 %v2608_v47, %v5280_v39  ;;  %v5410_v63 = vsub.f32 %v2609_v53, %v5280_v39  ;;  %v2618_v47 = vld [vmem:[%s4841_s6 + $0xb8] sm:$0xff] }
 0x1f8   : > { %v2701_v17 = vadd.f32 %v2700_v14, %v2699_v7  ;;  %7003 = vst [vmem:[#allocation8_spill] sm:$0xff] %v5394_v49  ;;  %v2861_v59 = vadd.f32 %v2860_v2, %v2859_v45  ;;  %v5413_v0 = vsub.f32 %v2768_v54, %v5280_v39  ;;  %v2830_v3 = vmul.f32 %v5375_v33, %v5375_v33  ;;  %v2612_v14 = vld [vmem:[%s4841_s6 + $0x88] sm:$0xff] }
 0x1f9   : > { %v2862_v4 = vsel %vm655_vm1, %v2828_v34, 0.0  ;;  %v5420_v6 = vsub.f32 %v2610_v61, %v5280_v39  ;;  %v5423_v7 = vsub.f32 %v2611_v62, %v5280_v39  ;;  %v2668_v10 = vmul.f32 %v5370_v29, %v5370_v29  ;;  %v2620_v61 = vld [vmem:[%s4841_s6 + $0xc8] sm:$0xff] }
 0x1fa   : > { %v2703_v30 = vadd.f32 %v2702_v25, %v2701_v17  ;;  %7004 = vst [vmem:[#allocation9_spill] sm:$0xff] %v5413_v0  ;;  %v2863_v11 = vadd.f32 %v2862_v4, %v2861_v59  ;;  %v2706_v16 = vsel %vm655_vm1, %v2667_v42, 0.0  ;;  %v5431_v17 = vsub.f32 %v2769_v5, %v5280_v39  ;;  %v2622_v59 = vld [vmem:[%s4841_s6 + $0xd8] sm:$0xff] }
 0x1fb   : > { %v2831_v18 = vmul.f32 %v5394_v49, %v5394_v49  ;;  %v2864_v20 = vsel %vm655_vm1, %v2829_v50, 0.0  ;;  %v5439_v23 = vsub.f32 %v2612_v14, %v5280_v39  ;;  %v5442_v24 = vsub.f32 %v2613_v13, %v5280_v39 }
 0x1fc   : > { %v2705_v58 = vadd.f32 %v2704_v48, %v2703_v30  ;;  %7005 = vst [vmem:[#allocation10_spill] sm:$0xff] %v5431_v17  ;;  %v2865_v27 = vadd.f32 %v2864_v20, %v2863_v11  ;;  %v2616_v30 = vld [vmem:[%s4841_s6 + $0xa8] sm:$0xff]  ;;  %v5448_v32 = vsub.f32 %v2614_v21, %v5280_v39  ;;  %v5451_v34 = vsub.f32 %v2615_v22, %v5280_v39  ;;  %v2619_v48 = vld [vmem:[%s4841_s6 + $0xc0] sm:$0xff]  ;;  %v2771_v11 = vld [vmem:[%s4841_s6 + $0x150] sm:$0xff] }
 0x1fd   : > { %7006 = vst [vmem:[#allocation11_spill] sm:$0xff] %v5442_v24  ;;  %v2832_v35 = vmul.f32 %v5413_v0, %v5413_v0  ;;  %v2866_v36 = vsel %vm655_vm1, %v2830_v3, 0.0  ;;  %v5457_v37 = vsub.f32 %v2616_v30, %v5280_v39  ;;  %v5460_v42 = vsub.f32 %v2617_v28, %v5280_v39  ;;  %v2624_v20 = vld [vmem:[%s4841_s6 + $0xe8] sm:$0xff]  ;;  %v2625_v28 = vld [vmem:[%s4841_s6 + $0xf0] sm:$0xff]  ;;  %v2626_v30 = vld [vmem:[%s4841_s6 + $0xf8] sm:$0xff] }
 0x1fe   : > { %v2707_v25 = vadd.f32 %v2706_v16, %v2705_v58  ;;  %7007 = vst [vmem:[#allocation12_spill] sm:$0xff] %v5448_v32  ;;  %7008 = vst [vmem:[#allocation13_spill] sm:$0xff] %v5451_v34  ;;  %v5463_v45 = vsub.f32 %v2770_v31, %v5280_v39  ;;  %v2867_v46 = vadd.f32 %v2866_v36, %v2865_v27  ;;  %v2708_v2 = vsel %vm655_vm1, %v2668_v10, 0.0  ;;  %v2621_v58 = vld [vmem:[%s4841_s6 + $0xd0] sm:$0xff]  ;;  %v2623_v10 = vld [vmem:[%s4841_s6 + $0xe0] sm:$0xff] }
 0x1ff   : > { %7009 = vst [vmem:[#allocation14_spill] sm:$0xff] %v5457_v37  ;;  %7010 = vst [vmem:[#allocation15_spill] sm:$0xff] %v5460_v42  ;;  %v2669_v50 = vmul.f32 %v5383_v38, %v5383_v38  ;;  %v2833_v53 = vmul.f32 %v5431_v17, %v5431_v17  ;;  %v2868_v54 = vsel %vm655_vm1, %v2831_v18, 0.0  ;;  %v5477_v62 = vsub.f32 %v2618_v47, %v5280_v39 }
 0x200   : > { %7011 = vst [vmem:[#allocation16_spill] sm:$0xff] %v5463_v45  ;;  %v5480_v3 = vsub.f32 %v2619_v48, %v5280_v39  ;;  %v2709_v4 = vadd.f32 %v2708_v2, %v2707_v25  ;;  %v2869_v5 = vadd.f32 %v2868_v54, %v2867_v46  ;;  %v5485_v13 = vsub.f32 %v2620_v61, %v5280_v39 }
 0x201   : > { %7012 = vst [vmem:[#allocation17_spill] sm:$0xff] %v5477_v62  ;;  %v5488_v14 = vsub.f32 %v2621_v58, %v5280_v39  ;;  %v5491_v16 = vsub.f32 %v2622_v59, %v5280_v39  ;;  %v2870_v18 = vsel %vm655_vm1, %v2832_v35, 0.0  ;;  %v5496_v21 = vsub.f32 %v2623_v10, %v5280_v39  ;;  %v2772_v58 = vld [vmem:[%s4841_s6 + $0x158] sm:$0xff] }
 0x202   : > { %7013 = vst [vmem:[#allocation18_spill] sm:$0xff] %v5480_v3  ;;  %7014 = vst [vmem:[#allocation19_spill] sm:$0xff] %v5485_v13  ;;  %v5499_v22 = vsub.f32 %v2771_v11, %v5280_v39  ;;  %v2834_v25 = vmul.f32 %v5463_v45, %v5463_v45  ;;  %v2871_v27 = vadd.f32 %v2870_v18, %v2869_v5  ;;  %v2710_v36 = vsel %vm655_vm1, %v2669_v50, 0.0 }
 0x203   : > { %7015 = vst [vmem:[#allocation20_spill] sm:$0xff] %v5488_v14  ;;  %7016 = vst [vmem:[#allocation21_spill] sm:$0xff] %v5491_v16  ;;  %v5506_v31 = vsub.f32 %v2624_v20, %v5280_v39  ;;  %v2670_v35 = vmul.f32 %v5386_v40, %v5386_v40  ;;  %v2872_v46 = vsel %vm655_vm1, %v2833_v53, 0.0  ;;  %v5513_v47 = vsub.f32 %v2625_v28, %v5280_v39 }
 0x204   : > { %7017 = vst [vmem:[#allocation22_spill] sm:$0xff] %v5496_v21  ;;  %7018 = vst [vmem:[#allocation23_spill] sm:$0xff] %v5499_v22  ;;  %v5516_v48 = vsub.f32 %v2626_v30, %v5280_v39  ;;  %v2711_v2 = vadd.f32 %v2710_v36, %v2709_v4  ;;  %v2873_v54 = vadd.f32 %v2872_v46, %v2871_v27  ;;  %v2874_v11 = vsel %vm655_vm1, %v2834_v25, 0.0 }
 0x205   : > { %7019 = vst [vmem:[#allocation24_spill] sm:$0xff] %v5506_v31  ;;  %7020 = vst [vmem:[#allocation25_spill] sm:$0xff] %v5513_v47  ;;  %v2671_v59 = vmul.f32 %v5402_v56, %v5402_v56  ;;  %v2672_v61 = vmul.f32 %v5405_v57, %v5405_v57  ;;  %v2673_v50 = vmul.f32 %v5410_v63, %v5410_v63  ;;  %v2712_v27 = vsel %vm655_vm1, %v2670_v35, 0.0 }
 0x206   : > { %7021 = vst [vmem:[#allocation26_spill] sm:$0xff] %v5516_v48  ;;  %v2674_v53 = vmul.f32 %v5420_v6, %v5420_v6  ;;  %v2675_v5 = vmul.f32 %v5423_v7, %v5423_v7  ;;  %v5530_v4 = vsub.f32 %v2772_v58, %v5280_v39  ;;  %v2835_v10 = vmul.f32 %v5499_v22, %v5499_v22  ;;  %v2773_v58 = vld [vmem:[%s4841_s6 + $0x160] sm:$0xff] }
 0x207   : > { %v2676_v18 = vmul.f32 %v5439_v23, %v5439_v23  ;;  %v2677_v20 = vmul.f32 %v5442_v24, %v5442_v24  ;;  %v2875_v28 = vadd.f32 %v2874_v11, %v2873_v54  ;;  %v2678_v30 = vmul.f32 %v5448_v32, %v5448_v32  ;;  %v2942_v32 = vld [vmem:[%s4841_s6 + $0x278] sm:$0xff] }
 0x208   : > { %7022 = vst [vmem:[#allocation27_spill] sm:$0xff] %v5530_v4  ;;  %v2679_v36 = vmul.f32 %v5451_v34, %v5451_v34  ;;  %v2680_v46 = vmul.f32 %v5457_v37, %v5457_v37  ;;  %v2713_v25 = vadd.f32 %v2712_v27, %v2711_v2  ;;  %v2681_v22 = vmul.f32 %v5460_v42, %v5460_v42  ;;  %v2940_v37 = vld [vmem:[%s4841_s6 + $0x268] sm:$0xff] }
 0x209   : > { %v2682_v35 = vmul.f32 %v5477_v62, %v5477_v62  ;;  %v2683_v54 = vmul.f32 %v5480_v3, %v5480_v3  ;;  %v2684_v11 = vmul.f32 %v5485_v13, %v5485_v13  ;;  %v2685_v45 = vmul.f32 %v5488_v14, %v5488_v14  ;;  %v2938_v62 = vld [vmem:[%s4841_s6 + $0x258] sm:$0xff] }
 0x20a   : > { %v5558_v17 = vsub.f32 %v2773_v58, %v5280_v39  ;;  %v2836_v2 = vmul.f32 %v5530_v4, %v5530_v4  ;;  %v2876_v27 = vsel %vm655_vm1, %v2835_v10, 0.0  ;;  %v5565_v0 = vmul.f32 %v5491_v16, %v5491_v16  ;;  %v2928_v58 = vld [vmem:[%s4841_s6 + $0x208] sm:$0xff] }
 0x20b   : > { %v5569_v49 = vmul.f32 %v5496_v21, %v5496_v21  ;;  %v2714_v33 = vsel %vm655_vm1, %v2671_v59, 0.0  ;;  %v2877_v26 = vadd.f32 %v2876_v27, %v2875_v28  ;;  %v2688_v15 = vmul.f32 %v5506_v31, %v5506_v31 }
 0x20c   : > { %7023 = vst [vmem:[#allocation28_spill] sm:$0xff] %v5558_v17  ;;  %v5578_v10 = vmul.f32 %v5513_v47, %v5513_v47  ;;  %v5582_v4 = vmul.f32 %v5516_v48, %v5516_v48  ;;  %v2715_v9 = vadd.f32 %v2714_v33, %v2713_v25  ;;  %v2716_v21 = vsel %vm655_vm1, %v2672_v61, 0.0  ;;  %v2929_v47 = vld [vmem:[%s4841_s6 + $0x210] sm:$0xff] }
 0x20d   : > { %v2718_v59 = vsel %vm655_vm1, %v2673_v50, 0.0  ;;  %v5588_v28 = vsub.f32 %v2927_v19, %v5280_v39  ;;  %v5591_v27 = vsub.f32 %v2928_v58, %v5280_v39  ;;  %v2720_v31 = vsel %vm655_vm1, %v2674_v53, 0.0  ;;  %v2930_v53 = vld [vmem:[%s4841_s6 + $0x218] sm:$0xff] }
 0x20e   : > { %v5596_v48 = vsub.f32 %v2774_v8, %v5280_v39  ;;  %v2837_v33 = vmul.f32 %v5558_v17, %v5558_v17  ;;  %v2878_v61 = vsel %vm655_vm1, %v2836_v2, 0.0  ;;  %v5602_v50 = vsel %vm655_vm1, %v2675_v5, 0.0  ;;  %v2775_v5 = vld [vmem:[%s4841_s6 + $0x170] sm:$0xff] }
 0x20f   : > { %7024 = vst [vmem:[#allocation29_spill] sm:$0xff] %v5588_v28  ;;  %7025 = vst [vmem:[#allocation30_spill] sm:$0xff] %v5591_v27  ;;  %v5605_v19 = vsel %vm655_vm1, %v2676_v18, 0.0  ;;  %v2879_v25 = vadd.f32 %v2878_v61, %v2877_v26  ;;  %v5608_v58 = vsub.f32 %v2929_v47, %v5280_v39  ;;  %v2717_v16 = vadd.f32 %v2716_v21, %v2715_v9  ;;  %v2931_v47 = vld [vmem:[%s4841_s6 + $0x220] sm:$0xff] }
 0x210   : > { %7026 = vst [vmem:[#allocation31_spill] sm:$0xff] %v5596_v48  ;;  %v5612_v8 = vsel %vm655_vm1, %v2677_v20, 0.0  ;;  %v5615_v17 = vsel %vm655_vm1, %v2678_v30, 0.0  ;;  %v5618_v2 = vsel %vm655_vm1, %v2679_v36, 0.0  ;;  %v5622_v18 = vsel %vm655_vm1, %v2680_v46, 0.0 }
 0x211   : > { %7027 = vst [vmem:[#allocation32_spill] sm:$0xff] %v5608_v58  ;;  %v5625_v26 = vsub.f32 %v2930_v53, %v5280_v39  ;;  %v2991_v9 = vmul.f32 %v5588_v28, %v5588_v28  ;;  %v2992_v21 = vmul.f32 %v5591_v27, %v5591_v27  ;;  %v5633_v20 = vsel %vm655_vm1, %v2681_v22, 0.0  ;;  %v2932_v27 = vld [vmem:[%s4841_s6 + $0x228] sm:$0xff] }
 0x212   : > { %v5636_v30 = vsub.f32 %v2775_v5, %v5280_v39  ;;  %v2838_v36 = vmul.f32 %v5596_v48, %v5596_v48  ;;  %v2880_v46 = vsel %vm655_vm1, %v2837_v33, 0.0  ;;  %v5642_v61 = vsel %vm655_vm1, %v2682_v35, 0.0  ;;  %v2776_v35 = vld [vmem:[%s4841_s6 + $0x178] sm:$0xff] }
 0x213   : > { %7028 = vst [vmem:[#allocation33_spill] sm:$0xff] %v5625_v26  ;;  %v2881_v53 = vadd.f32 %v2880_v46, %v2879_v25  ;;  %v5645_v28 = vsub.f32 %v2931_v47, %v5280_v39  ;;  %v2993_v22 = vmul.f32 %v5608_v58, %v5608_v58  ;;  %v2719_v14 = vadd.f32 %v2718_v59, %v2717_v16 }
 0x214   : > { %7029 = vst [vmem:[#allocation34_spill] sm:$0xff] %v5636_v30  ;;  %v5651_v5 = vsel %vm655_vm1, %v2683_v54, 0.0  ;;  %v5654_v48 = vsel %vm655_vm1, %v2684_v11, 0.0  ;;  %v5657_v33 = vsel %vm655_vm1, %v2685_v45, 0.0  ;;  %v5661_v25 = vsub.f32 %v2932_v27, %v5280_v39  ;;  %v2933_v54 = vld [vmem:[%s4841_s6 + $0x230] sm:$0xff] }
 0x215   : > { %7030 = vst [vmem:[#allocation35_spill] sm:$0xff] %v5645_v28  ;;  %v2994_v47 = vmul.f32 %v5625_v26, %v5625_v26  ;;  %v3023_v46 = vsel %vm655_vm1, %v2991_v9, 0.0  ;;  %v3024_v16 = vsel %vm655_vm1, %v2992_v21, 0.0  ;;  %v5669_v11 = vsub.f32 %v2776_v35, %v5280_v39  ;;  %v2934_v26 = vld [vmem:[%s4841_s6 + $0x238] sm:$0xff] }
 0x216   : > { %7031 = vst [vmem:[#allocation36_spill] sm:$0xff] %v5661_v25  ;;  %v2839_v45 = vmul.f32 %v5636_v30, %v5636_v30  ;;  %v2882_v59 = vsel %vm655_vm1, %v2838_v36, 0.0  ;;  %v3025_v27 = vadd.f32 %v3024_v16, %v3023_v46  ;;  %v5675_v13 = vsub.f32 %v2933_v54, %v5280_v39  ;;  %v2777_v16 = vld [vmem:[%s4841_s6 + $0x180] sm:$0xff] }
 0x217   : > { %7032 = vst [vmem:[#allocation37_spill] sm:$0xff] %v5669_v11  ;;  %v2883_v58 = vadd.f32 %v2882_v59, %v2881_v53  ;;  %v2995_v9 = vmul.f32 %v5645_v28, %v5645_v28  ;;  %v3026_v21 = vsel %vm655_vm1, %v2993_v22, 0.0  ;;  %v5683_v35 = vsel %vm655_vm1, %v5565_v0, 0.0  ;;  %v2935_v28 = vld [vmem:[%s4841_s6 + $0x240] sm:$0xff] }
 0x218   : > { %7033 = vst [vmem:[#allocation38_spill] sm:$0xff] %v5675_v13  ;;  %v5687_v36 = vsel %vm655_vm1, %v5569_v49, 0.0  ;;  %v5690_v53 = vsel %vm655_vm1, %v2688_v15, 0.0  ;;  %v3027_v46 = vadd.f32 %v3026_v21, %v3025_v27  ;;  %v2721_v54 = vadd.f32 %v2720_v31, %v2719_v14  ;;  %v2779_v14 = vld [vmem:[%s4841_s6 + $0x190] sm:$0xff]  ;;  %v2778_v31 = vld [vmem:[%s4841_s6 + $0x188] sm:$0xff] }
 0x219   : > { %v5694_v22 = vsub.f32 %v2934_v26, %v5280_v39  ;;  %v2996_v59 = vmul.f32 %v5661_v25, %v5661_v25  ;;  %v3028_v0 = vsel %vm655_vm1, %v2994_v47, 0.0  ;;  %v5701_v49 = vsub.f32 %v2777_v16, %v5280_v39  ;;  %v2936_v16 = vld [vmem:[%s4841_s6 + $0x248] sm:$0xff] }
 0x21a   : > { %v2840_v15 = vmul.f32 %v5669_v11, %v5669_v11  ;;  %v2884_v27 = vsel %vm655_vm1, %v2839_v45, 0.0  ;;  %v3029_v21 = vadd.f32 %v3028_v0, %v3027_v46  ;;  %v5709_v30 = vsub.f32 %v2935_v28, %v5280_v39  ;;  %v2780_v46 = vld [vmem:[%s4841_s6 + $0x198] sm:$0xff] }
 0x21b   : > { %7034 = vst [vmem:[#allocation39_spill] sm:$0xff] %v5694_v22  ;;  %7035 = vst [vmem:[#allocation40_spill] sm:$0xff] %v5701_v49  ;;  %v2885_v26 = vadd.f32 %v2884_v27, %v2883_v58  ;;  %v2997_v47 = vmul.f32 %v5675_v13, %v5675_v13  ;;  %v3030_v25 = vsel %vm655_vm1, %v2995_v9, 0.0  ;;  %v5717_v11 = vsel %vm655_vm1, %v5578_v10, 0.0  ;;  %v2937_v13 = vld [vmem:[%s4841_s6 + $0x250] sm:$0xff] }
 0x21c   : > { %7036 = vst [vmem:[#allocation41_spill] sm:$0xff] %v5709_v30  ;;  %v5720_v45 = vsub.f32 %v2778_v31, %v5280_v39  ;;  %v5723_v58 = vsub.f32 %v2779_v14, %v5280_v39  ;;  %v3031_v28 = vadd.f32 %v3030_v25, %v3029_v21  ;;  %v2723_v0 = vadd.f32 %v5602_v50, %v2721_v54  ;;  %v2783_v54 = vld [vmem:[%s4841_s6 + $0x1b0] sm:$0xff]  ;;  %v2781_v14 = vld [vmem:[%s4841_s6 + $0x1a0] sm:$0xff] }
 0x21d   : > { %v5728_v9 = vsub.f32 %v2936_v16, %v5280_v39  ;;  %v2998_v27 = vmul.f32 %v5694_v22, %v5694_v22  ;;  %v3032_v10 = vsel %vm655_vm1, %v2996_v59, 0.0  ;;  %v5735_v31 = vsub.f32 %v2780_v46, %v5280_v39  ;;  %v2782_v16 = vld [vmem:[%s4841_s6 + $0x1a8] sm:$0xff] }
 0x21e   : > { %7037 = vst [vmem:[#allocation42_spill] sm:$0xff] %v5720_v45  ;;  %v2841_v25 = vmul.f32 %v5701_v49, %v5701_v49  ;;  %v2886_v21 = vsel %vm655_vm1, %v2840_v15, 0.0  ;;  %v3033_v50 = vadd.f32 %v3032_v10, %v3031_v28  ;;  %v5744_v22 = vsub.f32 %v2937_v13, %v5280_v39  ;;  %v2784_v28 = vld [vmem:[%s4841_s6 + $0x1b8] sm:$0xff] }
 0x21f   : > { %7038 = vst [vmem:[#allocation43_spill] sm:$0xff] %v5728_v9  ;;  %7039 = vst [vmem:[#allocation44_spill] sm:$0xff] %v5735_v31  ;;  %v2887_v3 = vadd.f32 %v2886_v21, %v2885_v26  ;;  %v2999_v59 = vmul.f32 %v5709_v30, %v5709_v30  ;;  %v3034_v46 = vsel %vm655_vm1, %v2997_v47, 0.0  ;;  %v5751_v49 = vsub.f32 %v2781_v14, %v5280_v39  ;;  %v2939_v30 = vld [vmem:[%s4841_s6 + $0x260] sm:$0xff] }
 0x220   : > { %7040 = vst [vmem:[#allocation45_spill] sm:$0xff] %v5744_v22  ;;  %v5754_v15 = vsub.f32 %v2782_v16, %v5280_v39  ;;  %v5757_v26 = vsub.f32 %v2783_v54, %v5280_v39  ;;  %v3035_v13 = vadd.f32 %v3034_v46, %v3033_v50  ;;  %v2725_v10 = vadd.f32 %v5605_v19, %v2723_v0  ;;  %v2787_v0 = vld [vmem:[%s4841_s6 + $0x1d0] sm:$0xff]  ;;  %v2785_v46 = vld [vmem:[%s4841_s6 + $0x1c0] sm:$0xff] }
 0x221   : > { %7041 = vst [vmem:[#allocation46_spill] sm:$0xff] %v5751_v49  ;;  %v5762_v47 = vsub.f32 %v2938_v62, %v5280_v39  ;;  %v3000_v21 = vmul.f32 %v5728_v9, %v5728_v9  ;;  %v3036_v14 = vsel %vm655_vm1, %v2998_v27, 0.0  ;;  %v5769_v16 = vsub.f32 %v2784_v28, %v5280_v39  ;;  %v2786_v62 = vld [vmem:[%s4841_s6 + $0x1c8] sm:$0xff] }
 0x222   : > { %7042 = vst [vmem:[#allocation47_spill] sm:$0xff] %v5754_v15  ;;  %7043 = vst [vmem:[#allocation48_spill] sm:$0xff] %v5757_v26  ;;  %v2842_v50 = vmul.f32 %v5720_v45, %v5720_v45  ;;  %v2888_v54 = vsel %vm655_vm1, %v2841_v25, 0.0  ;;  %v3037_v19 = vadd.f32 %v3036_v14, %v3035_v13  ;;  %v5778_v9 = vsub.f32 %v2939_v30, %v5280_v39  ;;  %v2788_v13 = vld [vmem:[%s4841_s6 + $0x1d8] sm:$0xff] }
 0x223   : > { %7044 = vst [vmem:[#allocation49_spill] sm:$0xff] %v5762_v47  ;;  %7045 = vst [vmem:[#allocation50_spill] sm:$0xff] %v5769_v16  ;;  %v2889_v42 = vadd.f32 %v2888_v54, %v2887_v3  ;;  %v3001_v27 = vmul.f32 %v5744_v22, %v5744_v22  ;;  %v3038_v28 = vsel %vm655_vm1, %v2999_v59, 0.0  ;;  %v5785_v45 = vsub.f32 %v2785_v46, %v5280_v39  ;;  %v2941_v22 = vld [vmem:[%s4841_s6 + $0x270] sm:$0xff] }
 0x224   : > { %7046 = vst [vmem:[#allocation51_spill] sm:$0xff] %v5778_v9  ;;  %v5788_v25 = vsub.f32 %v2786_v62, %v5280_v39  ;;  %v5791_v3 = vsub.f32 %v2787_v0, %v5280_v39  ;;  %v3039_v30 = vadd.f32 %v3038_v28, %v3037_v19  ;;  %v2727_v14 = vadd.f32 %v5612_v8, %v2725_v10  ;;  %v2791_v10 = vld [vmem:[%s4841_s6 + $0x1f0] sm:$0xff]  ;;  %v2789_v28 = vld [vmem:[%s4841_s6 + $0x1e0] sm:$0xff] }
 0x225   : > { %7047 = vst [vmem:[#allocation52_spill] sm:$0xff] %v5785_v45  ;;  %v5796_v59 = vsub.f32 %v2940_v37, %v5280_v39  ;;  %v3002_v54 = vmul.f32 %v5762_v47, %v5762_v47  ;;  %v3040_v46 = vsel %vm655_vm1, %v3000_v21, 0.0  ;;  %v5803_v62 = vsub.f32 %v2788_v13, %v5280_v39  ;;  %v2790_v37 = vld [vmem:[%s4841_s6 + $0x1e8] sm:$0xff] }
 0x226   : > { %v2843_v19 = vmul.f32 %v5723_v58, %v5723_v58  ;;  %v2890_v0 = vsel %vm655_vm1, %v2842_v50, 0.0  ;;  %v3041_v8 = vadd.f32 %v3040_v46, %v3039_v30  ;;  %v5812_v47 = vsub.f32 %v2941_v22, %v5280_v39  ;;  %v2792_v46 = vld [vmem:[%s4841_s6 + $0x1f8] sm:$0xff] }
 0x227   : > { %7048 = vst [vmem:[#allocation53_spill] sm:$0xff] %v5796_v59  ;;  %v2891_v34 = vadd.f32 %v2890_v0, %v2889_v42  ;;  %v3003_v21 = vmul.f32 %v5778_v9, %v5778_v9  ;;  %v3042_v13 = vsel %vm655_vm1, %v3001_v27, 0.0  ;;  %v5819_v24 = vsub.f32 %v2789_v28, %v5280_v39  ;;  %v2943_v9 = vld [vmem:[%s4841_s6 + $0x280] sm:$0xff] }
 0x228   : > { %7049 = vst [vmem:[#allocation54_spill] sm:$0xff] %v5812_v47  ;;  %v5822_v50 = vsub.f32 %v2790_v37, %v5280_v39  ;;  %v5825_v30 = vsub.f32 %v2791_v10, %v5280_v39  ;;  %v3043_v42 = vadd.f32 %v3042_v13, %v3041_v8  ;;  %v2729_v22 = vadd.f32 %v5615_v17, %v2727_v14 }
 0x229   : > { %v5830_v0 = vsub.f32 %v2942_v32, %v5280_v39  ;;  %v3004_v27 = vmul.f32 %v5796_v59, %v5796_v59  ;;  %v3044_v28 = vsel %vm655_vm1, %v3002_v54, 0.0  ;;  %v5837_v37 = vsub.f32 %v2792_v46, %v5280_v39  ;;  %v2944_v59 = vld [vmem:[%s4841_s6 + $0x288] sm:$0xff] }
 0x22a   : > { %v2844_v10 = vmul.f32 %v5735_v31, %v5735_v31  ;;  %v2892_v8 = vsel %vm655_vm1, %v2843_v19, 0.0  ;;  %v3045_v17 = vadd.f32 %v3044_v28, %v3043_v42  ;;  %v5843_v32 = vsub.f32 %v2943_v9, %v5280_v39  ;;  %v2945_v9 = vld [vmem:[%s4841_s6 + $0x290] sm:$0xff] }
 0x22b   : > { %7050 = vst [vmem:[#allocation55_spill] sm:$0xff] %v5830_v0  ;;  %v2893_v14 = vadd.f32 %v2892_v8, %v2891_v34  ;;  %v3005_v13 = vmul.f32 %v5812_v47, %v5812_v47  ;;  %v3046_v54 = vsel %vm655_vm1, %v3003_v21, 0.0  ;;  %v2845_v46 = vmul.f32 %v5751_v49, %v5751_v49  ;;  %v3093_v47 = vld [vmem:[%s4841_s6 + $0x300] sm:$0xff]  ;;  %v2946_v49 = vld [vmem:[%s4841_s6 + $0x298] sm:$0xff] }
 0x22c   : > { %7051 = vst [vmem:[#allocation56_spill] sm:$0xff] %v5843_v32  ;;  %v2846_v31 = vmul.f32 %v5754_v15, %v5754_v15  ;;  %v2847_v19 = vmul.f32 %v5757_v26, %v5757_v26  ;;  %v3047_v34 = vadd.f32 %v3046_v54, %v3045_v17  ;;  %v2731_v42 = vadd.f32 %v5618_v2, %v2729_v22 }
 0x22d   : > { %v5858_v28 = vsub.f32 %v2944_v59, %v5280_v39  ;;  %v3006_v21 = vmul.f32 %v5830_v0, %v5830_v0  ;;  %v3048_v8 = vsel %vm655_vm1, %v3004_v27, 0.0  ;;  %v5866_v15 = vmul.f32 %v5769_v16, %v5769_v16  ;;  %v3094_v59 = vld [vmem:[%s4841_s6 + $0x308] sm:$0xff] }
 0x22e   : > { %v2894_v17 = vsel %vm655_vm1, %v2844_v10, 0.0  ;;  %v5870_v54 = vsub.f32 %v2945_v9, %v5280_v39  ;;  %v3049_v2 = vadd.f32 %v3048_v8, %v3047_v34  ;;  %v3007_v0 = vmul.f32 %v5843_v32, %v5843_v32  ;;  %v3095_v8 = vld [vmem:[%s4841_s6 + $0x310] sm:$0xff] }
 0x22f   : > { %7052 = vst [vmem:[#allocation57_spill] sm:$0xff] %v5858_v28  ;;  %v2895_v22 = vadd.f32 %v2894_v17, %v2893_v14  ;;  %v3050_v27 = vsel %vm655_vm1, %v3005_v13, 0.0  ;;  %v5877_v26 = vsub.f32 %v3093_v47, %v5280_v39  ;;  %v5882_v16 = vmul.f32 %v5785_v45, %v5785_v45  ;;  %v2947_v14 = vld [vmem:[%s4841_s6 + $0x2a0] sm:$0xff]  ;;  %v2948_v45 = vld [vmem:[%s4841_s6 + $0x2a8] sm:$0xff] }
 0x230   : > { %7053 = vst [vmem:[#allocation58_spill] sm:$0xff] %v5870_v54  ;;  %v2896_v10 = vsel %vm655_vm1, %v2845_v46, 0.0  ;;  %v3051_v9 = vadd.f32 %v3050_v27, %v3049_v2  ;;  %v5886_v34 = vsub.f32 %v3094_v59, %v5280_v39  ;;  %v2733_v13 = vadd.f32 %v5622_v18, %v2731_v42  ;;  %v3096_v18 = vld [vmem:[%s4841_s6 + $0x318] sm:$0xff] }
 0x231   : > { %7054 = vst [vmem:[#allocation59_spill] sm:$0xff] %v5877_v26  ;;  %v5892_v47 = vsub.f32 %v2946_v49, %v5280_v39  ;;  %v3008_v17 = vmul.f32 %v5858_v28, %v5858_v28  ;;  %v3052_v32 = vsel %vm655_vm1, %v3006_v21, 0.0  ;;  %v2898_v46 = vsel %vm655_vm1, %v2846_v31, 0.0 }
 0x232   : > { %7055 = vst [vmem:[#allocation60_spill] sm:$0xff] %v5886_v34  ;;  %v5899_v2 = vsub.f32 %v2947_v14, %v5280_v39  ;;  %v3053_v59 = vadd.f32 %v3052_v32, %v3051_v9  ;;  %v5902_v27 = vsub.f32 %v3095_v8, %v5280_v39  ;;  %v2897_v42 = vadd.f32 %v2896_v10, %v2895_v22  ;;  %v2949_v22 = vld [vmem:[%s4841_s6 + $0x2b0] sm:$0xff]  ;;  %v3097_v10 = vld [vmem:[%s4841_s6 + $0x320] sm:$0xff] }
 0x233   : > { %7056 = vst [vmem:[#allocation61_spill] sm:$0xff] %v5892_v47  ;;  %v3009_v49 = vmul.f32 %v5870_v54, %v5870_v54  ;;  %v3054_v28 = vsel %vm655_vm1, %v3007_v0, 0.0  ;;  %v3157_v21 = vmul.f32 %v5877_v26, %v5877_v26  ;;  %v2900_v31 = vsel %vm655_vm1, %v2847_v19, 0.0  ;;  %v2950_v54 = vld [vmem:[%s4841_s6 + $0x2b8] sm:$0xff] }
 0x234   : > { %7057 = vst [vmem:[#allocation62_spill] sm:$0xff] %v5899_v2  ;;  %7058 = vst [vmem:[#allocation63_spill] sm:$0xff] %v5902_v27  ;;  %v3055_v14 = vadd.f32 %v3054_v28, %v3053_v59  ;;  %v5913_v32 = vsub.f32 %v3096_v18, %v5280_v39  ;;  %v3158_v9 = vmul.f32 %v5886_v34, %v5886_v34  ;;  %v3056_v19 = vsel %vm655_vm1, %v3008_v17, 0.0 }
 0x235   : > { %v2735_v8 = vadd.f32 %v5633_v20, %v2733_v13  ;;  %v5921_v0 = vsub.f32 %v2948_v45, %v5280_v39  ;;  %v3010_v26 = vmul.f32 %v5892_v47, %v5892_v47  ;;  %v5927_v28 = vsub.f32 %v2949_v22, %v5280_v39  ;;  %v3098_v20 = vld [vmem:[%s4841_s6 + $0x328] sm:$0xff] }
 0x236   : > { %7059 = vst [vmem:[#allocation64_spill] sm:$0xff] %v5913_v32  ;;  %v3057_v59 = vadd.f32 %v3056_v19, %v3055_v14  ;;  %v5930_v18 = vsub.f32 %v3097_v10, %v5280_v39  ;;  %v3159_v34 = vmul.f32 %v5902_v27, %v5902_v27  ;;  %v2899_v13 = vadd.f32 %v2898_v46, %v2897_v42  ;;  %v3099_v27 = vld [vmem:[%s4841_s6 + $0x330] sm:$0xff] }
 0x237   : > { %7060 = vst [vmem:[#allocation65_spill] sm:$0xff] %v5921_v0  ;;  %v3011_v45 = vmul.f32 %v5899_v2, %v5899_v2  ;;  %v3058_v47 = vsel %vm655_vm1, %v3009_v49, 0.0  ;;  %v3189_v17 = vsel %vm655_vm1, %v3157_v21, 0.0  ;;  %v5941_v14 = vsub.f32 %v3098_v20, %v5280_v39 }
 0x238   : > { %7061 = vst [vmem:[#allocation66_spill] sm:$0xff] %v5930_v18  ;;  %v3059_v22 = vadd.f32 %v3058_v47, %v3057_v59  ;;  %v3160_v10 = vmul.f32 %v5913_v32, %v5913_v32  ;;  %v3190_v19 = vsel %vm655_vm1, %v3158_v9, 0.0  ;;  %v5948_v46 = vsub.f32 %v2950_v54, %v5280_v39  ;;  %v3100_v32 = vld [vmem:[%s4841_s6 + $0x338] sm:$0xff] }
 0x239   : > { %7062 = vst [vmem:[#allocation67_spill] sm:$0xff] %v5941_v14  ;;  %v3012_v42 = vmul.f32 %v5921_v0, %v5921_v0  ;;  %v3060_v49 = vsel %vm655_vm1, %v3010_v26, 0.0  ;;  %v3191_v21 = vadd.f32 %v3190_v19, %v3189_v17  ;;  %v5954_v59 = vsub.f32 %v3099_v27, %v5280_v39 }
 0x23a   : > { %v3061_v47 = vadd.f32 %v3060_v49, %v3059_v22  ;;  %v3161_v20 = vmul.f32 %v5930_v18, %v5930_v18  ;;  %v3192_v9 = vsel %vm655_vm1, %v3159_v34, 0.0  ;;  %v2901_v54 = vadd.f32 %v2900_v31, %v2899_v13  ;;  %v3101_v49 = vld [vmem:[%s4841_s6 + $0x340] sm:$0xff] }
 0x23b   : > { %7063 = vst [vmem:[#allocation68_spill] sm:$0xff] %v5954_v59  ;;  %v3013_v2 = vmul.f32 %v5927_v28, %v5927_v28  ;;  %v3062_v0 = vsel %vm655_vm1, %v3011_v45, 0.0  ;;  %v3193_v26 = vadd.f32 %v3192_v9, %v3191_v21  ;;  %v5964_v22 = vsub.f32 %v3100_v32, %v5280_v39  ;;  %v3102_v9 = vld [vmem:[%s4841_s6 + $0x348] sm:$0xff] }
 0x23c   : > { %v3063_v17 = vadd.f32 %v3062_v0, %v3061_v47  ;;  %v3162_v27 = vmul.f32 %v5941_v14, %v5941_v14  ;;  %v3194_v19 = vsel %vm655_vm1, %v3160_v10, 0.0  ;;  %v2737_v34 = vadd.f32 %v5642_v61, %v2735_v8  ;;  %v2951_v0 = vld [vmem:[%s4841_s6 + $0x2c0] sm:$0xff] }
 0x23d   : > { %7064 = vst [vmem:[#allocation69_spill] sm:$0xff] %v5964_v22  ;;  %v2902_v31 = vsel %vm655_vm1, %v5866_v15, 0.0  ;;  %v3064_v13 = vsel %vm655_vm1, %v3012_v42, 0.0  ;;  %v3195_v45 = vadd.f32 %v3194_v19, %v3193_v26  ;;  %v5976_v32 = vsub.f32 %v3101_v49, %v5280_v39  ;;  %v2952_v49 = vld [vmem:[%s4841_s6 + $0x2c8] sm:$0xff] }
 0x23e   : > { %v3065_v21 = vadd.f32 %v3064_v13, %v3063_v17  ;;  %v3163_v47 = vmul.f32 %v5954_v59, %v5954_v59  ;;  %v3196_v10 = vsel %vm655_vm1, %v3161_v20, 0.0  ;;  %v2903_v61 = vadd.f32 %v2902_v31, %v2901_v54  ;;  %v3103_v54 = vld [vmem:[%s4841_s6 + $0x350] sm:$0xff] }
 0x23f   : > { %7065 = vst [vmem:[#allocation70_spill] sm:$0xff] %v5976_v32  ;;  %v5983_v8 = vsub.f32 %v2951_v0, %v5280_v39  ;;  %v3014_v15 = vmul.f32 %v5948_v46, %v5948_v46  ;;  %v3197_v42 = vadd.f32 %v3196_v10, %v3195_v45  ;;  %v3066_v26 = vsel %vm655_vm1, %v3013_v2, 0.0 }
 0x240   : > { %v5989_v17 = vsub.f32 %v3102_v9, %v5280_v39  ;;  %v3164_v19 = vmul.f32 %v5964_v22, %v5964_v22  ;;  %v3198_v20 = vsel %vm655_vm1, %v3162_v27, 0.0  ;;  %v2850_v31 = vmul.f32 %v5788_v25, %v5788_v25  ;;  %v3104_v22 = vld [vmem:[%s4841_s6 + $0x358] sm:$0xff] }
 0x241   : > { %v2904_v13 = vsel %vm655_vm1, %v5882_v16, 0.0  ;;  %v3067_v45 = vadd.f32 %v3066_v26, %v3065_v21  ;;  %v3199_v2 = vadd.f32 %v3198_v20, %v3197_v42  ;;  %v6001_v0 = vsub.f32 %v2952_v49, %v5280_v39 }
 0x242   : > { %7066 = vst [vmem:[#allocation71_spill] sm:$0xff] %v5989_v17  ;;  %v6004_v10 = vsub.f32 %v3103_v54, %v5280_v39  ;;  %v3165_v27 = vmul.f32 %v5976_v32, %v5976_v32  ;;  %v3200_v9 = vsel %vm655_vm1, %v3163_v47, 0.0  ;;  %v2739_v59 = vadd.f32 %v5651_v5, %v2737_v34  ;;  %v2953_v47 = vld [vmem:[%s4841_s6 + $0x2d0] sm:$0xff]  ;;  %v3105_v54 = vld [vmem:[%s4841_s6 + $0x360] sm:$0xff] }
 0x243   : > { %v2905_v14 = vadd.f32 %v2904_v13, %v2903_v61  ;;  %v3015_v16 = vmul.f32 %v5983_v8, %v5983_v8  ;;  %v3201_v21 = vadd.f32 %v3200_v9, %v3199_v2  ;;  %v3068_v42 = vsel %vm655_vm1, %v3014_v15, 0.0  ;;  %v3106_v9 = vld [vmem:[%s4841_s6 + $0x368] sm:$0xff] }
 0x244   : > { %7067 = vst [vmem:[#allocation72_spill] sm:$0xff] %v6004_v10  ;;  %v6015_v26 = vsub.f32 %v3104_v22, %v5280_v39  ;;  %v3166_v20 = vmul.f32 %v5989_v17, %v5989_v17  ;;  %v3202_v49 = vsel %vm655_vm1, %v3164_v19, 0.0  ;;  %v2851_v5 = vmul.f32 %v5791_v3, %v5791_v3 }
 0x245   : > { %v2906_v34 = vsel %vm655_vm1, %v2850_v31, 0.0  ;;  %v3069_v61 = vadd.f32 %v3068_v42, %v3067_v45  ;;  %v3203_v13 = vadd.f32 %v3202_v49, %v3201_v21  ;;  %v6026_v15 = vsub.f32 %v2953_v47, %v5280_v39 }
 0x246   : > { %7068 = vst [vmem:[#allocation73_spill] sm:$0xff] %v6015_v26  ;;  %v6029_v22 = vsub.f32 %v3105_v54, %v5280_v39  ;;  %v3167_v19 = vmul.f32 %v6004_v10, %v6004_v10  ;;  %v3204_v2 = vsel %vm655_vm1, %v3165_v27, 0.0  ;;  %v2741_v17 = vadd.f32 %v5654_v48, %v2739_v59  ;;  %v2954_v27 = vld [vmem:[%s4841_s6 + $0x2d8] sm:$0xff]  ;;  %v3107_v54 = vld [vmem:[%s4841_s6 + $0x370] sm:$0xff] }
 0x247   : > { %v2907_v32 = vadd.f32 %v2906_v34, %v2905_v14  ;;  %v3016_v31 = vmul.f32 %v6001_v0, %v6001_v0  ;;  %v3205_v45 = vadd.f32 %v3204_v2, %v3203_v13  ;;  %v3070_v21 = vsel %vm655_vm1, %v3015_v16, 0.0 }
 0x248   : > { %7069 = vst [vmem:[#allocation74_spill] sm:$0xff] %v6029_v22  ;;  %v6040_v42 = vsub.f32 %v3106_v9, %v5280_v39  ;;  %v3168_v49 = vmul.f32 %v6015_v26, %v6015_v26  ;;  %v3206_v47 = vsel %vm655_vm1, %v3166_v20, 0.0  ;;  %v2852_v48 = vmul.f32 %v5803_v62, %v5803_v62  ;;  %v3108_v9 = vld [vmem:[%s4841_s6 + $0x378] sm:$0xff] }
 0x249   : > { %v2908_v14 = vsel %vm655_vm1, %v2851_v5, 0.0  ;;  %v3071_v59 = vadd.f32 %v3070_v21, %v3069_v61  ;;  %v3207_v34 = vadd.f32 %v3206_v47, %v3205_v45  ;;  %v6051_v16 = vsub.f32 %v2954_v27, %v5280_v39 }
 0x24a   : > { %7070 = vst [vmem:[#allocation75_spill] sm:$0xff] %v6040_v42  ;;  %v6054_v13 = vsub.f32 %v3107_v54, %v5280_v39  ;;  %v3169_v20 = vmul.f32 %v6029_v22, %v6029_v22  ;;  %v3208_v2 = vsel %vm655_vm1, %v3167_v19, 0.0  ;;  %v2743_v26 = vadd.f32 %v5657_v33, %v2741_v17  ;;  %v2955_v19 = vld [vmem:[%s4841_s6 + $0x2e0] sm:$0xff] }
 0x24b   : > { %v2909_v10 = vadd.f32 %v2908_v14, %v2907_v32  ;;  %v3017_v5 = vmul.f32 %v6026_v15, %v6026_v15  ;;  %v3209_v61 = vadd.f32 %v3208_v2, %v3207_v34  ;;  %v3072_v45 = vsel %vm655_vm1, %v3016_v31, 0.0  ;;  %v3109_v54 = vld [vmem:[%s4841_s6 + $0x380] sm:$0xff] }
 0x24c   : > { %7071 = vst [vmem:[#allocation76_spill] sm:$0xff] %v6054_v13  ;;  %v6065_v21 = vsub.f32 %v3108_v9, %v5280_v39  ;;  %v3170_v47 = vmul.f32 %v6040_v42, %v6040_v42  ;;  %v3210_v27 = vsel %vm655_vm1, %v3168_v49, 0.0  ;;  %v2853_v33 = vmul.f32 %v5819_v24, %v5819_v24  ;;  %v3110_v9 = vld [vmem:[%s4841_s6 + $0x388] sm:$0xff] }
 0x24d   : > { %v2910_v32 = vsel %vm655_vm1, %v2852_v48, 0.0  ;;  %v3073_v17 = vadd.f32 %v3072_v45, %v3071_v59  ;;  %v3211_v14 = vadd.f32 %v3210_v27, %v3209_v61  ;;  %v6076_v31 = vsub.f32 %v2955_v19, %v5280_v39 }
 0x24e   : > { %7072 = vst [vmem:[#allocation77_spill] sm:$0xff] %v6065_v21  ;;  %v6079_v34 = vsub.f32 %v3109_v54, %v5280_v39  ;;  %v3171_v49 = vmul.f32 %v6054_v13, %v6054_v13  ;;  %v3212_v2 = vsel %vm655_vm1, %v3169_v20, 0.0  ;;  %v2745_v42 = vadd.f32 %v5683_v35, %v2743_v26  ;;  %v2956_v20 = vld [vmem:[%s4841_s6 + $0x2e8] sm:$0xff]  ;;  %v3111_v54 = vld [vmem:[%s4841_s6 + $0x390] sm:$0xff] }
 0x24f   : > { %v2911_v22 = vadd.f32 %v2910_v32, %v2909_v10  ;;  %v3018_v48 = vmul.f32 %v6051_v16, %v6051_v16  ;;  %v3213_v59 = vadd.f32 %v3212_v2, %v3211_v14  ;;  %v3074_v61 = vsel %vm655_vm1, %v3017_v5, 0.0 }
 0x250   : > { %7073 = vst [vmem:[#allocation78_spill] sm:$0xff] %v6079_v34  ;;  %v6090_v45 = vsub.f32 %v3110_v9, %v5280_v39  ;;  %v3172_v27 = vmul.f32 %v6065_v21, %v6065_v21  ;;  %v3214_v19 = vsel %vm655_vm1, %v3170_v47, 0.0  ;;  %v2854_v35 = vmul.f32 %v5822_v50, %v5822_v50  ;;  %v3112_v9 = vld [vmem:[%s4841_s6 + $0x398] sm:$0xff] }
 0x251   : > { %v2912_v10 = vsel %vm655_vm1, %v2853_v33, 0.0  ;;  %v3075_v26 = vadd.f32 %v3074_v61, %v3073_v17  ;;  %v3215_v32 = vadd.f32 %v3214_v19, %v3213_v59  ;;  %v6101_v5 = vsub.f32 %v2956_v20, %v5280_v39 }
 0x252   : > { %7074 = vst [vmem:[#allocation79_spill] sm:$0xff] %v6090_v45  ;;  %v6104_v14 = vsub.f32 %v3111_v54, %v5280_v39  ;;  %v3173_v47 = vmul.f32 %v6079_v34, %v6079_v34  ;;  %v3216_v2 = vsel %vm655_vm1, %v3171_v49, 0.0  ;;  %v2747_v21 = vadd.f32 %v5687_v36, %v2745_v42  ;;  %v2957_v49 = vld [vmem:[%s4841_s6 + $0x2f0] sm:$0xff]  ;;  %v3113_v54 = vld [vmem:[%s4841_s6 + $0x3a0] sm:$0xff] }
 0x253   : > { %v2913_v13 = vadd.f32 %v2912_v10, %v2911_v22  ;;  %v3019_v33 = vmul.f32 %v6076_v31, %v6076_v31  ;;  %v3217_v17 = vadd.f32 %v3216_v2, %v3215_v32  ;;  %v3076_v59 = vsel %vm655_vm1, %v3018_v48, 0.0 }
 0x254   : > { %7075 = vst [vmem:[#allocation80_spill] sm:$0xff] %v6104_v14  ;;  %v6115_v61 = vsub.f32 %v3112_v9, %v5280_v39  ;;  %v3174_v19 = vmul.f32 %v6090_v45, %v6090_v45  ;;  %v3218_v20 = vsel %vm655_vm1, %v3172_v27, 0.0  ;;  %v2855_v36 = vmul.f32 %v5825_v30, %v5825_v30  ;;  %v3114_v9 = vld [vmem:[%s4841_s6 + $0x3a8] sm:$0xff] }
 0x255   : > { %v2914_v22 = vsel %vm655_vm1, %v2854_v35, 0.0  ;;  %v3077_v42 = vadd.f32 %v3076_v59, %v3075_v26  ;;  %v3219_v10 = vadd.f32 %v3218_v20, %v3217_v17  ;;  %v6126_v48 = vsub.f32 %v2957_v49, %v5280_v39 }
 0x256   : > { %7076 = vst [vmem:[#allocation81_spill] sm:$0xff] %v6115_v61  ;;  %v6129_v32 = vsub.f32 %v3113_v54, %v5280_v39  ;;  %v3175_v27 = vmul.f32 %v6104_v14, %v6104_v14  ;;  %v3220_v2 = vsel %vm655_vm1, %v3173_v47, 0.0  ;;  %v2749_v45 = vadd.f32 %v5690_v53, %v2747_v21  ;;  %v2958_v47 = vld [vmem:[%s4841_s6 + $0x2f8] sm:$0xff]  ;;  %v3115_v54 = vld [vmem:[%s4841_s6 + $0x3b0] sm:$0xff] }
 0x257   : > { %v2915_v34 = vadd.f32 %v2914_v22, %v2913_v13  ;;  %v3020_v35 = vmul.f32 %v6101_v5, %v6101_v5  ;;  %v3221_v26 = vadd.f32 %v3220_v2, %v3219_v10  ;;  %v3078_v17 = vsel %vm655_vm1, %v3019_v33, 0.0 }
 0x258   : > { %7077 = vst [vmem:[#allocation82_spill] sm:$0xff] %v6129_v32  ;;  %v6140_v59 = vsub.f32 %v3114_v9, %v5280_v39  ;;  %v3176_v20 = vmul.f32 %v6115_v61, %v6115_v61  ;;  %v3222_v49 = vsel %vm655_vm1, %v3174_v19, 0.0  ;;  %v2856_v53 = vmul.f32 %v5837_v37, %v5837_v37  ;;  %v3116_v9 = vld [vmem:[%s4841_s6 + $0x3b8] sm:$0xff] }
 0x259   : > { %v2916_v13 = vsel %vm655_vm1, %v2855_v36, 0.0  ;;  %v3079_v21 = vadd.f32 %v3078_v17, %v3077_v42  ;;  %v3223_v22 = vadd.f32 %v3222_v49, %v3221_v26  ;;  %v6151_v33 = vsub.f32 %v2958_v47, %v5280_v39 }
 0x25a   : > { %7078 = vst [vmem:[#allocation83_spill] sm:$0xff] %v6140_v59  ;;  %v6154_v10 = vsub.f32 %v3115_v54, %v5280_v39  ;;  %v3177_v2 = vmul.f32 %v6129_v32, %v6129_v32  ;;  %v3224_v19 = vsel %vm655_vm1, %v3175_v27, 0.0  ;;  %v2751_v61 = vadd.f32 %v5717_v11, %v2749_v45  ;;  %v3117_v27 = vld [vmem:[%s4841_s6 + $0x3c0] sm:$0xff] }
 0x25b   : > { %v2917_v14 = vadd.f32 %v2916_v13, %v2915_v34  ;;  %v3021_v36 = vmul.f32 %v6126_v48, %v6126_v48  ;;  %v3225_v42 = vadd.f32 %v3224_v19, %v3223_v22  ;;  %v3080_v26 = vsel %vm655_vm1, %v3020_v35, 0.0  ;;  %v3118_v19 = vld [vmem:[%s4841_s6 + $0x3c8] sm:$0xff] }
 0x25c   : > { %7079 = vst [vmem:[#allocation84_spill] sm:$0xff] %v6154_v10  ;;  %v6165_v17 = vsub.f32 %v3116_v9, %v5280_v39  ;;  %v3178_v49 = vmul.f32 %v6140_v59, %v6140_v59  ;;  %v3226_v47 = vsel %vm655_vm1, %v3176_v20, 0.0  ;;  %v2752_v11 = vsel %vm655_vm1, %v5582_v4, 0.0 }
 0x25d   : > { %v3081_v34 = vadd.f32 %v3080_v26, %v3079_v21  ;;  %v3227_v45 = vadd.f32 %v3226_v47, %v3225_v42  ;;  %v2918_v54 = vsel %vm655_vm1, %v2856_v53, 0.0  ;;  %v6175_v13 = vsub.f32 %v3117_v27, %v5280_v39 }
 0x25e   : > { %7080 = vst [vmem:[#allocation85_spill] sm:$0xff] %v6165_v17  ;;  %v3179_v35 = vmul.f32 %v6154_v10, %v6154_v10  ;;  %v3228_v22 = vsel %vm655_vm1, %v3177_v2, 0.0  ;;  %v2753_v20 = vadd.f32 %v2752_v11, %v2751_v61  ;;  %v2919_v9 = vadd.f32 %v2918_v54, %v2917_v14  ;;  %v3119_v2 = vld [vmem:[%s4841_s6 + $0x3d0] sm:$0xff]  ;;  %v3705_v11 = vld [vmem:[%s4841_s6 + $0x3d8] sm:$0xff] }
 0x25f   : > { %7081 = vst [vmem:[#allocation86_spill] sm:$0xff] %v6175_v13  ;;  %v3022_v4 = vmul.f32 %v6151_v33, %v6151_v33  ;;  %v3229_v59 = vadd.f32 %v3228_v22, %v3227_v45  ;;  %v3082_v21 = vsel %vm655_vm1, %v3021_v36, 0.0  ;;  %v6185_v53 = vsub.f32 %v3118_v19, %v5280_v39 }
 0x260   : > { %v3180_v42 = vmul.f32 %v6165_v17, %v6165_v17  ;;  %v3230_v26 = vsel %vm655_vm1, %v3178_v49, 0.0  ;;  %v3083_v47 = vadd.f32 %v3082_v21, %v3081_v34  ;;  %v6192_v14 = vsub.f32 %v3119_v2, %v5280_v39  ;;  %v3706_v21 = vld [vmem:[%s4841_s6 + $0x3e0] sm:$0xff] }
 0x261   : > { %7082 = vst [vmem:[#allocation87_spill] sm:$0xff] %v6185_v53  ;;  %v3231_v27 = vadd.f32 %v3230_v26, %v3229_v59  ;;  %v3181_v61 = vmul.f32 %v6175_v13, %v6175_v13  ;;  %v3232_v36 = vsel %vm655_vm1, %v3179_v35, 0.0  ;;  %v2754_v45 = vrot.slane %v2753_v20, 4  ;;  %v3122_v13 = vld [vmem:[%s4841_s6 + $0x3e8] sm:$0xff] }
 0x262   : > { %7083 = vst [vmem:[#allocation88_spill] sm:$0xff] %v6192_v14  ;;  %v2920_v54 = vrot.slane %v2919_v9, 4  ;;  %v3084_v19 = vsel %vm655_vm1, %v3022_v4, 0.0  ;;  %v6200_v49 = vsub.f32 %v3705_v11, %v5280_v39  ;;  %v3182_v59 = vmul.f32 %v6185_v53, %v6185_v53 }
 0x263   : > { %v3233_v22 = vadd.f32 %v3232_v36, %v3231_v27  ;;  %v3234_v34 = vsel %vm655_vm1, %v3180_v42, 0.0  ;;  %v3085_v26 = vadd.f32 %v3084_v19, %v3083_v47  ;;  %v6207_v35 = vsub.f32 %v3706_v21, %v5280_v39 }
 0x264   : > { %7084 = vst [vmem:[#allocation89_spill] sm:$0xff] %v6200_v49  ;;  %v3183_v27 = vmul.f32 %v6192_v14, %v6192_v14  ;;  %v3236_v4 = vsel %vm655_vm1, %v3181_v61, 0.0  ;;  %v2755_v36 = vadd.f32 %v2754_v45, %v2753_v20  ;;  %v2921_v11 = vadd.f32 %v2920_v54, %v2919_v9  ;;  %v3709_v61 = vld [vmem:[%s4841_s6 + $0x3f8] sm:$0xff] }
 0x265   : > { %v3235_v2 = vadd.f32 %v3234_v34, %v3233_v22  ;;  %7085 = vst [vmem:[#allocation90_spill] sm:$0xff] %v6207_v35  ;;  %v6214_v53 = vsub.f32 %v3122_v13, %v5280_v39  ;;  %v3184_v42 = vmul.f32 %v6200_v49, %v6200_v49  ;;  %v3238_v47 = vsel %vm655_vm1, %v3182_v59, 0.0  ;;  %v3708_v22 = vld [vmem:[%s4841_s6 + $0x3f0] sm:$0xff] }
 0x266   : > { %v3086_v19 = vrot.slane %v3085_v26, 4  ;;  %v6221_v21 = vsub.f32 %v3708_v22, %v5280_v39  ;;  %v3185_v20 = vmul.f32 %v6207_v35, %v6207_v35  ;;  %v3240_v9 = vsel %vm655_vm1, %v3183_v27, 0.0 }
 0x267   : > { %v3237_v17 = vadd.f32 %v3236_v4, %v3235_v2  ;;  %7086 = vst [vmem:[#allocation91_spill] sm:$0xff] %v6214_v53  ;;  %v2756_v45 = vrot.slane %v2755_v36, 2  ;;  %v2922_v13 = vrot.slane %v2921_v11, 2  ;;  %v6228_v2 = vsub.f32 %v3709_v61, %v5280_v39 }
 0x268   : > { %7087 = vst [vmem:[#allocation92_spill] sm:$0xff] %v6221_v21  ;;  %v3186_v59 = vmul.f32 %v6214_v53, %v6214_v53  ;;  %v3087_v4 = vadd.f32 %v3086_v19, %v3085_v26  ;;  %v3187_v22 = vmul.f32 %v6221_v21, %v6221_v21  ;;  %v3244_v35 = vsel %vm655_vm1, %v3185_v20, 0.0 }
 0x269   : > { %v3239_v34 = vadd.f32 %v3238_v47, %v3237_v17  ;;  %7088 = vst [vmem:[#allocation93_spill] sm:$0xff] %v6228_v2  ;;  %v3242_v17 = vsel %vm655_vm1, %v3184_v42, 0.0  ;;  %v2757_v27 = vadd.f32 %v2756_v45, %v2755_v36  ;;  %v2923_v49 = vadd.f32 %v2922_v13, %v2921_v11 }
 0x26a   : > { %v3246_v39 = vsel %vm655_vm1, %v3186_v59, 0.0  ;;  %v3248_v53 = vsel %vm655_vm1, %v3187_v22, 0.0 }
 0x26b   : > { %v3241_v54 = vadd.f32 %v3240_v9, %v3239_v34  ;;  %v3188_v34 = vmul.f32 %v6228_v2, %v6228_v2  ;;  %v3088_v9 = vrot.slane %v3087_v4, 2  ;;  %v2758_v42 = vrot.slane %v2757_v27, 1 }
 0x26c   : > { %v2924_v26 = vrot.slane %v2923_v49, 1 }
 0x26d   : > { %v3243_v47 = vadd.f32 %v3242_v17, %v3241_v54  ;;  %v3250_v54 = vsel %vm655_vm1, %v3188_v34, 0.0  ;;  %v3089_v17 = vadd.f32 %v3088_v9, %v3087_v4  ;;  %v2759_v20 = vadd.f32 %v2758_v42, %v2757_v27  ;;  %v7089_v27 = vld [vmem:[#allocation11_spill] sm:$0xff]  ;;  %v7090_v34 = vld [vmem:[#allocation12_spill] sm:$0xff]  ;;  %v7091_v9 = vld [vmem:[#allocation13_spill] sm:$0xff] }
 0x26e   : > { %v2925_v36 = vadd.f32 %v2924_v26, %v2923_v49  ;;  %v7094_v42 = vld [vmem:[#allocation17_spill] sm:$0xff]  ;;  %v7095_v26 = vld [vmem:[#allocation18_spill] sm:$0xff] }
 0x26f   : > { %v3245_v14 = vadd.f32 %v3244_v35, %v3243_v47  ;;  %v3090_v35 = vrot.slane %v3089_v17, 1 }
 0x270   : > { %v2926_v13 = vadd.f32 %v2925_v36, %v2759_v20  ;;  %v7097_v20 = vld [vmem:[#allocation20_spill] sm:$0xff] }
 0x271   : > { %v3247_v61 = vadd.f32 %v3246_v39, %v3245_v14  ;;  %v3091_v2 = vadd.f32 %v3090_v35, %v3089_v17 }
 0x273   : > { %v3249_v19 = vadd.f32 %v3248_v53, %v3247_v61  ;;  %v3092_v10 = vadd.f32 %v3091_v2, %v2926_v13 }
 0x275   : > { %v3251_v21 = vadd.f32 %v3250_v54, %v3249_v19  ;;  %v7096_v54 = vld [vmem:[#allocation19_spill] sm:$0xff] }
 0x277   : > { %v3252_v11 = vrot.slane %v3251_v21, 4 }
 0x279   : > { %v3253_v45 = vadd.f32 %v3252_v11, %v3251_v21  ;;  %v7098_v11 = vld [vmem:[#allocation21_spill] sm:$0xff] }
 0x27b   : > { %v3254_v47 = vrot.slane %v3253_v45, 2 }
 0x27d   : > { %v3255_v59 = vadd.f32 %v3254_v47, %v3253_v45  ;;  %v7099_v45 = vld [vmem:[#allocation22_spill] sm:$0xff]  ;;  %v7100_v47 = vld [vmem:[#allocation24_spill] sm:$0xff] }
 0x27f   : > { %v3256_v14 = vrot.slane %v3255_v59, 1 }
 0x281   : > { %v3257_v39 = vadd.f32 %v3256_v14, %v3255_v59  ;;  %v7101_v14 = vld [vmem:[#allocation25_spill] sm:$0xff] }
 0x283   : > { %v3258_v22 = vadd.f32 %v3257_v39, %v3092_v10 }
 0x285   : > { %v3259_v32 = vmul.f32 0.0009765625, %v3258_v22  ;;  %v7102_v22 = vld [vmem:[#allocation26_spill] sm:$0xff] }
 0x287   : > { %v3260_v18 = vadd.f32 1e-05, %v3259_v32 }
 0x289   : > { %4615 = vrsqrt.f32 %v3260_v18 }
 0x296   : > { %v6241_v53 = vpop.eup %4615 }
 0x297   : > { %v3262_v4 = vmul.f32 %v6241_v53, %v5285_v43  ;;  %v3263_v49 = vmul.f32 %v6241_v53, %v5288_v44  ;;  %v3264_v21 = vmul.f32 %v6241_v53, %v5296_v41  ;;  %v3265_v2 = vmul.f32 %v6241_v53, %v5302_v52 }
 0x298   : > { %v3266_v10 = vmul.f32 %v6241_v53, %v5308_v55  ;;  %v3267_v18 = vmul.f32 %v6241_v53, %v5315_v60  ;;  %v3268_v32 = vmul.f32 %v6241_v53, %v5322_v1  ;;  %v3269_v43 = vmul.f32 %v6241_v53, %v5338_v12 }
 0x299   : > { %v3270_v44 = vmul.f32 %v6241_v53, %v5357_v51  ;;  %v3271_v41 = vmul.f32 %v6241_v53, %v5370_v29  ;;  %v3272_v52 = vmul.f32 %v6241_v53, %v5383_v38  ;;  %v3273_v55 = vmul.f32 %v6241_v53, %v5386_v40 }
 0x29a   : > { %v3274_v60 = vmul.f32 %v6241_v53, %v5402_v56  ;;  %v3275_v1 = vmul.f32 %v6241_v53, %v5405_v57  ;;  %v3276_v12 = vmul.f32 %v6241_v53, %v5410_v63  ;;  %v3277_v51 = vmul.f32 %v6241_v53, %v5420_v6  ;;  %v7092_v63 = vld [vmem:[#allocation14_spill] sm:$0xff]  ;;  %v7093_v6 = vld [vmem:[#allocation15_spill] sm:$0xff] }
 0x29b   : > { %v3278_v29 = vmul.f32 %v6241_v53, %v5423_v7  ;;  %v3279_v38 = vmul.f32 %v6241_v53, %v5439_v23  ;;  %v3280_v40 = vmul.f32 %v6241_v53, %v7089_v27  ;;  %v3281_v56 = vmul.f32 %v6241_v53, %v7090_v34 }
 0x29c   : > { %v6285_v57 = vmul.f32 %v6241_v53, %v7091_v9  ;;  %v6289_v61 = vmul.f32 %v6241_v53, %v7092_v63  ;;  %v6293_v7 = vmul.f32 %v6241_v53, %v7093_v6  ;;  %v6297_v23 = vmul.f32 %v6241_v53, %v7094_v42 }
 0x29d   : > { %v6301_v19 = vmul.f32 %v6241_v53, %v7095_v26  ;;  %v6305_v17 = vmul.f32 %v6241_v53, %v7096_v54  ;;  %v6309_v36 = vmul.f32 %v6241_v53, %v7097_v20  ;;  %v6313_v35 = vmul.f32 %v6241_v53, %v7098_v11 }
 0x29e   : > { %v6317_v13 = vmul.f32 %v6241_v53, %v7099_v45  ;;  %v6321_v59 = vmul.f32 %v6241_v53, %v7100_v47  ;;  %v6325_v39 = vmul.f32 %v6241_v53, %v7101_v14  ;;  %v6329_v27 = vmul.f32 %v6241_v53, %v7102_v22 }
 0x29f   : > { %v3294_v34 = vmax.f32 %v3262_v4, 0.0  ;;  %v3295_v9 = vmax.f32 %v3263_v49, 0.0  ;;  %v3296_v63 = vmax.f32 %v3264_v21, 0.0  ;;  %v3297_v6 = vmax.f32 %v3265_v2, 0.0 }
 0x2a0   : > { %v3298_v42 = vmax.f32 %v3266_v10, 0.0  ;;  %v3299_v26 = vmax.f32 %v3267_v18, 0.0  ;;  %v3300_v54 = vmax.f32 %v3268_v32, 0.0  ;;  %v3301_v20 = vmax.f32 %v3269_v43, 0.0 }
 0x2a1   : > { %v3302_v11 = vmax.f32 %v3270_v44, 0.0  ;;  %v3303_v45 = vmax.f32 %v3271_v41, 0.0  ;;  %v3304_v47 = vmax.f32 %v3272_v52, 0.0  ;;  %v3305_v14 = vmax.f32 %v3273_v55, 0.0  ;;  %3326 = vst.msk [vmem:[%s4841_s6] sm:$0xff] %vm655_vm1, %v3294_v34  ;;  %3327 = vst.msk [vmem:[%s4841_s6 + $0x8] sm:$0xff] %vm655_vm1, %v3295_v9 }
 0x2a2   : > { %3328 = vst.msk [vmem:[%s4841_s6 + $0x10] sm:$0xff] %vm655_vm1, %v3296_v63  ;;  %3329 = vst.msk [vmem:[%s4841_s6 + $0x18] sm:$0xff] %vm655_vm1, %v3297_v6  ;;  %v3306_v4 = vmax.f32 %v3274_v60, 0.0  ;;  %v3307_v49 = vmax.f32 %v3275_v1, 0.0  ;;  %v3308_v21 = vmax.f32 %v3276_v12, 0.0  ;;  %v3309_v2 = vmax.f32 %v3277_v51, 0.0 }
 0x2a3   : > { %3330 = vst.msk [vmem:[%s4841_s6 + $0x20] sm:$0xff] %vm655_vm1, %v3298_v42  ;;  %3331 = vst.msk [vmem:[%s4841_s6 + $0x28] sm:$0xff] %vm655_vm1, %v3299_v26  ;;  %v3310_v10 = vmax.f32 %v3278_v29, 0.0  ;;  %v3311_v18 = vmax.f32 %v3279_v38, 0.0  ;;  %v3312_v32 = vmax.f32 %v3280_v40, 0.0  ;;  %v3313_v43 = vmax.f32 %v3281_v56, 0.0 }
 0x2a4   : > { %3332 = vst.msk [vmem:[%s4841_s6 + $0x30] sm:$0xff] %vm655_vm1, %v3300_v54  ;;  %3333 = vst.msk [vmem:[%s4841_s6 + $0x38] sm:$0xff] %vm655_vm1, %v3301_v20  ;;  %v3314_v44 = vmax.f32 %v6285_v57, 0.0  ;;  %v3315_v41 = vmax.f32 %v6289_v61, 0.0  ;;  %v3316_v52 = vmax.f32 %v6293_v7, 0.0  ;;  %v3317_v55 = vmax.f32 %v6297_v23, 0.0 }
 0x2a5   : > { %3334 = vst.msk [vmem:[%s4841_s6 + $0x40] sm:$0xff] %vm655_vm1, %v3302_v11  ;;  %3335 = vst.msk [vmem:[%s4841_s6 + $0x48] sm:$0xff] %vm655_vm1, %v3303_v45  ;;  %v3318_v60 = vmax.f32 %v6301_v19, 0.0  ;;  %v3319_v1 = vmax.f32 %v6305_v17, 0.0  ;;  %v3320_v12 = vmax.f32 %v6309_v36, 0.0  ;;  %v3321_v51 = vmax.f32 %v6313_v35, 0.0 }
 0x2a6   : > { %3336 = vst.msk [vmem:[%s4841_s6 + $0x50] sm:$0xff] %vm655_vm1, %v3304_v47  ;;  %3337 = vst.msk [vmem:[%s4841_s6 + $0x58] sm:$0xff] %vm655_vm1, %v3305_v14  ;;  %v3322_v29 = vmax.f32 %v6317_v13, 0.0  ;;  %v3323_v38 = vmax.f32 %v6321_v59, 0.0  ;;  %v3324_v40 = vmax.f32 %v6325_v39, 0.0  ;;  %v3325_v56 = vmax.f32 %v6329_v27, 0.0 }
 0x2a7   : > { %3338 = vst.msk [vmem:[%s4841_s6 + $0x60] sm:$0xff] %vm655_vm1, %v3306_v4  ;;  %3339 = vst.msk [vmem:[%s4841_s6 + $0x68] sm:$0xff] %vm655_vm1, %v3307_v49  ;;  %v7103_v57 = vld [vmem:[#allocation2_spill] sm:$0xff]  ;;  %v7104_v7 = vld [vmem:[#allocation3_spill] sm:$0xff] }
 0x2a8   : > { %3340 = vst.msk [vmem:[%s4841_s6 + $0x70] sm:$0xff] %vm655_vm1, %v3308_v21  ;;  %3341 = vst.msk [vmem:[%s4841_s6 + $0x78] sm:$0xff] %vm655_vm1, %v3309_v2  ;;  %v3422_v61 = vmul.f32 %v6241_v53, %v7103_v57  ;;  %v3423_v23 = vmul.f32 %v6241_v53, %v7104_v7  ;;  %v7105_v19 = vld [vmem:[#allocation4_spill] sm:$0xff]  ;;  %v7106_v36 = vld [vmem:[#allocation5_spill] sm:$0xff] }
 0x2a9   : > { %3342 = vst.msk [vmem:[%s4841_s6 + $0x80] sm:$0xff] %vm655_vm1, %v3310_v10  ;;  %3343 = vst.msk [vmem:[%s4841_s6 + $0x88] sm:$0xff] %vm655_vm1, %v3311_v18  ;;  %v3424_v17 = vmul.f32 %v6241_v53, %v7105_v19  ;;  %v3425_v35 = vmul.f32 %v6241_v53, %v7106_v36  ;;  %v7107_v13 = vld [vmem:[#allocation6_spill] sm:$0xff]  ;;  %v7108_v39 = vld [vmem:[#allocation7_spill] sm:$0xff]  ;;  %v6469_v36 = vmul.f32 %v6241_v53, %v5788_v25 }
 0x2aa   : > { %3344 = vst.msk [vmem:[%s4841_s6 + $0x90] sm:$0xff] %vm655_vm1, %v3312_v32  ;;  %3345 = vst.msk [vmem:[%s4841_s6 + $0x98] sm:$0xff] %vm655_vm1, %v3313_v43  ;;  %v3426_v59 = vmul.f32 %v6241_v53, %v7107_v13  ;;  %v3427_v22 = vmul.f32 %v6241_v53, %v7108_v39  ;;  %v7109_v27 = vld [vmem:[#allocation8_spill] sm:$0xff]  ;;  %v7110_v9 = vld [vmem:[#allocation9_spill] sm:$0xff]  ;;  %v6473_v13 = vmul.f32 %v6241_v53, %v5791_v3 }
 0x2ab   : > { %3346 = vst.msk [vmem:[%s4841_s6 + $0xa0] sm:$0xff] %vm655_vm1, %v3314_v44  ;;  %3347 = vst.msk [vmem:[%s4841_s6 + $0xa8] sm:$0xff] %vm655_vm1, %v3315_v41  ;;  %v3428_v34 = vmul.f32 %v6241_v53, %v7109_v27  ;;  %v3429_v63 = vmul.f32 %v6241_v53, %v7110_v9  ;;  %v7111_v6 = vld [vmem:[#allocation10_spill] sm:$0xff]  ;;  %v7112_v26 = vld [vmem:[#allocation16_spill] sm:$0xff]  ;;  %v6477_v39 = vmul.f32 %v6241_v53, %v5803_v62  ;;  %v3454_v62 = vmax.f32 %v3422_v61, 0.0 }
 0x2ac   : > { %3348 = vst.msk [vmem:[%s4841_s6 + $0xb0] sm:$0xff] %vm655_vm1, %v3316_v52  ;;  %3349 = vst.msk [vmem:[%s4841_s6 + $0xb8] sm:$0xff] %vm655_vm1, %v3317_v55  ;;  %v3430_v42 = vmul.f32 %v6241_v53, %v7111_v6  ;;  %v3431_v54 = vmul.f32 %v6241_v53, %v7112_v26  ;;  %v7113_v20 = vld [vmem:[#allocation23_spill] sm:$0xff]  ;;  %v7115_v14 = vld [vmem:[#allocation28_spill] sm:$0xff]  ;;  %v3440_v55 = vmul.f32 %v6241_v53, %v5723_v58  ;;  %v3455_v6 = vmax.f32 %v3423_v23, 0.0 }
 0x2ad   : > { %3350 = vst.msk [vmem:[%s4841_s6 + $0xc0] sm:$0xff] %vm655_vm1, %v3318_v60  ;;  %3351 = vst.msk [vmem:[%s4841_s6 + $0xc8] sm:$0xff] %vm655_vm1, %v3319_v1  ;;  %v3432_v11 = vmul.f32 %v6241_v53, %v7113_v20  ;;  %v7114_v45 = vld [vmem:[#allocation27_spill] sm:$0xff]  ;;  %v3434_v4 = vmul.f32 %v6241_v53, %v7115_v14  ;;  %v7117_v2 = vld [vmem:[#allocation34_spill] sm:$0xff]  ;;  %v6481_v27 = vmul.f32 %v6241_v53, %v5819_v24  ;;  %v3456_v24 = vmax.f32 %v3424_v17, 0.0 }
 0x2ae   : > { %3352 = vst.msk [vmem:[%s4841_s6 + $0xd0] sm:$0xff] %vm655_vm1, %v3320_v12  ;;  %3353 = vst.msk [vmem:[%s4841_s6 + $0xd8] sm:$0xff] %vm655_vm1, %v3321_v51  ;;  %v3433_v47 = vmul.f32 %v6241_v53, %v7114_v45  ;;  %v7116_v49 = vld [vmem:[#allocation31_spill] sm:$0xff]  ;;  %v3436_v10 = vmul.f32 %v6241_v53, %v7117_v2  ;;  %v7118_v18 = vld [vmem:[#allocation37_spill] sm:$0xff]  ;;  %v6485_v9 = vmul.f32 %v6241_v53, %v5822_v50  ;;  %v3457_v26 = vmax.f32 %v3425_v35, 0.0 }
 0x2af   : > { %3354 = vst.msk [vmem:[%s4841_s6 + $0xe0] sm:$0xff] %vm655_vm1, %v3322_v29  ;;  %3355 = vst.msk [vmem:[%s4841_s6 + $0xe8] sm:$0xff] %vm655_vm1, %v3323_v38  ;;  %v3435_v21 = vmul.f32 %v6241_v53, %v7116_v49  ;;  %v3437_v32 = vmul.f32 %v6241_v53, %v7118_v18  ;;  %v7119_v43 = vld [vmem:[#allocation40_spill] sm:$0xff]  ;;  %v7120_v41 = vld [vmem:[#allocation42_spill] sm:$0xff]  ;;  %v6489_v25 = vmul.f32 %v6241_v53, %v5825_v30  ;;  %v3458_v20 = vmax.f32 %v3426_v59, 0.0 }
 0x2b0   : > { %3356 = vst.msk [vmem:[%s4841_s6 + $0xf0] sm:$0xff] %vm655_vm1, %v3324_v40  ;;  %3357 = vst.msk [vmem:[%s4841_s6 + $0xf8] sm:$0xff] %vm655_vm1, %v3325_v56  ;;  %v3438_v44 = vmul.f32 %v6241_v53, %v7119_v43  ;;  %v3439_v52 = vmul.f32 %v6241_v53, %v7120_v41  ;;  %v7121_v60 = vld [vmem:[#allocation44_spill] sm:$0xff]  ;;  %v7122_v12 = vld [vmem:[#allocation46_spill] sm:$0xff]  ;;  %v6493_v3 = vmul.f32 %v6241_v53, %v5837_v37  ;;  %v3459_v45 = vmax.f32 %v3427_v22, 0.0 }
 0x2b1   : > { %v3441_v1 = vmul.f32 %v6241_v53, %v7121_v60  ;;  %v6449_v51 = vmul.f32 %v6241_v53, %v7122_v12  ;;  %v7123_v29 = vld [vmem:[#allocation47_spill] sm:$0xff]  ;;  %v7124_v40 = vld [vmem:[#allocation48_spill] sm:$0xff]  ;;  %v7125_v57 = vld [vmem:[#allocation50_spill] sm:$0xff]  ;;  %v3460_v50 = vmax.f32 %v3428_v34, 0.0  ;;  %v3461_v14 = vmax.f32 %v3429_v63, 0.0  ;;  %3486 = vst.msk [vmem:[%s4841_s6 + $0x100] sm:$0xff] %vm655_vm1, %v3454_v62 }
 0x2b2   : > { %v6453_v38 = vmul.f32 %v6241_v53, %v7123_v29  ;;  %v6457_v56 = vmul.f32 %v6241_v53, %v7124_v40  ;;  %v6461_v7 = vmul.f32 %v6241_v53, %v7125_v57  ;;  %v7126_v58 = vld [vmem:[#allocation52_spill] sm:$0xff]  ;;  %v3462_v30 = vmax.f32 %v3430_v42, 0.0  ;;  %3487 = vst.msk [vmem:[%s4841_s6 + $0x108] sm:$0xff] %vm655_vm1, %v3455_v6  ;;  %3488 = vst.msk [vmem:[%s4841_s6 + $0x110] sm:$0xff] %vm655_vm1, %v3456_v24  ;;  %v7128_v60 = vld [vmem:[#allocation30_spill] sm:$0xff] }
 0x2b3   : > { %v6465_v19 = vmul.f32 %v6241_v53, %v7126_v58  ;;  %v3463_v49 = vmax.f32 %v3431_v54, 0.0  ;;  %v3464_v2 = vmax.f32 %v3432_v11, 0.0  ;;  %v3465_v18 = vmax.f32 %v3433_v47, 0.0  ;;  %3489 = vst.msk [vmem:[%s4841_s6 + $0x118] sm:$0xff] %vm655_vm1, %v3457_v26  ;;  %3490 = vst.msk [vmem:[%s4841_s6 + $0x120] sm:$0xff] %vm655_vm1, %v3458_v20  ;;  %v7129_v12 = vld [vmem:[#allocation32_spill] sm:$0xff] }
 0x2b4   : > { %v3466_v37 = vmax.f32 %v3434_v4, 0.0  ;;  %v3467_v61 = vmax.f32 %v3435_v21, 0.0  ;;  %v3468_v23 = vmax.f32 %v3436_v10, 0.0  ;;  %v3469_v17 = vmax.f32 %v3437_v32, 0.0  ;;  %3491 = vst.msk [vmem:[%s4841_s6 + $0x128] sm:$0xff] %vm655_vm1, %v3459_v45  ;;  %3492 = vst.msk [vmem:[%s4841_s6 + $0x130] sm:$0xff] %vm655_vm1, %v3460_v50 }
 0x2b5   : > { %3493 = vst.msk [vmem:[%s4841_s6 + $0x138] sm:$0xff] %vm655_vm1, %v3461_v14  ;;  %v3470_v35 = vmax.f32 %v3438_v44, 0.0  ;;  %v3471_v59 = vmax.f32 %v3439_v52, 0.0  ;;  %v3472_v22 = vmax.f32 %v3440_v55, 0.0  ;;  %v3473_v34 = vmax.f32 %v3441_v1, 0.0  ;;  %3494 = vst.msk [vmem:[%s4841_s6 + $0x140] sm:$0xff] %vm655_vm1, %v3462_v30 }
 0x2b6   : > { %3495 = vst.msk [vmem:[%s4841_s6 + $0x148] sm:$0xff] %vm655_vm1, %v3463_v49  ;;  %3496 = vst.msk [vmem:[%s4841_s6 + $0x150] sm:$0xff] %vm655_vm1, %v3464_v2  ;;  %v3474_v63 = vmax.f32 %v6449_v51, 0.0  ;;  %v3475_v42 = vmax.f32 %v6453_v38, 0.0  ;;  %v3476_v54 = vmax.f32 %v6457_v56, 0.0  ;;  %v3477_v11 = vmax.f32 %v6461_v7, 0.0 }
 0x2b7   : > { %3497 = vst.msk [vmem:[%s4841_s6 + $0x158] sm:$0xff] %vm655_vm1, %v3465_v18  ;;  %3498 = vst.msk [vmem:[%s4841_s6 + $0x160] sm:$0xff] %vm655_vm1, %v3466_v37  ;;  %v3478_v47 = vmax.f32 %v6465_v19, 0.0  ;;  %v3479_v4 = vmax.f32 %v6469_v36, 0.0  ;;  %v3480_v21 = vmax.f32 %v6473_v13, 0.0  ;;  %v3481_v10 = vmax.f32 %v6477_v39, 0.0 }
 0x2b8   : > { %3499 = vst.msk [vmem:[%s4841_s6 + $0x168] sm:$0xff] %vm655_vm1, %v3467_v61  ;;  %3500 = vst.msk [vmem:[%s4841_s6 + $0x170] sm:$0xff] %vm655_vm1, %v3468_v23  ;;  %v3482_v32 = vmax.f32 %v6481_v27, 0.0  ;;  %v3483_v43 = vmax.f32 %v6485_v9, 0.0  ;;  %v3484_v44 = vmax.f32 %v6489_v25, 0.0  ;;  %v3485_v41 = vmax.f32 %v6493_v3, 0.0 }
 0x2b9   : > { %3501 = vst.msk [vmem:[%s4841_s6 + $0x178] sm:$0xff] %vm655_vm1, %v3469_v17  ;;  %3502 = vst.msk [vmem:[%s4841_s6 + $0x180] sm:$0xff] %vm655_vm1, %v3470_v35  ;;  %v7127_v52 = vld [vmem:[#allocation29_spill] sm:$0xff]  ;;  %v3583_v1 = vmul.f32 %v6241_v53, %v7128_v60  ;;  %v3584_v51 = vmul.f32 %v6241_v53, %v7129_v12  ;;  %v7131_v40 = vld [vmem:[#allocation35_spill] sm:$0xff] }
 0x2ba   : > { %3503 = vst.msk [vmem:[%s4841_s6 + $0x188] sm:$0xff] %vm655_vm1, %v3471_v59  ;;  %3504 = vst.msk [vmem:[%s4841_s6 + $0x190] sm:$0xff] %vm655_vm1, %v3472_v22  ;;  %v3582_v55 = vmul.f32 %v6241_v53, %v7127_v52  ;;  %v7130_v29 = vld [vmem:[#allocation33_spill] sm:$0xff]  ;;  %v3586_v56 = vmul.f32 %v6241_v53, %v7131_v40  ;;  %v7132_v57 = vld [vmem:[#allocation36_spill] sm:$0xff] }
 0x2bb   : > { %3505 = vst.msk [vmem:[%s4841_s6 + $0x198] sm:$0xff] %vm655_vm1, %v3473_v34  ;;  %3506 = vst.msk [vmem:[%s4841_s6 + $0x1a0] sm:$0xff] %vm655_vm1, %v3474_v63  ;;  %v3585_v38 = vmul.f32 %v6241_v53, %v7130_v29  ;;  %v3587_v7 = vmul.f32 %v6241_v53, %v7132_v57  ;;  %v7133_v58 = vld [vmem:[#allocation38_spill] sm:$0xff]  ;;  %v7134_v36 = vld [vmem:[#allocation39_spill] sm:$0xff] }
 0x2bc   : > { %3507 = vst.msk [vmem:[%s4841_s6 + $0x1a8] sm:$0xff] %vm655_vm1, %v3475_v42  ;;  %3508 = vst.msk [vmem:[%s4841_s6 + $0x1b0] sm:$0xff] %vm655_vm1, %v3476_v54  ;;  %v3588_v19 = vmul.f32 %v6241_v53, %v7133_v58  ;;  %v3589_v13 = vmul.f32 %v6241_v53, %v7134_v36  ;;  %v7135_v39 = vld [vmem:[#allocation41_spill] sm:$0xff]  ;;  %v7136_v9 = vld [vmem:[#allocation43_spill] sm:$0xff] }
 0x2bd   : > { %3509 = vst.msk [vmem:[%s4841_s6 + $0x1b8] sm:$0xff] %vm655_vm1, %v3477_v11  ;;  %3510 = vst.msk [vmem:[%s4841_s6 + $0x1c0] sm:$0xff] %vm655_vm1, %v3478_v47  ;;  %v3590_v27 = vmul.f32 %v6241_v53, %v7135_v39  ;;  %v3591_v25 = vmul.f32 %v6241_v53, %v7136_v9  ;;  %v7137_v3 = vld [vmem:[#allocation45_spill] sm:$0xff]  ;;  %v7139_v26 = vld [vmem:[#allocation51_spill] sm:$0xff]  ;;  %v6621_v11 = vmul.f32 %v6241_v53, %v5927_v28 }
 0x2be   : > { %3511 = vst.msk [vmem:[%s4841_s6 + $0x1c8] sm:$0xff] %vm655_vm1, %v3479_v4  ;;  %3512 = vst.msk [vmem:[%s4841_s6 + $0x1d0] sm:$0xff] %vm655_vm1, %v3480_v21  ;;  %v3592_v62 = vmul.f32 %v6241_v53, %v7137_v3  ;;  %v7138_v6 = vld [vmem:[#allocation49_spill] sm:$0xff]  ;;  %v3594_v20 = vmul.f32 %v6241_v53, %v7139_v26  ;;  %v7141_v14 = vld [vmem:[#allocation54_spill] sm:$0xff]  ;;  %v6625_v47 = vmul.f32 %v6241_v53, %v5948_v46  ;;  %v3621_v52 = vmax.f32 %v3589_v13, 0.0 }
 0x2bf   : > { %3513 = vst.msk [vmem:[%s4841_s6 + $0x1d8] sm:$0xff] %vm655_vm1, %v3481_v10  ;;  %3514 = vst.msk [vmem:[%s4841_s6 + $0x1e0] sm:$0xff] %vm655_vm1, %v3482_v32  ;;  %v3593_v24 = vmul.f32 %v6241_v53, %v7138_v6  ;;  %v7140_v45 = vld [vmem:[#allocation53_spill] sm:$0xff]  ;;  %v3596_v30 = vmul.f32 %v6241_v53, %v7141_v14  ;;  %v7142_v49 = vld [vmem:[#allocation55_spill] sm:$0xff]  ;;  %v6629_v4 = vmul.f32 %v6241_v53, %v5983_v8  ;;  %v3615_v32 = vmax.f32 %v3583_v1, 0.0 }
 0x2c0   : > { %3515 = vst.msk [vmem:[%s4841_s6 + $0x1e8] sm:$0xff] %vm655_vm1, %v3483_v43  ;;  %3516 = vst.msk [vmem:[%s4841_s6 + $0x1f0] sm:$0xff] %vm655_vm1, %v3484_v44  ;;  %v3595_v50 = vmul.f32 %v6241_v53, %v7140_v45  ;;  %v3597_v2 = vmul.f32 %v6241_v53, %v7142_v49  ;;  %v7143_v18 = vld [vmem:[#allocation56_spill] sm:$0xff]  ;;  %v7144_v61 = vld [vmem:[#allocation57_spill] sm:$0xff]  ;;  %v6633_v21 = vmul.f32 %v6241_v53, %v6001_v0  ;;  %v3617_v43 = vmax.f32 %v3585_v38, 0.0 }
 0x2c1   : > { %3517 = vst.msk [vmem:[%s4841_s6 + $0x1f8] sm:$0xff] %vm655_vm1, %v3485_v41  ;;  %v3598_v37 = vmul.f32 %v6241_v53, %v7143_v18  ;;  %v3599_v23 = vmul.f32 %v6241_v53, %v7144_v61  ;;  %v7145_v17 = vld [vmem:[#allocation58_spill] sm:$0xff]  ;;  %v7146_v59 = vld [vmem:[#allocation61_spill] sm:$0xff]  ;;  %v6637_v10 = vmul.f32 %v6241_v53, %v6026_v15  ;;  %v6641_v28 = vmul.f32 %v6241_v53, %v6051_v16 }
 0x2c2   : > { %v3600_v35 = vmul.f32 %v6241_v53, %v7145_v17  ;;  %v3601_v22 = vmul.f32 %v6241_v53, %v7146_v59  ;;  %v7147_v34 = vld [vmem:[#allocation62_spill] sm:$0xff]  ;;  %v7148_v42 = vld [vmem:[#allocation65_spill] sm:$0xff]  ;;  %v6645_v46 = vmul.f32 %v6241_v53, %v6076_v31  ;;  %v6649_v8 = vmul.f32 %v6241_v53, %v6101_v5  ;;  %3647 = vst.msk [vmem:[%s4841_s6 + $0x208] sm:$0xff] %vm655_vm1, %v3615_v32 }
 0x2c3   : > { %v6613_v63 = vmul.f32 %v6241_v53, %v7147_v34  ;;  %v6617_v54 = vmul.f32 %v6241_v53, %v7148_v42  ;;  %v6653_v0 = vmul.f32 %v6241_v53, %v6126_v48  ;;  %v6657_v15 = vmul.f32 %v6241_v53, %v6151_v33  ;;  %3649 = vst.msk [vmem:[%s4841_s6 + $0x218] sm:$0xff] %vm655_vm1, %v3617_v43  ;;  %v7165_v32 = vld [vmem:[#allocation78_spill] sm:$0xff]  ;;  %v7166_v43 = vld [vmem:[#allocation79_spill] sm:$0xff] }
 0x2c4   : > { %v3614_v16 = vmax.f32 %v3582_v55, 0.0  ;;  %v3616_v31 = vmax.f32 %v3584_v51, 0.0  ;;  %v3618_v44 = vmax.f32 %v3586_v56, 0.0  ;;  %v3619_v41 = vmax.f32 %v3587_v7, 0.0  ;;  %3653 = vst.msk [vmem:[%s4841_s6 + $0x238] sm:$0xff] %vm655_vm1, %v3621_v52  ;;  %v7168_v52 = vld [vmem:[#allocation81_spill] sm:$0xff] }
 0x2c5   : > { %v3620_v5 = vmax.f32 %v3588_v19, 0.0  ;;  %v3622_v48 = vmax.f32 %v3590_v27, 0.0  ;;  %v3623_v60 = vmax.f32 %v3591_v25, 0.0  ;;  %v3624_v12 = vmax.f32 %v3592_v62, 0.0 }
 0x2c6   : > { %v3625_v29 = vmax.f32 %v3593_v24, 0.0  ;;  %3646 = vst.msk [vmem:[%s4841_s6 + $0x200] sm:$0xff] %vm655_vm1, %v3614_v16  ;;  %3648 = vst.msk [vmem:[%s4841_s6 + $0x210] sm:$0xff] %vm655_vm1, %v3616_v31  ;;  %v3626_v33 = vmax.f32 %v3594_v20, 0.0  ;;  %v3627_v55 = vmax.f32 %v3595_v50, 0.0  ;;  %v3628_v1 = vmax.f32 %v3596_v30, 0.0 }
 0x2c7   : > { %v3629_v51 = vmax.f32 %v3597_v2, 0.0  ;;  %3650 = vst.msk [vmem:[%s4841_s6 + $0x220] sm:$0xff] %vm655_vm1, %v3618_v44  ;;  %3651 = vst.msk [vmem:[%s4841_s6 + $0x228] sm:$0xff] %vm655_vm1, %v3619_v41  ;;  %v3630_v38 = vmax.f32 %v3598_v37, 0.0  ;;  %v3631_v40 = vmax.f32 %v3599_v23, 0.0  ;;  %v3632_v56 = vmax.f32 %v3600_v35, 0.0 }
 0x2c8   : > { %3652 = vst.msk [vmem:[%s4841_s6 + $0x230] sm:$0xff] %vm655_vm1, %v3620_v5  ;;  %v3633_v57 = vmax.f32 %v3601_v22, 0.0  ;;  %3654 = vst.msk [vmem:[%s4841_s6 + $0x240] sm:$0xff] %vm655_vm1, %v3622_v48  ;;  %v3634_v7 = vmax.f32 %v6613_v63, 0.0  ;;  %v3635_v58 = vmax.f32 %v6617_v54, 0.0  ;;  %v3636_v19 = vmax.f32 %v6621_v11, 0.0 }
 0x2c9   : > { %3655 = vst.msk [vmem:[%s4841_s6 + $0x248] sm:$0xff] %vm655_vm1, %v3623_v60  ;;  %3656 = vst.msk [vmem:[%s4841_s6 + $0x250] sm:$0xff] %vm655_vm1, %v3624_v12  ;;  %v3637_v36 = vmax.f32 %v6625_v47, 0.0  ;;  %v3638_v13 = vmax.f32 %v6629_v4, 0.0  ;;  %v3639_v39 = vmax.f32 %v6633_v21, 0.0  ;;  %v3640_v27 = vmax.f32 %v6637_v10, 0.0 }
 0x2ca   : > { %3657 = vst.msk [vmem:[%s4841_s6 + $0x258] sm:$0xff] %vm655_vm1, %v3625_v29  ;;  %3658 = vst.msk [vmem:[%s4841_s6 + $0x260] sm:$0xff] %vm655_vm1, %v3626_v33  ;;  %v3641_v9 = vmax.f32 %v6641_v28, 0.0  ;;  %v3642_v25 = vmax.f32 %v6645_v46, 0.0  ;;  %v3643_v3 = vmax.f32 %v6649_v8, 0.0  ;;  %v3644_v62 = vmax.f32 %v6653_v0, 0.0 }
 0x2cb   : > { %3659 = vst.msk [vmem:[%s4841_s6 + $0x268] sm:$0xff] %vm655_vm1, %v3627_v55  ;;  %3660 = vst.msk [vmem:[%s4841_s6 + $0x270] sm:$0xff] %vm655_vm1, %v3628_v1  ;;  %v3645_v6 = vmax.f32 %v6657_v15, 0.0  ;;  %v7149_v24 = vld [vmem:[#allocation59_spill] sm:$0xff]  ;;  %v7150_v20 = vld [vmem:[#allocation60_spill] sm:$0xff]  ;;  %v3758_v31 = vmul.f32 %v6241_v53, %v7165_v32  ;;  %v3759_v44 = vmul.f32 %v6241_v53, %v7166_v43  ;;  %v3761_v48 = vmul.f32 %v6241_v53, %v7168_v52 }
 0x2cc   : > { %3661 = vst.msk [vmem:[%s4841_s6 + $0x278] sm:$0xff] %vm655_vm1, %v3629_v51  ;;  %3662 = vst.msk [vmem:[%s4841_s6 + $0x280] sm:$0xff] %vm655_vm1, %v3630_v38  ;;  %v3742_v26 = vmul.f32 %v6241_v53, %v7149_v24  ;;  %v3743_v45 = vmul.f32 %v6241_v53, %v7150_v20  ;;  %v7151_v50 = vld [vmem:[#allocation63_spill] sm:$0xff]  ;;  %v7152_v30 = vld [vmem:[#allocation64_spill] sm:$0xff] }
 0x2cd   : > { %3663 = vst.msk [vmem:[%s4841_s6 + $0x288] sm:$0xff] %vm655_vm1, %v3631_v40  ;;  %3664 = vst.msk [vmem:[%s4841_s6 + $0x290] sm:$0xff] %vm655_vm1, %v3632_v56  ;;  %v3744_v14 = vmul.f32 %v6241_v53, %v7151_v50  ;;  %v3745_v49 = vmul.f32 %v6241_v53, %v7152_v30  ;;  %v7153_v2 = vld [vmem:[#allocation66_spill] sm:$0xff]  ;;  %v7154_v37 = vld [vmem:[#allocation67_spill] sm:$0xff] }
 0x2ce   : > { %3665 = vst.msk [vmem:[%s4841_s6 + $0x298] sm:$0xff] %vm655_vm1, %v3633_v57  ;;  %3666 = vst.msk [vmem:[%s4841_s6 + $0x2a0] sm:$0xff] %vm655_vm1, %v3634_v7  ;;  %v3746_v18 = vmul.f32 %v6241_v53, %v7153_v2  ;;  %v3747_v61 = vmul.f32 %v6241_v53, %v7154_v37  ;;  %v7155_v23 = vld [vmem:[#allocation68_spill] sm:$0xff]  ;;  %v7156_v35 = vld [vmem:[#allocation69_spill] sm:$0xff]  ;;  %v3774_v20 = vmax.f32 %v3742_v26, 0.0  ;;  %v3775_v50 = vmax.f32 %v3743_v45, 0.0 }
 0x2cf   : > { %3667 = vst.msk [vmem:[%s4841_s6 + $0x2a8] sm:$0xff] %vm655_vm1, %v3635_v58  ;;  %3668 = vst.msk [vmem:[%s4841_s6 + $0x2b0] sm:$0xff] %vm655_vm1, %v3636_v19  ;;  %v3748_v17 = vmul.f32 %v6241_v53, %v7155_v23  ;;  %v3749_v59 = vmul.f32 %v6241_v53, %v7156_v35  ;;  %v7157_v22 = vld [vmem:[#allocation70_spill] sm:$0xff]  ;;  %v7158_v63 = vld [vmem:[#allocation71_spill] sm:$0xff]  ;;  %v3776_v30 = vmax.f32 %v3744_v14, 0.0  ;;  %v3777_v2 = vmax.f32 %v3745_v49, 0.0 }
 0x2d0   : > { %3669 = vst.msk [vmem:[%s4841_s6 + $0x2b8] sm:$0xff] %vm655_vm1, %v3637_v36  ;;  %3670 = vst.msk [vmem:[%s4841_s6 + $0x2c0] sm:$0xff] %vm655_vm1, %v3638_v13  ;;  %v3750_v34 = vmul.f32 %v6241_v53, %v7157_v22  ;;  %v3751_v42 = vmul.f32 %v6241_v53, %v7158_v63  ;;  %v7159_v54 = vld [vmem:[#allocation72_spill] sm:$0xff]  ;;  %v7160_v47 = vld [vmem:[#allocation73_spill] sm:$0xff]  ;;  %v3778_v37 = vmax.f32 %v3746_v18, 0.0  ;;  %v3779_v23 = vmax.f32 %v3747_v61, 0.0 }
 0x2d1   : > { %3671 = vst.msk [vmem:[%s4841_s6 + $0x2c8] sm:$0xff] %vm655_vm1, %v3639_v39  ;;  %3672 = vst.msk [vmem:[%s4841_s6 + $0x2d0] sm:$0xff] %vm655_vm1, %v3640_v27  ;;  %v3752_v11 = vmul.f32 %v6241_v53, %v7159_v54  ;;  %v3753_v4 = vmul.f32 %v6241_v53, %v7160_v47  ;;  %v7161_v21 = vld [vmem:[#allocation74_spill] sm:$0xff]  ;;  %v7162_v28 = vld [vmem:[#allocation75_spill] sm:$0xff]  ;;  %v3780_v35 = vmax.f32 %v3748_v17, 0.0  ;;  %v3781_v22 = vmax.f32 %v3749_v59, 0.0 }
 0x2d2   : > { %3673 = vst.msk [vmem:[%s4841_s6 + $0x2d8] sm:$0xff] %vm655_vm1, %v3641_v9  ;;  %3674 = vst.msk [vmem:[%s4841_s6 + $0x2e0] sm:$0xff] %vm655_vm1, %v3642_v25  ;;  %v3754_v10 = vmul.f32 %v6241_v53, %v7161_v21  ;;  %v3755_v46 = vmul.f32 %v6241_v53, %v7162_v28  ;;  %v7163_v8 = vld [vmem:[#allocation76_spill] sm:$0xff]  ;;  %v7164_v15 = vld [vmem:[#allocation77_spill] sm:$0xff]  ;;  %v3782_v63 = vmax.f32 %v3750_v34, 0.0  ;;  %v3783_v54 = vmax.f32 %v3751_v42, 0.0 }
 0x2d3   : > { %3675 = vst.msk [vmem:[%s4841_s6 + $0x2e8] sm:$0xff] %vm655_vm1, %v3643_v3  ;;  %3676 = vst.msk [vmem:[%s4841_s6 + $0x2f0] sm:$0xff] %vm655_vm1, %v3644_v62  ;;  %v3756_v0 = vmul.f32 %v6241_v53, %v7163_v8  ;;  %v3757_v16 = vmul.f32 %v6241_v53, %v7164_v15  ;;  %v7167_v41 = vld [vmem:[#allocation80_spill] sm:$0xff]  ;;  %v7169_v60 = vld [vmem:[#allocation82_spill] sm:$0xff]  ;;  %v3784_v47 = vmax.f32 %v3752_v11, 0.0  ;;  %v3785_v21 = vmax.f32 %v3753_v4, 0.0 }
 0x2d4   : > { %3677 = vst.msk [vmem:[%s4841_s6 + $0x2f8] sm:$0xff] %vm655_vm1, %v3645_v6  ;;  %v3760_v5 = vmul.f32 %v6241_v53, %v7167_v41  ;;  %v6777_v12 = vmul.f32 %v6241_v53, %v7169_v60  ;;  %v7170_v29 = vld [vmem:[#allocation83_spill] sm:$0xff]  ;;  %v7171_v55 = vld [vmem:[#allocation84_spill] sm:$0xff]  ;;  %v7172_v51 = vld [vmem:[#allocation85_spill] sm:$0xff]  ;;  %v3787_v26 = vmax.f32 %v3755_v46, 0.0  ;;  %v3790_v49 = vmax.f32 %v3758_v31, 0.0 }
 0x2d5   : > { %v6781_v33 = vmul.f32 %v6241_v53, %v7170_v29  ;;  %v6785_v1 = vmul.f32 %v6241_v53, %v7171_v55  ;;  %v6789_v38 = vmul.f32 %v6241_v53, %v7172_v51  ;;  %v7173_v40 = vld [vmem:[#allocation86_spill] sm:$0xff]  ;;  %v7174_v57 = vld [vmem:[#allocation87_spill] sm:$0xff]  ;;  %v7175_v58 = vld [vmem:[#allocation88_spill] sm:$0xff]  ;;  %3806 = vst.msk [vmem:[%s4841_s6 + $0x300] sm:$0xff] %vm655_vm1, %v3774_v20  ;;  %v3788_v45 = vmax.f32 %v3756_v0, 0.0 }
 0x2d6   : > { %v6793_v56 = vmul.f32 %v6241_v53, %v7173_v40  ;;  %v6797_v7 = vmul.f32 %v6241_v53, %v7174_v57  ;;  %v6801_v19 = vmul.f32 %v6241_v53, %v7175_v58  ;;  %v7176_v36 = vld [vmem:[#allocation89_spill] sm:$0xff]  ;;  %v7177_v39 = vld [vmem:[#allocation90_spill] sm:$0xff]  ;;  %v7178_v9 = vld [vmem:[#allocation91_spill] sm:$0xff]  ;;  %3807 = vst.msk [vmem:[%s4841_s6 + $0x308] sm:$0xff] %vm655_vm1, %v3775_v50  ;;  %v3789_v14 = vmax.f32 %v3757_v16, 0.0 }
 0x2d7   : > { %v6805_v13 = vmul.f32 %v6241_v53, %v7176_v36  ;;  %v6809_v27 = vmul.f32 %v6241_v53, %v7177_v39  ;;  %v6813_v25 = vmul.f32 %v6241_v53, %v7178_v9  ;;  %v7179_v3 = vld [vmem:[#allocation92_spill] sm:$0xff]  ;;  %v7180_v6 = vld [vmem:[#allocation93_spill] sm:$0xff]  ;;  %3808 = vst.msk [vmem:[%s4841_s6 + $0x310] sm:$0xff] %vm655_vm1, %v3776_v30  ;;  %3809 = vst.msk [vmem:[%s4841_s6 + $0x318] sm:$0xff] %vm655_vm1, %v3777_v2  ;;  %v3791_v18 = vmax.f32 %v3759_v44, 0.0 }
 0x2d8   : > { %v6817_v62 = vmul.f32 %v6241_v53, %v7179_v3  ;;  %v6821_v24 = vmul.f32 %v6241_v53, %v7180_v6  ;;  %v3786_v53 = vmax.f32 %v3754_v10, 0.0  ;;  %3810 = vst.msk [vmem:[%s4841_s6 + $0x320] sm:$0xff] %vm655_vm1, %v3778_v37  ;;  %3811 = vst.msk [vmem:[%s4841_s6 + $0x328] sm:$0xff] %vm655_vm1, %v3779_v23  ;;  %v3792_v61 = vmax.f32 %v3760_v5, 0.0 }
 0x2d9   : > { %3812 = vst.msk [vmem:[%s4841_s6 + $0x330] sm:$0xff] %vm655_vm1, %v3780_v35  ;;  %3813 = vst.msk [vmem:[%s4841_s6 + $0x338] sm:$0xff] %vm655_vm1, %v3781_v22  ;;  %v3793_v17 = vmax.f32 %v3761_v48, 0.0  ;;  %v3794_v59 = vmax.f32 %v6777_v12, 0.0  ;;  %v3795_v34 = vmax.f32 %v6781_v33, 0.0  ;;  %v3796_v42 = vmax.f32 %v6785_v1, 0.0 }
 0x2da   : > { %3814 = vst.msk [vmem:[%s4841_s6 + $0x340] sm:$0xff] %vm655_vm1, %v3782_v63  ;;  %3815 = vst.msk [vmem:[%s4841_s6 + $0x348] sm:$0xff] %vm655_vm1, %v3783_v54  ;;  %v3797_v11 = vmax.f32 %v6789_v38, 0.0  ;;  %v3798_v4 = vmax.f32 %v6793_v56, 0.0  ;;  %v3799_v10 = vmax.f32 %v6797_v7, 0.0  ;;  %v3800_v28 = vmax.f32 %v6801_v19, 0.0 }
 0x2db   : > { %3816 = vst.msk [vmem:[%s4841_s6 + $0x350] sm:$0xff] %vm655_vm1, %v3784_v47  ;;  %3817 = vst.msk [vmem:[%s4841_s6 + $0x358] sm:$0xff] %vm655_vm1, %v3785_v21  ;;  %v3801_v46 = vmax.f32 %v6805_v13, 0.0  ;;  %v3802_v8 = vmax.f32 %v6809_v27, 0.0  ;;  %v3803_v0 = vmax.f32 %v6813_v25, 0.0  ;;  %v3804_v15 = vmax.f32 %v6817_v62, 0.0 }
 0x2dc   : > { %3818 = vst.msk [vmem:[%s4841_s6 + $0x360] sm:$0xff] %vm655_vm1, %v3786_v53  ;;  %3819 = vst.msk [vmem:[%s4841_s6 + $0x368] sm:$0xff] %vm655_vm1, %v3787_v26  ;;  %v3805_v16 = vmax.f32 %v6821_v24, 0.0 }
 0x2dd   : > { %3820 = vst.msk [vmem:[%s4841_s6 + $0x370] sm:$0xff] %vm655_vm1, %v3788_v45  ;;  %3821 = vst.msk [vmem:[%s4841_s6 + $0x378] sm:$0xff] %vm655_vm1, %v3789_v14 }
 0x2de   : > { %3822 = vst.msk [vmem:[%s4841_s6 + $0x380] sm:$0xff] %vm655_vm1, %v3790_v49  ;;  %3823 = vst.msk [vmem:[%s4841_s6 + $0x388] sm:$0xff] %vm655_vm1, %v3791_v18 }
 0x2df   : > { %3824 = vst.msk [vmem:[%s4841_s6 + $0x390] sm:$0xff] %vm655_vm1, %v3792_v61  ;;  %3825 = vst.msk [vmem:[%s4841_s6 + $0x398] sm:$0xff] %vm655_vm1, %v3793_v17 }
 0x2e0   : > { %3826 = vst.msk [vmem:[%s4841_s6 + $0x3a0] sm:$0xff] %vm655_vm1, %v3794_v59  ;;  %3827 = vst.msk [vmem:[%s4841_s6 + $0x3a8] sm:$0xff] %vm655_vm1, %v3795_v34 }
 0x2e1   : > { %3828 = vst.msk [vmem:[%s4841_s6 + $0x3b0] sm:$0xff] %vm655_vm1, %v3796_v42  ;;  %3829 = vst.msk [vmem:[%s4841_s6 + $0x3b8] sm:$0xff] %vm655_vm1, %v3797_v11 }
 0x2e2   : > { %3830 = vst.msk [vmem:[%s4841_s6 + $0x3c0] sm:$0xff] %vm655_vm1, %v3798_v4  ;;  %3831 = vst.msk [vmem:[%s4841_s6 + $0x3c8] sm:$0xff] %vm655_vm1, %v3799_v10 }
 0x2e3   : > { %3832 = vst.msk [vmem:[%s4841_s6 + $0x3d0] sm:$0xff] %vm655_vm1, %v3800_v28  ;;  %3833 = vst.msk [vmem:[%s4841_s6 + $0x3d8] sm:$0xff] %vm655_vm1, %v3801_v46 }
 0x2e4   : > { %3834 = vst.msk [vmem:[%s4841_s6 + $0x3e0] sm:$0xff] %vm655_vm1, %v3802_v8  ;;  %3835 = vst.msk [vmem:[%s4841_s6 + $0x3e8] sm:$0xff] %vm655_vm1, %v3803_v0 }
 0x2e5   : > { %3836 = vst.msk [vmem:[%s4841_s6 + $0x3f0] sm:$0xff] %vm655_vm1, %v3804_v15  ;;  %3837 = vst.msk [vmem:[%s4841_s6 + $0x3f8] sm:$0xff] %vm655_vm1, %v3805_v16 }
 0x2e6 PF: > { %s12_s9 = sadd.s32 1, %s4623_s9  }
 0x2e7   : > { %p9_p4 = scmp.ge.s32.totalorder %s12_s9, 4  }
 0x2e9   :  { %11 = sbr.rel (!%p9_p4) target bundleno = 1 (0x1), region = 65 }

</bundles_post_ra>
